<compile_context>
chip_gen: v7x
topology: tpu7x:2x2x1
jax: 0.10.0
libtpu: 0.0.40
codegen_flags: <defaults>
</compile_context>

<pallas_src>
import functools

import jax
import jax.numpy as jnp
from jax import lax
from jax.experimental import pallas as pl
from jax.experimental.pallas import tpu as pltpu

CLAMP_MIN = 0.1
CLAMP_MAX = 0.4


def _conv_clamp_kernel(w_ref, b_ref, x_ref, o_ref, *,
                       cin, cout, kh, kw, stride, hout, wout, hp, wp):
    """Fused Conv2d + bias + clamp for one batch element.

    w_ref : (cout*cin*kh*kw,) f32, SMEM  -- flat conv weights (OIHW order)
    b_ref : (cout,)           f32, SMEM  -- bias
    x_ref : (1, cin, hp, wp)  f32, VMEM  -- zero-padded input block
    o_ref : (1, cout, hout, wout) f32, VMEM -- output block, NCHW directly
    """
    f32 = jnp.float32

    # 0/1 row-selection matrices P_i (hout, hp): P_i[ho, r] = (r == stride*ho + i)
    r_col = lax.broadcasted_iota(jnp.int32, (hout, hp), 1)
    ho_row = lax.broadcasted_iota(jnp.int32, (hout, hp), 0)
    P = [(r_col == stride * ho_row + i).astype(f32) for i in range(kh)]

    # 0/1 col-selection matrices Q_j (wp, wout): Q_j[c, wo] = (c == stride*wo + j)
    c_row = lax.broadcasted_iota(jnp.int32, (wp, wout), 0)
    wo_col = lax.broadcasted_iota(jnp.int32, (wp, wout), 1)
    Q = [(c_row == stride * wo_col + j).astype(f32) for j in range(kw)]

    # Row gather on the MXU: M1[c][i][ho, :] = x[c, stride*ho + i, :]  -> (hout, wp)
    M1 = []
    for c in range(cin):
        a_c = x_ref[0, c]                                   # (hp, wp)
        M1.append([jnp.dot(P[i], a_c, preferred_element_type=f32)
                   for i in range(kh)])

    # Per output channel: combine taps on the VPU (exact f32 scalar FMAs with
    # SMEM weights), column-gather on the MXU, add bias, clamp, store NCHW.
    for co in range(cout):
        acc = None
        for j in range(kw):
            z = None
            for c in range(cin):
                for i in range(kh):
                    w_val = w_ref[((co * cin + c) * kh + i) * kw + j]
                    term = w_val * M1[c][i]                 # (hout, wp)
                    z = term if z is None else z + term
            zq = jnp.dot(z, Q[j], preferred_element_type=f32)  # (hout, wout)
            acc = zq if acc is None else acc + zq
        acc = acc + b_ref[co]
        acc = jnp.maximum(acc, CLAMP_MIN)                   # clamp_min
        acc = jnp.minimum(acc, CLAMP_MAX)                   # clamp_max
        o_ref[0, co] = acc.astype(o_ref.dtype)


def conv2d_clamp(x_nchw, weight, bias, *, stride=2, padding=3):
    """x_nchw: (N, Cin, H, W); weight: (Cout, Cin, kh, kw); bias: (Cout,)."""
    N, cin, H, W = x_nchw.shape
    cout, _, kh, kw = weight.shape

    hout = (H + 2 * padding - kh) // stride + 1
    wout = (W + 2 * padding - kw) // stride + 1
    hp = H + 2 * padding
    wp = W + 2 * padding

    # Only remaining wrapper-side data op: zero-pad the input (tiny).
    x_pad = jnp.pad(
        x_nchw, ((0, 0), (0, 0), (padding, padding), (padding, padding)))
    w_flat = weight.reshape(-1)                 # free reshape, lands in SMEM

    kernel = functools.partial(
        _conv_clamp_kernel, cin=cin, cout=cout, kh=kh, kw=kw, stride=stride,
        hout=hout, wout=wout, hp=hp, wp=wp)

    # Advisory cost hint (selection matmuls + tap-combine FMAs + col matmuls).
    flops = 2 * N * (cin * kh * hout * hp * wp
                     + cout * kw * cin * kh * hout * wp
                     + cout * kw * hout * wp * wout)
    bytes_accessed = 4 * (x_pad.size + N * cout * hout * wout
                          + w_flat.size + bias.size)

    out = pl.pallas_call(
        kernel,
        out_shape=jax.ShapeDtypeStruct((N, cout, hout, wout), x_nchw.dtype),
        grid=(N,),
        in_specs=[
            pl.BlockSpec(memory_space=pltpu.MemorySpace.SMEM),      # weights
            pl.BlockSpec(memory_space=pltpu.MemorySpace.SMEM),      # bias
            pl.BlockSpec((1, cin, hp, wp), lambda n: (n, 0, 0, 0)),  # x_pad
        ],
        out_specs=pl.BlockSpec((1, cout, hout, wout), lambda n: (n, 0, 0, 0)),
        compiler_params=pltpu.CompilerParams(
            dimension_semantics=("parallel",)),
        cost_estimate=pl.CostEstimate(
            flops=int(flops), transcendentals=0,
            bytes_accessed=int(bytes_accessed)),
    )(w_flat, bias, x_pad)

    return out  # already NCHW -- no post-kernel transpose/reshape


if __name__ == "__main__":
    key = jax.random.PRNGKey(0)
    kx, kwt, kb = jax.random.split(key, 3)

    # Small shapes consistent with the module: N=2, Cin=4, H=W=16
    N, Cin, H, W = 2, 4, 16, 16
    Cout, KH, KW = 9, 2, 2

    x = jax.random.normal(kx, (N, Cin, H, W), dtype=jnp.float32)
    weight = 0.1 * jax.random.normal(kwt, (Cout, Cin, KH, KW), dtype=jnp.float32)
    bias = 0.1 * jax.random.normal(kb, (Cout,), dtype=jnp.float32)

    fwd = jax.jit(functools.partial(conv2d_clamp, stride=2, padding=3))
    out = jax.block_until_ready(fwd(x, weight, bias))

    # Reference: XLA conv (same NCHW/OIHW conventions as PyTorch) + clamp.
    ref = lax.conv_general_dilated(
        x, weight, window_strides=(2, 2), padding=((3, 3), (3, 3)),
        dimension_numbers=("NCHW", "OIHW", "NCHW"),
        precision=lax.Precision.HIGHEST,
    ) + bias.reshape(1, Cout, 1, 1)
    ref = jnp.minimum(jnp.maximum(ref, CLAMP_MIN), CLAMP_MAX)

    assert out.shape == ref.shape, (out.shape, ref.shape)
    err = float(jnp.max(jnp.abs(out - ref)))
    assert jnp.allclose(out, ref, atol=1e-5, rtol=1e-5), err

    # TODO(synk): .requires_grad_() is a PyTorch autograd flag with no JAX/Pallas equivalent (no-op here).
    print("KERNEL_OK")
</pallas_src>

<mosaic_0001>
module attributes {stable_mosaic.version = 11 : i64} {
  func.func @_conv_clamp_kernel(%arg0: i32, %arg1: memref<144xf32, #tpu.memory_space<smem>>, %arg2: memref<9xf32, #tpu.memory_space<smem>>, %arg3: memref<1x4x22x22xf32, #tpu.memory_space<vmem>>, %arg4: memref<1x9x11x11xf32, #tpu.memory_space<vmem>>) attributes {dimension_semantics = [#tpu.dimension_semantics<parallel>], iteration_bounds = array<i64: 2>, scalar_prefetch = 0 : i64, scratch_operands = 0 : i64, tpu.core_type = #tpu.core_type<tc>, window_params = [{transform_indices = @transform_0, window_bounds = array<i64: 144>}, {transform_indices = @transform_1, window_bounds = array<i64: 9>}, {transform_indices = @transform_2, window_bounds = array<i64: 1, 4, 22, 22>}, {transform_indices = @transform_3, window_bounds = array<i64: 1, 9, 11, 11>}]} {
    %0 = tpu.iota {dimensions = array<i32: 1>} : vector<11x22xi32>
    %1 = tpu.iota {dimensions = array<i32: 0>} : vector<11x22xi32>
    %c2_i32 = arith.constant 2 : i32
    %2 = vector.broadcast %c2_i32 : i32 to vector<11x22xi32>
    %3 = arith.muli %2, %1 : vector<11x22xi32>
    %c0_i32 = arith.constant 0 : i32
    %4 = vector.broadcast %c0_i32 : i32 to vector<11x22xi32>
    %5 = arith.addi %3, %4 : vector<11x22xi32>
    %6 = arith.cmpi eq, %0, %5 : vector<11x22xi32>
    %7 = arith.extui %6 : vector<11x22xi1> to vector<11x22xi32>
    %8 = arith.sitofp %7 : vector<11x22xi32> to vector<11x22xf32>
    %c2_i32_0 = arith.constant 2 : i32
    %9 = vector.broadcast %c2_i32_0 : i32 to vector<11x22xi32>
    %10 = arith.muli %9, %1 : vector<11x22xi32>
    %c1_i32 = arith.constant 1 : i32
    %11 = vector.broadcast %c1_i32 : i32 to vector<11x22xi32>
    %12 = arith.addi %10, %11 : vector<11x22xi32>
    %13 = arith.cmpi eq, %0, %12 : vector<11x22xi32>
    %14 = arith.extui %13 : vector<11x22xi1> to vector<11x22xi32>
    %15 = arith.sitofp %14 : vector<11x22xi32> to vector<11x22xf32>
    %16 = tpu.iota {dimensions = array<i32: 0>} : vector<22x11xi32>
    %17 = tpu.iota {dimensions = array<i32: 1>} : vector<22x11xi32>
    %c2_i32_1 = arith.constant 2 : i32
    %18 = vector.broadcast %c2_i32_1 : i32 to vector<22x11xi32>
    %19 = arith.muli %18, %17 : vector<22x11xi32>
    %c0_i32_2 = arith.constant 0 : i32
    %20 = vector.broadcast %c0_i32_2 : i32 to vector<22x11xi32>
    %21 = arith.addi %19, %20 : vector<22x11xi32>
    %22 = arith.cmpi eq, %16, %21 : vector<22x11xi32>
    %23 = arith.extui %22 : vector<22x11xi1> to vector<22x11xi32>
    %24 = arith.sitofp %23 : vector<22x11xi32> to vector<22x11xf32>
    %c2_i32_3 = arith.constant 2 : i32
    %25 = vector.broadcast %c2_i32_3 : i32 to vector<22x11xi32>
    %26 = arith.muli %25, %17 : vector<22x11xi32>
    %c1_i32_4 = arith.constant 1 : i32
    %27 = vector.broadcast %c1_i32_4 : i32 to vector<22x11xi32>
    %28 = arith.addi %26, %27 : vector<22x11xi32>
    %29 = arith.cmpi eq, %16, %28 : vector<22x11xi32>
    %30 = arith.extui %29 : vector<22x11xi1> to vector<22x11xi32>
    %31 = arith.sitofp %30 : vector<22x11xi32> to vector<22x11xf32>
    %c0 = arith.constant 0 : index
    %c0_5 = arith.constant 0 : index
    %c0_6 = arith.constant 0 : index
    %c0_7 = arith.constant 0 : index
    %32 = vector.load %arg3[%c0, %c0_5, %c0_6, %c0_7] : memref<1x4x22x22xf32, #tpu.memory_space<vmem>>, vector<1x1x22x22xf32>
    %33 = vector.shape_cast %32 : vector<1x1x22x22xf32> to vector<22x22xf32>
    %cst = arith.constant dense<0.000000e+00> : vector<11x22xf32>
    %34 = tpu.matmul %8, %33, %cst {dimension_numbers = #tpu.dot_dimension_numbers<[1], [0], [0], [1], [0, 0, 1, 1], [], []>} : vector<11x22xf32>, vector<22x22xf32>, vector<11x22xf32> -> vector<11x22xf32>
    %cst_8 = arith.constant dense<0.000000e+00> : vector<11x22xf32>
    %35 = tpu.matmul %15, %33, %cst_8 {dimension_numbers = #tpu.dot_dimension_numbers<[1], [0], [0], [1], [0, 0, 1, 1], [], []>} : vector<11x22xf32>, vector<22x22xf32>, vector<11x22xf32> -> vector<11x22xf32>
    %c0_9 = arith.constant 0 : index
    %c1 = arith.constant 1 : index
    %c0_10 = arith.constant 0 : index
    %c0_11 = arith.constant 0 : index
    %36 = vector.load %arg3[%c0_9, %c1, %c0_10, %c0_11] : memref<1x4x22x22xf32, #tpu.memory_space<vmem>>, vector<1x1x22x22xf32>
    %37 = vector.shape_cast %36 : vector<1x1x22x22xf32> to vector<22x22xf32>
    %cst_12 = arith.constant dense<0.000000e+00> : vector<11x22xf32>
    %38 = tpu.matmul %8, %37, %cst_12 {dimension_numbers = #tpu.dot_dimension_numbers<[1], [0], [0], [1], [0, 0, 1, 1], [], []>} : vector<11x22xf32>, vector<22x22xf32>, vector<11x22xf32> -> vector<11x22xf32>
    %cst_13 = arith.constant dense<0.000000e+00> : vector<11x22xf32>
    %39 = tpu.matmul %15, %37, %cst_13 {dimension_numbers = #tpu.dot_dimension_numbers<[1], [0], [0], [1], [0, 0, 1, 1], [], []>} : vector<11x22xf32>, vector<22x22xf32>, vector<11x22xf32> -> vector<11x22xf32>
    %c0_14 = arith.constant 0 : index
    %c2 = arith.constant 2 : index
    %c0_15 = arith.constant 0 : index
    %c0_16 = arith.constant 0 : index
    %40 = vector.load %arg3[%c0_14, %c2, %c0_15, %c0_16] : memref<1x4x22x22xf32, #tpu.memory_space<vmem>>, vector<1x1x22x22xf32>
    %41 = vector.shape_cast %40 : vector<1x1x22x22xf32> to vector<22x22xf32>
    %cst_17 = arith.constant dense<0.000000e+00> : vector<11x22xf32>
    %42 = tpu.matmul %8, %41, %cst_17 {dimension_numbers = #tpu.dot_dimension_numbers<[1], [0], [0], [1], [0, 0, 1, 1], [], []>} : vector<11x22xf32>, vector<22x22xf32>, vector<11x22xf32> -> vector<11x22xf32>
    %cst_18 = arith.constant dense<0.000000e+00> : vector<11x22xf32>
    %43 = tpu.matmul %15, %41, %cst_18 {dimension_numbers = #tpu.dot_dimension_numbers<[1], [0], [0], [1], [0, 0, 1, 1], [], []>} : vector<11x22xf32>, vector<22x22xf32>, vector<11x22xf32> -> vector<11x22xf32>
    %c0_19 = arith.constant 0 : index
    %c3 = arith.constant 3 : index
    %c0_20 = arith.constant 0 : index
    %c0_21 = arith.constant 0 : index
    %44 = vector.load %arg3[%c0_19, %c3, %c0_20, %c0_21] : memref<1x4x22x22xf32, #tpu.memory_space<vmem>>, vector<1x1x22x22xf32>
    %45 = vector.shape_cast %44 : vector<1x1x22x22xf32> to vector<22x22xf32>
    %cst_22 = arith.constant dense<0.000000e+00> : vector<11x22xf32>
    %46 = tpu.matmul %8, %45, %cst_22 {dimension_numbers = #tpu.dot_dimension_numbers<[1], [0], [0], [1], [0, 0, 1, 1], [], []>} : vector<11x22xf32>, vector<22x22xf32>, vector<11x22xf32> -> vector<11x22xf32>
    %cst_23 = arith.constant dense<0.000000e+00> : vector<11x22xf32>
    %47 = tpu.matmul %15, %45, %cst_23 {dimension_numbers = #tpu.dot_dimension_numbers<[1], [0], [0], [1], [0, 0, 1, 1], [], []>} : vector<11x22xf32>, vector<22x22xf32>, vector<11x22xf32> -> vector<11x22xf32>
    %c0_24 = arith.constant 0 : index
    %48 = memref.load %arg1[%c0_24] : memref<144xf32, #tpu.memory_space<smem>>
    %49 = vector.broadcast %48 : f32 to vector<11x22xf32>
    %50 = arith.mulf %49, %34 : vector<11x22xf32>
    %c2_25 = arith.constant 2 : index
    %51 = memref.load %arg1[%c2_25] : memref<144xf32, #tpu.memory_space<smem>>
    %52 = vector.broadcast %51 : f32 to vector<11x22xf32>
    %53 = arith.mulf %52, %35 : vector<11x22xf32>
    %54 = arith.addf %50, %53 : vector<11x22xf32>
    %c4 = arith.constant 4 : index
    %55 = memref.load %arg1[%c4] : memref<144xf32, #tpu.memory_space<smem>>
    %56 = vector.broadcast %55 : f32 to vector<11x22xf32>
    %57 = arith.mulf %56, %38 : vector<11x22xf32>
    %58 = arith.addf %54, %57 : vector<11x22xf32>
    %c6 = arith.constant 6 : index
    %59 = memref.load %arg1[%c6] : memref<144xf32, #tpu.memory_space<smem>>
    %60 = vector.broadcast %59 : f32 to vector<11x22xf32>
    %61 = arith.mulf %60, %39 : vector<11x22xf32>
    %62 = arith.addf %58, %61 : vector<11x22xf32>
    %c8 = arith.constant 8 : index
    %63 = memref.load %arg1[%c8] : memref<144xf32, #tpu.memory_space<smem>>
    %64 = vector.broadcast %63 : f32 to vector<11x22xf32>
    %65 = arith.mulf %64, %42 : vector<11x22xf32>
    %66 = arith.addf %62, %65 : vector<11x22xf32>
    %c10 = arith.constant 10 : index
    %67 = memref.load %arg1[%c10] : memref<144xf32, #tpu.memory_space<smem>>
    %68 = vector.broadcast %67 : f32 to vector<11x22xf32>
    %69 = arith.mulf %68, %43 : vector<11x22xf32>
    %70 = arith.addf %66, %69 : vector<11x22xf32>
    %c12 = arith.constant 12 : index
    %71 = memref.load %arg1[%c12] : memref<144xf32, #tpu.memory_space<smem>>
    %72 = vector.broadcast %71 : f32 to vector<11x22xf32>
    %73 = arith.mulf %72, %46 : vector<11x22xf32>
    %74 = arith.addf %70, %73 : vector<11x22xf32>
    %c14 = arith.constant 14 : index
    %75 = memref.load %arg1[%c14] : memref<144xf32, #tpu.memory_space<smem>>
    %76 = vector.broadcast %75 : f32 to vector<11x22xf32>
    %77 = arith.mulf %76, %47 : vector<11x22xf32>
    %78 = arith.addf %74, %77 : vector<11x22xf32>
    %cst_26 = arith.constant dense<0.000000e+00> : vector<11x11xf32>
    %79 = tpu.matmul %78, %24, %cst_26 {dimension_numbers = #tpu.dot_dimension_numbers<[1], [0], [0], [1], [0, 0, 1, 1], [], []>} : vector<11x22xf32>, vector<22x11xf32>, vector<11x11xf32> -> vector<11x11xf32>
    %c1_27 = arith.constant 1 : index
    %80 = memref.load %arg1[%c1_27] : memref<144xf32, #tpu.memory_space<smem>>
    %81 = vector.broadcast %80 : f32 to vector<11x22xf32>
    %82 = arith.mulf %81, %34 : vector<11x22xf32>
    %c3_28 = arith.constant 3 : index
    %83 = memref.load %arg1[%c3_28] : memref<144xf32, #tpu.memory_space<smem>>
    %84 = vector.broadcast %83 : f32 to vector<11x22xf32>
    %85 = arith.mulf %84, %35 : vector<11x22xf32>
    %86 = arith.addf %82, %85 : vector<11x22xf32>
    %c5 = arith.constant 5 : index
    %87 = memref.load %arg1[%c5] : memref<144xf32, #tpu.memory_space<smem>>
    %88 = vector.broadcast %87 : f32 to vector<11x22xf32>
    %89 = arith.mulf %88, %38 : vector<11x22xf32>
    %90 = arith.addf %86, %89 : vector<11x22xf32>
    %c7 = arith.constant 7 : index
    %91 = memref.load %arg1[%c7] : memref<144xf32, #tpu.memory_space<smem>>
    %92 = vector.broadcast %91 : f32 to vector<11x22xf32>
    %93 = arith.mulf %92, %39 : vector<11x22xf32>
    %94 = arith.addf %90, %93 : vector<11x22xf32>
    %c9 = arith.constant 9 : index
    %95 = memref.load %arg1[%c9] : memref<144xf32, #tpu.memory_space<smem>>
    %96 = vector.broadcast %95 : f32 to vector<11x22xf32>
    %97 = arith.mulf %96, %42 : vector<11x22xf32>
    %98 = arith.addf %94, %97 : vector<11x22xf32>
    %c11 = arith.constant 11 : index
    %99 = memref.load %arg1[%c11] : memref<144xf32, #tpu.memory_space<smem>>
    %100 = vector.broadcast %99 : f32 to vector<11x22xf32>
    %101 = arith.mulf %100, %43 : vector<11x22xf32>
    %102 = arith.addf %98, %101 : vector<11x22xf32>
    %c13 = arith.constant 13 : index
    %103 = memref.load %arg1[%c13] : memref<144xf32, #tpu.memory_space<smem>>
    %104 = vector.broadcast %103 : f32 to vector<11x22xf32>
    %105 = arith.mulf %104, %46 : vector<11x22xf32>
    %106 = arith.addf %102, %105 : vector<11x22xf32>
    %c15 = arith.constant 15 : index
    %107 = memref.load %arg1[%c15] : memref<144xf32, #tpu.memory_space<smem>>
    %108 = vector.broadcast %107 : f32 to vector<11x22xf32>
    %109 = arith.mulf %108, %47 : vector<11x22xf32>
    %110 = arith.addf %106, %109 : vector<11x22xf32>
    %cst_29 = arith.constant dense<0.000000e+00> : vector<11x11xf32>
    %111 = tpu.matmul %110, %31, %cst_29 {dimension_numbers = #tpu.dot_dimension_numbers<[1], [0], [0], [1], [0, 0, 1, 1], [], []>} : vector<11x22xf32>, vector<22x11xf32>, vector<11x11xf32> -> vector<11x11xf32>
    %112 = arith.addf %79, %111 : vector<11x11xf32>
    %c0_30 = arith.constant 0 : index
    %113 = memref.load %arg2[%c0_30] : memref<9xf32, #tpu.memory_space<smem>>
    %114 = vector.broadcast %113 : f32 to vector<11x11xf32>
    %115 = arith.addf %112, %114 : vector<11x11xf32>
    %cst_31 = arith.constant 1.000000e-01 : f32
    %116 = vector.broadcast %cst_31 : f32 to vector<11x11xf32>
    %117 = arith.maximumf %115, %116 : vector<11x11xf32>
    %cst_32 = arith.constant 4.000000e-01 : f32
    %118 = vector.broadcast %cst_32 : f32 to vector<11x11xf32>
    %119 = arith.minimumf %117, %118 : vector<11x11xf32>
    %c0_33 = arith.constant 0 : index
    %c0_34 = arith.constant 0 : index
    %c0_35 = arith.constant 0 : index
    %c0_36 = arith.constant 0 : index
    %120 = vector.load %arg4[%c0_33, %c0_34, %c0_35, %c0_36] : memref<1x9x11x11xf32, #tpu.memory_space<vmem>>, vector<1x1x11x11xf32>
    %121 = vector.shape_cast %120 : vector<1x1x11x11xf32> to vector<11x11xf32>
    %122 = vector.shape_cast %119 : vector<11x11xf32> to vector<1x1x11x11xf32>
    tpu.vector_store %arg4[%c0_33, %c0_34, %c0_35, %c0_36], %122 {strides = array<i32>} : memref<1x9x11x11xf32, #tpu.memory_space<vmem>>, vector<1x1x11x11xf32>,
    %c16 = arith.constant 16 : index
    %123 = memref.load %arg1[%c16] : memref<144xf32, #tpu.memory_space<smem>>
    %124 = vector.broadcast %123 : f32 to vector<11x22xf32>
    %125 = arith.mulf %124, %34 : vector<11x22xf32>
    %c18 = arith.constant 18 : index
    %126 = memref.load %arg1[%c18] : memref<144xf32, #tpu.memory_space<smem>>
    %127 = vector.broadcast %126 : f32 to vector<11x22xf32>
    %128 = arith.mulf %127, %35 : vector<11x22xf32>
    %129 = arith.addf %125, %128 : vector<11x22xf32>
    %c20 = arith.constant 20 : index
    %130 = memref.load %arg1[%c20] : memref<144xf32, #tpu.memory_space<smem>>
    %131 = vector.broadcast %130 : f32 to vector<11x22xf32>
    %132 = arith.mulf %131, %38 : vector<11x22xf32>
    %133 = arith.addf %129, %132 : vector<11x22xf32>
    %c22 = arith.constant 22 : index
    %134 = memref.load %arg1[%c22] : memref<144xf32, #tpu.memory_space<smem>>
    %135 = vector.broadcast %134 : f32 to vector<11x22xf32>
    %136 = arith.mulf %135, %39 : vector<11x22xf32>
    %137 = arith.addf %133, %136 : vector<11x22xf32>
    %c24 = arith.constant 24 : index
    %138 = memref.load %arg1[%c24] : memref<144xf32, #tpu.memory_space<smem>>
    %139 = vector.broadcast %138 : f32 to vector<11x22xf32>
    %140 = arith.mulf %139, %42 : vector<11x22xf32>
    %141 = arith.addf %137, %140 : vector<11x22xf32>
    %c26 = arith.constant 26 : index
    %142 = memref.load %arg1[%c26] : memref<144xf32, #tpu.memory_space<smem>>
    %143 = vector.broadcast %142 : f32 to vector<11x22xf32>
    %144 = arith.mulf %143, %43 : vector<11x22xf32>
    %145 = arith.addf %141, %144 : vector<11x22xf32>
    %c28 = arith.constant 28 : index
    %146 = memref.load %arg1[%c28] : memref<144xf32, #tpu.memory_space<smem>>
    %147 = vector.broadcast %146 : f32 to vector<11x22xf32>
    %148 = arith.mulf %147, %46 : vector<11x22xf32>
    %149 = arith.addf %145, %148 : vector<11x22xf32>
    %c30 = arith.constant 30 : index
    %150 = memref.load %arg1[%c30] : memref<144xf32, #tpu.memory_space<smem>>
    %151 = vector.broadcast %150 : f32 to vector<11x22xf32>
    %152 = arith.mulf %151, %47 : vector<11x22xf32>
    %153 = arith.addf %149, %152 : vector<11x22xf32>
    %cst_37 = arith.constant dense<0.000000e+00> : vector<11x11xf32>
    %154 = tpu.matmul %153, %24, %cst_37 {dimension_numbers = #tpu.dot_dimension_numbers<[1], [0], [0], [1], [0, 0, 1, 1], [], []>} : vector<11x22xf32>, vector<22x11xf32>, vector<11x11xf32> -> vector<11x11xf32>
    %c17 = arith.constant 17 : index
    %155 = memref.load %arg1[%c17] : memref<144xf32, #tpu.memory_space<smem>>
    %156 = vector.broadcast %155 : f32 to vector<11x22xf32>
    %157 = arith.mulf %156, %34 : vector<11x22xf32>
    %c19 = arith.constant 19 : index
    %158 = memref.load %arg1[%c19] : memref<144xf32, #tpu.memory_space<smem>>
    %159 = vector.broadcast %158 : f32 to vector<11x22xf32>
    %160 = arith.mulf %159, %35 : vector<11x22xf32>
    %161 = arith.addf %157, %160 : vector<11x22xf32>
    %c21 = arith.constant 21 : index
    %162 = memref.load %arg1[%c21] : memref<144xf32, #tpu.memory_space<smem>>
    %163 = vector.broadcast %162 : f32 to vector<11x22xf32>
    %164 = arith.mulf %163, %38 : vector<11x22xf32>
    %165 = arith.addf %161, %164 : vector<11x22xf32>
    %c23 = arith.constant 23 : index
    %166 = memref.load %arg1[%c23] : memref<144xf32, #tpu.memory_space<smem>>
    %167 = vector.broadcast %166 : f32 to vector<11x22xf32>
    %168 = arith.mulf %167, %39 : vector<11x22xf32>
    %169 = arith.addf %165, %168 : vector<11x22xf32>
    %c25 = arith.constant 25 : index
    %170 = memref.load %arg1[%c25] : memref<144xf32, #tpu.memory_space<smem>>
    %171 = vector.broadcast %170 : f32 to vector<11x22xf32>
    %172 = arith.mulf %171, %42 : vector<11x22xf32>
    %173 = arith.addf %169, %172 : vector<11x22xf32>
    %c27 = arith.constant 27 : index
    %174 = memref.load %arg1[%c27] : memref<144xf32, #tpu.memory_space<smem>>
    %175 = vector.broadcast %174 : f32 to vector<11x22xf32>
    %176 = arith.mulf %175, %43 : vector<11x22xf32>
    %177 = arith.addf %173, %176 : vector<11x22xf32>
    %c29 = arith.constant 29 : index
    %178 = memref.load %arg1[%c29] : memref<144xf32, #tpu.memory_space<smem>>
    %179 = vector.broadcast %178 : f32 to vector<11x22xf32>
    %180 = arith.mulf %179, %46 : vector<11x22xf32>
    %181 = arith.addf %177, %180 : vector<11x22xf32>
    %c31 = arith.constant 31 : index
    %182 = memref.load %arg1[%c31] : memref<144xf32, #tpu.memory_space<smem>>
    %183 = vector.broadcast %182 : f32 to vector<11x22xf32>
    %184 = arith.mulf %183, %47 : vector<11x22xf32>
    %185 = arith.addf %181, %184 : vector<11x22xf32>
    %cst_38 = arith.constant dense<0.000000e+00> : vector<11x11xf32>
    %186 = tpu.matmul %185, %31, %cst_38 {dimension_numbers = #tpu.dot_dimension_numbers<[1], [0], [0], [1], [0, 0, 1, 1], [], []>} : vector<11x22xf32>, vector<22x11xf32>, vector<11x11xf32> -> vector<11x11xf32>
    %187 = arith.addf %154, %186 : vector<11x11xf32>
    %c1_39 = arith.constant 1 : index
    %188 = memref.load %arg2[%c1_39] : memref<9xf32, #tpu.memory_space<smem>>
    %189 = vector.broadcast %188 : f32 to vector<11x11xf32>
    %190 = arith.addf %187, %189 : vector<11x11xf32>
    %cst_40 = arith.constant 1.000000e-01 : f32
    %191 = vector.broadcast %cst_40 : f32 to vector<11x11xf32>
    %192 = arith.maximumf %190, %191 : vector<11x11xf32>
    %cst_41 = arith.constant 4.000000e-01 : f32
    %193 = vector.broadcast %cst_41 : f32 to vector<11x11xf32>
    %194 = arith.minimumf %192, %193 : vector<11x11xf32>
    %c0_42 = arith.constant 0 : index
    %c1_43 = arith.constant 1 : index
    %c0_44 = arith.constant 0 : index
    %c0_45 = arith.constant 0 : index
    %195 = vector.load %arg4[%c0_42, %c1_43, %c0_44, %c0_45] : memref<1x9x11x11xf32, #tpu.memory_space<vmem>>, vector<1x1x11x11xf32>
    %196 = vector.shape_cast %195 : vector<1x1x11x11xf32> to vector<11x11xf32>
    %197 = vector.shape_cast %194 : vector<11x11xf32> to vector<1x1x11x11xf32>
    tpu.vector_store %arg4[%c0_42, %c1_43, %c0_44, %c0_45], %197 {strides = array<i32>} : memref<1x9x11x11xf32, #tpu.memory_space<vmem>>, vector<1x1x11x11xf32>,
    %c32 = arith.constant 32 : index
    %198 = memref.load %arg1[%c32] : memref<144xf32, #tpu.memory_space<smem>>
    %199 = vector.broadcast %198 : f32 to vector<11x22xf32>
    %200 = arith.mulf %199, %34 : vector<11x22xf32>
    %c34 = arith.constant 34 : index
    %201 = memref.load %arg1[%c34] : memref<144xf32, #tpu.memory_space<smem>>
    %202 = vector.broadcast %201 : f32 to vector<11x22xf32>
    %203 = arith.mulf %202, %35 : vector<11x22xf32>
    %204 = arith.addf %200, %203 : vector<11x22xf32>
    %c36 = arith.constant 36 : index
    %205 = memref.load %arg1[%c36] : memref<144xf32, #tpu.memory_space<smem>>
    %206 = vector.broadcast %205 : f32 to vector<11x22xf32>
    %207 = arith.mulf %206, %38 : vector<11x22xf32>
    %208 = arith.addf %204, %207 : vector<11x22xf32>
    %c38 = arith.constant 38 : index
    %209 = memref.load %arg1[%c38] : memref<144xf32, #tpu.memory_space<smem>>
    %210 = vector.broadcast %209 : f32 to vector<11x22xf32>
    %211 = arith.mulf %210, %39 : vector<11x22xf32>
    %212 = arith.addf %208, %211 : vector<11x22xf32>
    %c40 = arith.constant 40 : index
    %213 = memref.load %arg1[%c40] : memref<144xf32, #tpu.memory_space<smem>>
    %214 = vector.broadcast %213 : f32 to vector<11x22xf32>
    %215 = arith.mulf %214, %42 : vector<11x22xf32>
    %216 = arith.addf %212, %215 : vector<11x22xf32>
    %c42 = arith.constant 42 : index
    %217 = memref.load %arg1[%c42] : memref<144xf32, #tpu.memory_space<smem>>
    %218 = vector.broadcast %217 : f32 to vector<11x22xf32>
    %219 = arith.mulf %218, %43 : vector<11x22xf32>
    %220 = arith.addf %216, %219 : vector<11x22xf32>
    %c44 = arith.constant 44 : index
    %221 = memref.load %arg1[%c44] : memref<144xf32, #tpu.memory_space<smem>>
    %222 = vector.broadcast %221 : f32 to vector<11x22xf32>
    %223 = arith.mulf %222, %46 : vector<11x22xf32>
    %224 = arith.addf %220, %223 : vector<11x22xf32>
    %c46 = arith.constant 46 : index
    %225 = memref.load %arg1[%c46] : memref<144xf32, #tpu.memory_space<smem>>
    %226 = vector.broadcast %225 : f32 to vector<11x22xf32>
    %227 = arith.mulf %226, %47 : vector<11x22xf32>
    %228 = arith.addf %224, %227 : vector<11x22xf32>
    %cst_46 = arith.constant dense<0.000000e+00> : vector<11x11xf32>
    %229 = tpu.matmul %228, %24, %cst_46 {dimension_numbers = #tpu.dot_dimension_numbers<[1], [0], [0], [1], [0, 0, 1, 1], [], []>} : vector<11x22xf32>, vector<22x11xf32>, vector<11x11xf32> -> vector<11x11xf32>
    %c33 = arith.constant 33 : index
    %230 = memref.load %arg1[%c33] : memref<144xf32, #tpu.memory_space<smem>>
    %231 = vector.broadcast %230 : f32 to vector<11x22xf32>
    %232 = arith.mulf %231, %34 : vector<11x22xf32>
    %c35 = arith.constant 35 : index
    %233 = memref.load %arg1[%c35] : memref<144xf32, #tpu.memory_space<smem>>
    %234 = vector.broadcast %233 : f32 to vector<11x22xf32>
    %235 = arith.mulf %234, %35 : vector<11x22xf32>
    %236 = arith.addf %232, %235 : vector<11x22xf32>
    %c37 = arith.constant 37 : index
    %237 = memref.load %arg1[%c37] : memref<144xf32, #tpu.memory_space<smem>>
    %238 = vector.broadcast %237 : f32 to vector<11x22xf32>
    %239 = arith.mulf %238, %38 : vector<11x22xf32>
    %240 = arith.addf %236, %239 : vector<11x22xf32>
    %c39 = arith.constant 39 : index
    %241 = memref.load %arg1[%c39] : memref<144xf32, #tpu.memory_space<smem>>
    %242 = vector.broadcast %241 : f32 to vector<11x22xf32>
    %243 = arith.mulf %242, %39 : vector<11x22xf32>
    %244 = arith.addf %240, %243 : vector<11x22xf32>
    %c41 = arith.constant 41 : index
    %245 = memref.load %arg1[%c41] : memref<144xf32, #tpu.memory_space<smem>>
    %246 = vector.broadcast %245 : f32 to vector<11x22xf32>
    %247 = arith.mulf %246, %42 : vector<11x22xf32>
    %248 = arith.addf %244, %247 : vector<11x22xf32>
    %c43 = arith.constant 43 : index
    %249 = memref.load %arg1[%c43] : memref<144xf32, #tpu.memory_space<smem>>
    %250 = vector.broadcast %249 : f32 to vector<11x22xf32>
    %251 = arith.mulf %250, %43 : vector<11x22xf32>
    %252 = arith.addf %248, %251 : vector<11x22xf32>
    %c45 = arith.constant 45 : index
    %253 = memref.load %arg1[%c45] : memref<144xf32, #tpu.memory_space<smem>>
    %254 = vector.broadcast %253 : f32 to vector<11x22xf32>
    %255 = arith.mulf %254, %46 : vector<11x22xf32>
    %256 = arith.addf %252, %255 : vector<11x22xf32>
    %c47 = arith.constant 47 : index
    %257 = memref.load %arg1[%c47] : memref<144xf32, #tpu.memory_space<smem>>
    %258 = vector.broadcast %257 : f32 to vector<11x22xf32>
    %259 = arith.mulf %258, %47 : vector<11x22xf32>
    %260 = arith.addf %256, %259 : vector<11x22xf32>
    %cst_47 = arith.constant dense<0.000000e+00> : vector<11x11xf32>
    %261 = tpu.matmul %260, %31, %cst_47 {dimension_numbers = #tpu.dot_dimension_numbers<[1], [0], [0], [1], [0, 0, 1, 1], [], []>} : vector<11x22xf32>, vector<22x11xf32>, vector<11x11xf32> -> vector<11x11xf32>
    %262 = arith.addf %229, %261 : vector<11x11xf32>
    %c2_48 = arith.constant 2 : index
    %263 = memref.load %arg2[%c2_48] : memref<9xf32, #tpu.memory_space<smem>>
    %264 = vector.broadcast %263 : f32 to vector<11x11xf32>
    %265 = arith.addf %262, %264 : vector<11x11xf32>
    %cst_49 = arith.constant 1.000000e-01 : f32
    %266 = vector.broadcast %cst_49 : f32 to vector<11x11xf32>
    %267 = arith.maximumf %265, %266 : vector<11x11xf32>
    %cst_50 = arith.constant 4.000000e-01 : f32
    %268 = vector.broadcast %cst_50 : f32 to vector<11x11xf32>
    %269 = arith.minimumf %267, %268 : vector<11x11xf32>
    %c0_51 = arith.constant 0 : index
    %c2_52 = arith.constant 2 : index
    %c0_53 = arith.constant 0 : index
    %c0_54 = arith.constant 0 : index
    %270 = vector.load %arg4[%c0_51, %c2_52, %c0_53, %c0_54] : memref<1x9x11x11xf32, #tpu.memory_space<vmem>>, vector<1x1x11x11xf32>
    %271 = vector.shape_cast %270 : vector<1x1x11x11xf32> to vector<11x11xf32>
    %272 = vector.shape_cast %269 : vector<11x11xf32> to vector<1x1x11x11xf32>
    tpu.vector_store %arg4[%c0_51, %c2_52, %c0_53, %c0_54], %272 {strides = array<i32>} : memref<1x9x11x11xf32, #tpu.memory_space<vmem>>, vector<1x1x11x11xf32>,
    %c48 = arith.constant 48 : index
    %273 = memref.load %arg1[%c48] : memref<144xf32, #tpu.memory_space<smem>>
    %274 = vector.broadcast %273 : f32 to vector<11x22xf32>
    %275 = arith.mulf %274, %34 : vector<11x22xf32>
    %c50 = arith.constant 50 : index
    %276 = memref.load %arg1[%c50] : memref<144xf32, #tpu.memory_space<smem>>
    %277 = vector.broadcast %276 : f32 to vector<11x22xf32>
    %278 = arith.mulf %277, %35 : vector<11x22xf32>
    %279 = arith.addf %275, %278 : vector<11x22xf32>
    %c52 = arith.constant 52 : index
    %280 = memref.load %arg1[%c52] : memref<144xf32, #tpu.memory_space<smem>>
    %281 = vector.broadcast %280 : f32 to vector<11x22xf32>
    %282 = arith.mulf %281, %38 : vector<11x22xf32>
    %283 = arith.addf %279, %282 : vector<11x22xf32>
    %c54 = arith.constant 54 : index
    %284 = memref.load %arg1[%c54] : memref<144xf32, #tpu.memory_space<smem>>
    %285 = vector.broadcast %284 : f32 to vector<11x22xf32>
    %286 = arith.mulf %285, %39 : vector<11x22xf32>
    %287 = arith.addf %283, %286 : vector<11x22xf32>
    %c56 = arith.constant 56 : index
    %288 = memref.load %arg1[%c56] : memref<144xf32, #tpu.memory_space<smem>>
    %289 = vector.broadcast %288 : f32 to vector<11x22xf32>
    %290 = arith.mulf %289, %42 : vector<11x22xf32>
    %291 = arith.addf %287, %290 : vector<11x22xf32>
    %c58 = arith.constant 58 : index
    %292 = memref.load %arg1[%c58] : memref<144xf32, #tpu.memory_space<smem>>
    %293 = vector.broadcast %292 : f32 to vector<11x22xf32>
    %294 = arith.mulf %293, %43 : vector<11x22xf32>
    %295 = arith.addf %291, %294 : vector<11x22xf32>
    %c60 = arith.constant 60 : index
    %296 = memref.load %arg1[%c60] : memref<144xf32, #tpu.memory_space<smem>>
    %297 = vector.broadcast %296 : f32 to vector<11x22xf32>
    %298 = arith.mulf %297, %46 : vector<11x22xf32>
    %299 = arith.addf %295, %298 : vector<11x22xf32>
    %c62 = arith.constant 62 : index
    %300 = memref.load %arg1[%c62] : memref<144xf32, #tpu.memory_space<smem>>
    %301 = vector.broadcast %300 : f32 to vector<11x22xf32>
    %302 = arith.mulf %301, %47 : vector<11x22xf32>
    %303 = arith.addf %299, %302 : vector<11x22xf32>
    %cst_55 = arith.constant dense<0.000000e+00> : vector<11x11xf32>
    %304 = tpu.matmul %303, %24, %cst_55 {dimension_numbers = #tpu.dot_dimension_numbers<[1], [0], [0], [1], [0, 0, 1, 1], [], []>} : vector<11x22xf32>, vector<22x11xf32>, vector<11x11xf32> -> vector<11x11xf32>
    %c49 = arith.constant 49 : index
    %305 = memref.load %arg1[%c49] : memref<144xf32, #tpu.memory_space<smem>>
    %306 = vector.broadcast %305 : f32 to vector<11x22xf32>
    %307 = arith.mulf %306, %34 : vector<11x22xf32>
    %c51 = arith.constant 51 : index
    %308 = memref.load %arg1[%c51] : memref<144xf32, #tpu.memory_space<smem>>
    %309 = vector.broadcast %308 : f32 to vector<11x22xf32>
    %310 = arith.mulf %309, %35 : vector<11x22xf32>
    %311 = arith.addf %307, %310 : vector<11x22xf32>
    %c53 = arith.constant 53 : index
    %312 = memref.load %arg1[%c53] : memref<144xf32, #tpu.memory_space<smem>>
    %313 = vector.broadcast %312 : f32 to vector<11x22xf32>
    %314 = arith.mulf %313, %38 : vector<11x22xf32>
    %315 = arith.addf %311, %314 : vector<11x22xf32>
    %c55 = arith.constant 55 : index
    %316 = memref.load %arg1[%c55] : memref<144xf32, #tpu.memory_space<smem>>
    %317 = vector.broadcast %316 : f32 to vector<11x22xf32>
    %318 = arith.mulf %317, %39 : vector<11x22xf32>
    %319 = arith.addf %315, %318 : vector<11x22xf32>
    %c57 = arith.constant 57 : index
    %320 = memref.load %arg1[%c57] : memref<144xf32, #tpu.memory_space<smem>>
    %321 = vector.broadcast %320 : f32 to vector<11x22xf32>
    %322 = arith.mulf %321, %42 : vector<11x22xf32>
    %323 = arith.addf %319, %322 : vector<11x22xf32>
    %c59 = arith.constant 59 : index
    %324 = memref.load %arg1[%c59] : memref<144xf32, #tpu.memory_space<smem>>
    %325 = vector.broadcast %324 : f32 to vector<11x22xf32>
    %326 = arith.mulf %325, %43 : vector<11x22xf32>
    %327 = arith.addf %323, %326 : vector<11x22xf32>
    %c61 = arith.constant 61 : index
    %328 = memref.load %arg1[%c61] : memref<144xf32, #tpu.memory_space<smem>>
    %329 = vector.broadcast %328 : f32 to vector<11x22xf32>
    %330 = arith.mulf %329, %46 : vector<11x22xf32>
    %331 = arith.addf %327, %330 : vector<11x22xf32>
    %c63 = arith.constant 63 : index
    %332 = memref.load %arg1[%c63] : memref<144xf32, #tpu.memory_space<smem>>
    %333 = vector.broadcast %332 : f32 to vector<11x22xf32>
    %334 = arith.mulf %333, %47 : vector<11x22xf32>
    %335 = arith.addf %331, %334 : vector<11x22xf32>
    %cst_56 = arith.constant dense<0.000000e+00> : vector<11x11xf32>
    %336 = tpu.matmul %335, %31, %cst_56 {dimension_numbers = #tpu.dot_dimension_numbers<[1], [0], [0], [1], [0, 0, 1, 1], [], []>} : vector<11x22xf32>, vector<22x11xf32>, vector<11x11xf32> -> vector<11x11xf32>
    %337 = arith.addf %304, %336 : vector<11x11xf32>
    %c3_57 = arith.constant 3 : index
    %338 = memref.load %arg2[%c3_57] : memref<9xf32, #tpu.memory_space<smem>>
    %339 = vector.broadcast %338 : f32 to vector<11x11xf32>
    %340 = arith.addf %337, %339 : vector<11x11xf32>
    %cst_58 = arith.constant 1.000000e-01 : f32
    %341 = vector.broadcast %cst_58 : f32 to vector<11x11xf32>
    %342 = arith.maximumf %340, %341 : vector<11x11xf32>
    %cst_59 = arith.constant 4.000000e-01 : f32
    %343 = vector.broadcast %cst_59 : f32 to vector<11x11xf32>
    %344 = arith.minimumf %342, %343 : vector<11x11xf32>
    %c0_60 = arith.constant 0 : index
    %c3_61 = arith.constant 3 : index
    %c0_62 = arith.constant 0 : index
    %c0_63 = arith.constant 0 : index
    %345 = vector.load %arg4[%c0_60, %c3_61, %c0_62, %c0_63] : memref<1x9x11x11xf32, #tpu.memory_space<vmem>>, vector<1x1x11x11xf32>
    %346 = vector.shape_cast %345 : vector<1x1x11x11xf32> to vector<11x11xf32>
    %347 = vector.shape_cast %344 : vector<11x11xf32> to vector<1x1x11x11xf32>
    tpu.vector_store %arg4[%c0_60, %c3_61, %c0_62, %c0_63], %347 {strides = array<i32>} : memref<1x9x11x11xf32, #tpu.memory_space<vmem>>, vector<1x1x11x11xf32>,
    %c64 = arith.constant 64 : index
    %348 = memref.load %arg1[%c64] : memref<144xf32, #tpu.memory_space<smem>>
    %349 = vector.broadcast %348 : f32 to vector<11x22xf32>
    %350 = arith.mulf %349, %34 : vector<11x22xf32>
    %c66 = arith.constant 66 : index
    %351 = memref.load %arg1[%c66] : memref<144xf32, #tpu.memory_space<smem>>
    %352 = vector.broadcast %351 : f32 to vector<11x22xf32>
    %353 = arith.mulf %352, %35 : vector<11x22xf32>
    %354 = arith.addf %350, %353 : vector<11x22xf32>
    %c68 = arith.constant 68 : index
    %355 = memref.load %arg1[%c68] : memref<144xf32, #tpu.memory_space<smem>>
    %356 = vector.broadcast %355 : f32 to vector<11x22xf32>
    %357 = arith.mulf %356, %38 : vector<11x22xf32>
    %358 = arith.addf %354, %357 : vector<11x22xf32>
    %c70 = arith.constant 70 : index
    %359 = memref.load %arg1[%c70] : memref<144xf32, #tpu.memory_space<smem>>
    %360 = vector.broadcast %359 : f32 to vector<11x22xf32>
    %361 = arith.mulf %360, %39 : vector<11x22xf32>
    %362 = arith.addf %358, %361 : vector<11x22xf32>
    %c72 = arith.constant 72 : index
    %363 = memref.load %arg1[%c72] : memref<144xf32, #tpu.memory_space<smem>>
    %364 = vector.broadcast %363 : f32 to vector<11x22xf32>
    %365 = arith.mulf %364, %42 : vector<11x22xf32>
    %366 = arith.addf %362, %365 : vector<11x22xf32>
    %c74 = arith.constant 74 : index
    %367 = memref.load %arg1[%c74] : memref<144xf32, #tpu.memory_space<smem>>
    %368 = vector.broadcast %367 : f32 to vector<11x22xf32>
    %369 = arith.mulf %368, %43 : vector<11x22xf32>
    %370 = arith.addf %366, %369 : vector<11x22xf32>
    %c76 = arith.constant 76 : index
    %371 = memref.load %arg1[%c76] : memref<144xf32, #tpu.memory_space<smem>>
    %372 = vector.broadcast %371 : f32 to vector<11x22xf32>
    %373 = arith.mulf %372, %46 : vector<11x22xf32>
    %374 = arith.addf %370, %373 : vector<11x22xf32>
    %c78 = arith.constant 78 : index
    %375 = memref.load %arg1[%c78] : memref<144xf32, #tpu.memory_space<smem>>
    %376 = vector.broadcast %375 : f32 to vector<11x22xf32>
    %377 = arith.mulf %376, %47 : vector<11x22xf32>
    %378 = arith.addf %374, %377 : vector<11x22xf32>
    %cst_64 = arith.constant dense<0.000000e+00> : vector<11x11xf32>
    %379 = tpu.matmul %378, %24, %cst_64 {dimension_numbers = #tpu.dot_dimension_numbers<[1], [0], [0], [1], [0, 0, 1, 1], [], []>} : vector<11x22xf32>, vector<22x11xf32>, vector<11x11xf32> -> vector<11x11xf32>
    %c65 = arith.constant 65 : index
    %380 = memref.load %arg1[%c65] : memref<144xf32, #tpu.memory_space<smem>>
    %381 = vector.broadcast %380 : f32 to vector<11x22xf32>
    %382 = arith.mulf %381, %34 : vector<11x22xf32>
    %c67 = arith.constant 67 : index
    %383 = memref.load %arg1[%c67] : memref<144xf32, #tpu.memory_space<smem>>
    %384 = vector.broadcast %383 : f32 to vector<11x22xf32>
    %385 = arith.mulf %384, %35 : vector<11x22xf32>
    %386 = arith.addf %382, %385 : vector<11x22xf32>
    %c69 = arith.constant 69 : index
    %387 = memref.load %arg1[%c69] : memref<144xf32, #tpu.memory_space<smem>>
    %388 = vector.broadcast %387 : f32 to vector<11x22xf32>
    %389 = arith.mulf %388, %38 : vector<11x22xf32>
    %390 = arith.addf %386, %389 : vector<11x22xf32>
    %c71 = arith.constant 71 : index
    %391 = memref.load %arg1[%c71] : memref<144xf32, #tpu.memory_space<smem>>
    %392 = vector.broadcast %391 : f32 to vector<11x22xf32>
    %393 = arith.mulf %392, %39 : vector<11x22xf32>
    %394 = arith.addf %390, %393 : vector<11x22xf32>
    %c73 = arith.constant 73 : index
    %395 = memref.load %arg1[%c73] : memref<144xf32, #tpu.memory_space<smem>>
    %396 = vector.broadcast %395 : f32 to vector<11x22xf32>
    %397 = arith.mulf %396, %42 : vector<11x22xf32>
    %398 = arith.addf %394, %397 : vector<11x22xf32>
    %c75 = arith.constant 75 : index
    %399 = memref.load %arg1[%c75] : memref<144xf32, #tpu.memory_space<smem>>
    %400 = vector.broadcast %399 : f32 to vector<11x22xf32>
    %401 = arith.mulf %400, %43 : vector<11x22xf32>
    %402 = arith.addf %398, %401 : vector<11x22xf32>
    %c77 = arith.constant 77 : index
    %403 = memref.load %arg1[%c77] : memref<144xf32, #tpu.memory_space<smem>>
    %404 = vector.broadcast %403 : f32 to vector<11x22xf32>
    %405 = arith.mulf %404, %46 : vector<11x22xf32>
    %406 = arith.addf %402, %405 : vector<11x22xf32>
    %c79 = arith.constant 79 : index
    %407 = memref.load %arg1[%c79] : memref<144xf32, #tpu.memory_space<smem>>
    %408 = vector.broadcast %407 : f32 to vector<11x22xf32>
    %409 = arith.mulf %408, %47 : vector<11x22xf32>
    %410 = arith.addf %406, %409 : vector<11x22xf32>
    %cst_65 = arith.constant dense<0.000000e+00> : vector<11x11xf32>
    %411 = tpu.matmul %410, %31, %cst_65 {dimension_numbers = #tpu.dot_dimension_numbers<[1], [0], [0], [1], [0, 0, 1, 1], [], []>} : vector<11x22xf32>, vector<22x11xf32>, vector<11x11xf32> -> vector<11x11xf32>
    %412 = arith.addf %379, %411 : vector<11x11xf32>
    %c4_66 = arith.constant 4 : index
    %413 = memref.load %arg2[%c4_66] : memref<9xf32, #tpu.memory_space<smem>>
    %414 = vector.broadcast %413 : f32 to vector<11x11xf32>
    %415 = arith.addf %412, %414 : vector<11x11xf32>
    %cst_67 = arith.constant 1.000000e-01 : f32
    %416 = vector.broadcast %cst_67 : f32 to vector<11x11xf32>
    %417 = arith.maximumf %415, %416 : vector<11x11xf32>
    %cst_68 = arith.constant 4.000000e-01 : f32
    %418 = vector.broadcast %cst_68 : f32 to vector<11x11xf32>
    %419 = arith.minimumf %417, %418 : vector<11x11xf32>
    %c0_69 = arith.constant 0 : index
    %c4_70 = arith.constant 4 : index
    %c0_71 = arith.constant 0 : index
    %c0_72 = arith.constant 0 : index
    %420 = vector.load %arg4[%c0_69, %c4_70, %c0_71, %c0_72] : memref<1x9x11x11xf32, #tpu.memory_space<vmem>>, vector<1x1x11x11xf32>
    %421 = vector.shape_cast %420 : vector<1x1x11x11xf32> to vector<11x11xf32>
    %422 = vector.shape_cast %419 : vector<11x11xf32> to vector<1x1x11x11xf32>
    tpu.vector_store %arg4[%c0_69, %c4_70, %c0_71, %c0_72], %422 {strides = array<i32>} : memref<1x9x11x11xf32, #tpu.memory_space<vmem>>, vector<1x1x11x11xf32>,
    %c80 = arith.constant 80 : index
    %423 = memref.load %arg1[%c80] : memref<144xf32, #tpu.memory_space<smem>>
    %424 = vector.broadcast %423 : f32 to vector<11x22xf32>
    %425 = arith.mulf %424, %34 : vector<11x22xf32>
    %c82 = arith.constant 82 : index
    %426 = memref.load %arg1[%c82] : memref<144xf32, #tpu.memory_space<smem>>
    %427 = vector.broadcast %426 : f32 to vector<11x22xf32>
    %428 = arith.mulf %427, %35 : vector<11x22xf32>
    %429 = arith.addf %425, %428 : vector<11x22xf32>
    %c84 = arith.constant 84 : index
    %430 = memref.load %arg1[%c84] : memref<144xf32, #tpu.memory_space<smem>>
    %431 = vector.broadcast %430 : f32 to vector<11x22xf32>
    %432 = arith.mulf %431, %38 : vector<11x22xf32>
    %433 = arith.addf %429, %432 : vector<11x22xf32>
    %c86 = arith.constant 86 : index
    %434 = memref.load %arg1[%c86] : memref<144xf32, #tpu.memory_space<smem>>
    %435 = vector.broadcast %434 : f32 to vector<11x22xf32>
    %436 = arith.mulf %435, %39 : vector<11x22xf32>
    %437 = arith.addf %433, %436 : vector<11x22xf32>
    %c88 = arith.constant 88 : index
    %438 = memref.load %arg1[%c88] : memref<144xf32, #tpu.memory_space<smem>>
    %439 = vector.broadcast %438 : f32 to vector<11x22xf32>
    %440 = arith.mulf %439, %42 : vector<11x22xf32>
    %441 = arith.addf %437, %440 : vector<11x22xf32>
    %c90 = arith.constant 90 : index
    %442 = memref.load %arg1[%c90] : memref<144xf32, #tpu.memory_space<smem>>
    %443 = vector.broadcast %442 : f32 to vector<11x22xf32>
    %444 = arith.mulf %443, %43 : vector<11x22xf32>
    %445 = arith.addf %441, %444 : vector<11x22xf32>
    %c92 = arith.constant 92 : index
    %446 = memref.load %arg1[%c92] : memref<144xf32, #tpu.memory_space<smem>>
    %447 = vector.broadcast %446 : f32 to vector<11x22xf32>
    %448 = arith.mulf %447, %46 : vector<11x22xf32>
    %449 = arith.addf %445, %448 : vector<11x22xf32>
    %c94 = arith.constant 94 : index
    %450 = memref.load %arg1[%c94] : memref<144xf32, #tpu.memory_space<smem>>
    %451 = vector.broadcast %450 : f32 to vector<11x22xf32>
    %452 = arith.mulf %451, %47 : vector<11x22xf32>
    %453 = arith.addf %449, %452 : vector<11x22xf32>
    %cst_73 = arith.constant dense<0.000000e+00> : vector<11x11xf32>
    %454 = tpu.matmul %453, %24, %cst_73 {dimension_numbers = #tpu.dot_dimension_numbers<[1], [0], [0], [1], [0, 0, 1, 1], [], []>} : vector<11x22xf32>, vector<22x11xf32>, vector<11x11xf32> -> vector<11x11xf32>
    %c81 = arith.constant 81 : index
    %455 = memref.load %arg1[%c81] : memref<144xf32, #tpu.memory_space<smem>>
    %456 = vector.broadcast %455 : f32 to vector<11x22xf32>
    %457 = arith.mulf %456, %34 : vector<11x22xf32>
    %c83 = arith.constant 83 : index
    %458 = memref.load %arg1[%c83] : memref<144xf32, #tpu.memory_space<smem>>
    %459 = vector.broadcast %458 : f32 to vector<11x22xf32>
    %460 = arith.mulf %459, %35 : vector<11x22xf32>
    %461 = arith.addf %457, %460 : vector<11x22xf32>
    %c85 = arith.constant 85 : index
    %462 = memref.load %arg1[%c85] : memref<144xf32, #tpu.memory_space<smem>>
    %463 = vector.broadcast %462 : f32 to vector<11x22xf32>
    %464 = arith.mulf %463, %38 : vector<11x22xf32>
    %465 = arith.addf %461, %464 : vector<11x22xf32>
    %c87 = arith.constant 87 : index
    %466 = memref.load %arg1[%c87] : memref<144xf32, #tpu.memory_space<smem>>
    %467 = vector.broadcast %466 : f32 to vector<11x22xf32>
    %468 = arith.mulf %467, %39 : vector<11x22xf32>
    %469 = arith.addf %465, %468 : vector<11x22xf32>
    %c89 = arith.constant 89 : index
    %470 = memref.load %arg1[%c89] : memref<144xf32, #tpu.memory_space<smem>>
    %471 = vector.broadcast %470 : f32 to vector<11x22xf32>
    %472 = arith.mulf %471, %42 : vector<11x22xf32>
    %473 = arith.addf %469, %472 : vector<11x22xf32>
    %c91 = arith.constant 91 : index
    %474 = memref.load %arg1[%c91] : memref<144xf32, #tpu.memory_space<smem>>
    %475 = vector.broadcast %474 : f32 to vector<11x22xf32>
    %476 = arith.mulf %475, %43 : vector<11x22xf32>
    %477 = arith.addf %473, %476 : vector<11x22xf32>
    %c93 = arith.constant 93 : index
    %478 = memref.load %arg1[%c93] : memref<144xf32, #tpu.memory_space<smem>>
    %479 = vector.broadcast %478 : f32 to vector<11x22xf32>
    %480 = arith.mulf %479, %46 : vector<11x22xf32>
    %481 = arith.addf %477, %480 : vector<11x22xf32>
    %c95 = arith.constant 95 : index
    %482 = memref.load %arg1[%c95] : memref<144xf32, #tpu.memory_space<smem>>
    %483 = vector.broadcast %482 : f32 to vector<11x22xf32>
    %484 = arith.mulf %483, %47 : vector<11x22xf32>
    %485 = arith.addf %481, %484 : vector<11x22xf32>
    %cst_74 = arith.constant dense<0.000000e+00> : vector<11x11xf32>
    %486 = tpu.matmul %485, %31, %cst_74 {dimension_numbers = #tpu.dot_dimension_numbers<[1], [0], [0], [1], [0, 0, 1, 1], [], []>} : vector<11x22xf32>, vector<22x11xf32>, vector<11x11xf32> -> vector<11x11xf32>
    %487 = arith.addf %454, %486 : vector<11x11xf32>
    %c5_75 = arith.constant 5 : index
    %488 = memref.load %arg2[%c5_75] : memref<9xf32, #tpu.memory_space<smem>>
    %489 = vector.broadcast %488 : f32 to vector<11x11xf32>
    %490 = arith.addf %487, %489 : vector<11x11xf32>
    %cst_76 = arith.constant 1.000000e-01 : f32
    %491 = vector.broadcast %cst_76 : f32 to vector<11x11xf32>
    %492 = arith.maximumf %490, %491 : vector<11x11xf32>
    %cst_77 = arith.constant 4.000000e-01 : f32
    %493 = vector.broadcast %cst_77 : f32 to vector<11x11xf32>
    %494 = arith.minimumf %492, %493 : vector<11x11xf32>
    %c0_78 = arith.constant 0 : index
    %c5_79 = arith.constant 5 : index
    %c0_80 = arith.constant 0 : index
    %c0_81 = arith.constant 0 : index
    %495 = vector.load %arg4[%c0_78, %c5_79, %c0_80, %c0_81] : memref<1x9x11x11xf32, #tpu.memory_space<vmem>>, vector<1x1x11x11xf32>
    %496 = vector.shape_cast %495 : vector<1x1x11x11xf32> to vector<11x11xf32>
    %497 = vector.shape_cast %494 : vector<11x11xf32> to vector<1x1x11x11xf32>
    tpu.vector_store %arg4[%c0_78, %c5_79, %c0_80, %c0_81], %497 {strides = array<i32>} : memref<1x9x11x11xf32, #tpu.memory_space<vmem>>, vector<1x1x11x11xf32>,
    %c96 = arith.constant 96 : index
    %498 = memref.load %arg1[%c96] : memref<144xf32, #tpu.memory_space<smem>>
    %499 = vector.broadcast %498 : f32 to vector<11x22xf32>
    %500 = arith.mulf %499, %34 : vector<11x22xf32>
    %c98 = arith.constant 98 : index
    %501 = memref.load %arg1[%c98] : memref<144xf32, #tpu.memory_space<smem>>
    %502 = vector.broadcast %501 : f32 to vector<11x22xf32>
    %503 = arith.mulf %502, %35 : vector<11x22xf32>
    %504 = arith.addf %500, %503 : vector<11x22xf32>
    %c100 = arith.constant 100 : index
    %505 = memref.load %arg1[%c100] : memref<144xf32, #tpu.memory_space<smem>>
    %506 = vector.broadcast %505 : f32 to vector<11x22xf32>
    %507 = arith.mulf %506, %38 : vector<11x22xf32>
    %508 = arith.addf %504, %507 : vector<11x22xf32>
    %c102 = arith.constant 102 : index
    %509 = memref.load %arg1[%c102] : memref<144xf32, #tpu.memory_space<smem>>
    %510 = vector.broadcast %509 : f32 to vector<11x22xf32>
    %511 = arith.mulf %510, %39 : vector<11x22xf32>
    %512 = arith.addf %508, %511 : vector<11x22xf32>
    %c104 = arith.constant 104 : index
    %513 = memref.load %arg1[%c104] : memref<144xf32, #tpu.memory_space<smem>>
    %514 = vector.broadcast %513 : f32 to vector<11x22xf32>
    %515 = arith.mulf %514, %42 : vector<11x22xf32>
    %516 = arith.addf %512, %515 : vector<11x22xf32>
    %c106 = arith.constant 106 : index
    %517 = memref.load %arg1[%c106] : memref<144xf32, #tpu.memory_space<smem>>
    %518 = vector.broadcast %517 : f32 to vector<11x22xf32>
    %519 = arith.mulf %518, %43 : vector<11x22xf32>
    %520 = arith.addf %516, %519 : vector<11x22xf32>
    %c108 = arith.constant 108 : index
    %521 = memref.load %arg1[%c108] : memref<144xf32, #tpu.memory_space<smem>>
    %522 = vector.broadcast %521 : f32 to vector<11x22xf32>
    %523 = arith.mulf %522, %46 : vector<11x22xf32>
    %524 = arith.addf %520, %523 : vector<11x22xf32>
    %c110 = arith.constant 110 : index
    %525 = memref.load %arg1[%c110] : memref<144xf32, #tpu.memory_space<smem>>
    %526 = vector.broadcast %525 : f32 to vector<11x22xf32>
    %527 = arith.mulf %526, %47 : vector<11x22xf32>
    %528 = arith.addf %524, %527 : vector<11x22xf32>
    %cst_82 = arith.constant dense<0.000000e+00> : vector<11x11xf32>
    %529 = tpu.matmul %528, %24, %cst_82 {dimension_numbers = #tpu.dot_dimension_numbers<[1], [0], [0], [1], [0, 0, 1, 1], [], []>} : vector<11x22xf32>, vector<22x11xf32>, vector<11x11xf32> -> vector<11x11xf32>
    %c97 = arith.constant 97 : index
    %530 = memref.load %arg1[%c97] : memref<144xf32, #tpu.memory_space<smem>>
    %531 = vector.broadcast %530 : f32 to vector<11x22xf32>
    %532 = arith.mulf %531, %34 : vector<11x22xf32>
    %c99 = arith.constant 99 : index
    %533 = memref.load %arg1[%c99] : memref<144xf32, #tpu.memory_space<smem>>
    %534 = vector.broadcast %533 : f32 to vector<11x22xf32>
    %535 = arith.mulf %534, %35 : vector<11x22xf32>
    %536 = arith.addf %532, %535 : vector<11x22xf32>
    %c101 = arith.constant 101 : index
    %537 = memref.load %arg1[%c101] : memref<144xf32, #tpu.memory_space<smem>>
    %538 = vector.broadcast %537 : f32 to vector<11x22xf32>
    %539 = arith.mulf %538, %38 : vector<11x22xf32>
    %540 = arith.addf %536, %539 : vector<11x22xf32>
    %c103 = arith.constant 103 : index
    %541 = memref.load %arg1[%c103] : memref<144xf32, #tpu.memory_space<smem>>
    %542 = vector.broadcast %541 : f32 to vector<11x22xf32>
    %543 = arith.mulf %542, %39 : vector<11x22xf32>
    %544 = arith.addf %540, %543 : vector<11x22xf32>
    %c105 = arith.constant 105 : index
    %545 = memref.load %arg1[%c105] : memref<144xf32, #tpu.memory_space<smem>>
    %546 = vector.broadcast %545 : f32 to vector<11x22xf32>
    %547 = arith.mulf %546, %42 : vector<11x22xf32>
    %548 = arith.addf %544, %547 : vector<11x22xf32>
    %c107 = arith.constant 107 : index
    %549 = memref.load %arg1[%c107] : memref<144xf32, #tpu.memory_space<smem>>
    %550 = vector.broadcast %549 : f32 to vector<11x22xf32>
    %551 = arith.mulf %550, %43 : vector<11x22xf32>
    %552 = arith.addf %548, %551 : vector<11x22xf32>
    %c109 = arith.constant 109 : index
    %553 = memref.load %arg1[%c109] : memref<144xf32, #tpu.memory_space<smem>>
    %554 = vector.broadcast %553 : f32 to vector<11x22xf32>
    %555 = arith.mulf %554, %46 : vector<11x22xf32>
    %556 = arith.addf %552, %555 : vector<11x22xf32>
    %c111 = arith.constant 111 : index
    %557 = memref.load %arg1[%c111] : memref<144xf32, #tpu.memory_space<smem>>
    %558 = vector.broadcast %557 : f32 to vector<11x22xf32>
    %559 = arith.mulf %558, %47 : vector<11x22xf32>
    %560 = arith.addf %556, %559 : vector<11x22xf32>
    %cst_83 = arith.constant dense<0.000000e+00> : vector<11x11xf32>
    %561 = tpu.matmul %560, %31, %cst_83 {dimension_numbers = #tpu.dot_dimension_numbers<[1], [0], [0], [1], [0, 0, 1, 1], [], []>} : vector<11x22xf32>, vector<22x11xf32>, vector<11x11xf32> -> vector<11x11xf32>
    %562 = arith.addf %529, %561 : vector<11x11xf32>
    %c6_84 = arith.constant 6 : index
    %563 = memref.load %arg2[%c6_84] : memref<9xf32, #tpu.memory_space<smem>>
    %564 = vector.broadcast %563 : f32 to vector<11x11xf32>
    %565 = arith.addf %562, %564 : vector<11x11xf32>
    %cst_85 = arith.constant 1.000000e-01 : f32
    %566 = vector.broadcast %cst_85 : f32 to vector<11x11xf32>
    %567 = arith.maximumf %565, %566 : vector<11x11xf32>
    %cst_86 = arith.constant 4.000000e-01 : f32
    %568 = vector.broadcast %cst_86 : f32 to vector<11x11xf32>
    %569 = arith.minimumf %567, %568 : vector<11x11xf32>
    %c0_87 = arith.constant 0 : index
    %c6_88 = arith.constant 6 : index
    %c0_89 = arith.constant 0 : index
    %c0_90 = arith.constant 0 : index
    %570 = vector.load %arg4[%c0_87, %c6_88, %c0_89, %c0_90] : memref<1x9x11x11xf32, #tpu.memory_space<vmem>>, vector<1x1x11x11xf32>
    %571 = vector.shape_cast %570 : vector<1x1x11x11xf32> to vector<11x11xf32>
    %572 = vector.shape_cast %569 : vector<11x11xf32> to vector<1x1x11x11xf32>
    tpu.vector_store %arg4[%c0_87, %c6_88, %c0_89, %c0_90], %572 {strides = array<i32>} : memref<1x9x11x11xf32, #tpu.memory_space<vmem>>, vector<1x1x11x11xf32>,
    %c112 = arith.constant 112 : index
    %573 = memref.load %arg1[%c112] : memref<144xf32, #tpu.memory_space<smem>>
    %574 = vector.broadcast %573 : f32 to vector<11x22xf32>
    %575 = arith.mulf %574, %34 : vector<11x22xf32>
    %c114 = arith.constant 114 : index
    %576 = memref.load %arg1[%c114] : memref<144xf32, #tpu.memory_space<smem>>
    %577 = vector.broadcast %576 : f32 to vector<11x22xf32>
    %578 = arith.mulf %577, %35 : vector<11x22xf32>
    %579 = arith.addf %575, %578 : vector<11x22xf32>
    %c116 = arith.constant 116 : index
    %580 = memref.load %arg1[%c116] : memref<144xf32, #tpu.memory_space<smem>>
    %581 = vector.broadcast %580 : f32 to vector<11x22xf32>
    %582 = arith.mulf %581, %38 : vector<11x22xf32>
    %583 = arith.addf %579, %582 : vector<11x22xf32>
    %c118 = arith.constant 118 : index
    %584 = memref.load %arg1[%c118] : memref<144xf32, #tpu.memory_space<smem>>
    %585 = vector.broadcast %584 : f32 to vector<11x22xf32>
    %586 = arith.mulf %585, %39 : vector<11x22xf32>
    %587 = arith.addf %583, %586 : vector<11x22xf32>
    %c120 = arith.constant 120 : index
    %588 = memref.load %arg1[%c120] : memref<144xf32, #tpu.memory_space<smem>>
    %589 = vector.broadcast %588 : f32 to vector<11x22xf32>
    %590 = arith.mulf %589, %42 : vector<11x22xf32>
    %591 = arith.addf %587, %590 : vector<11x22xf32>
    %c122 = arith.constant 122 : index
    %592 = memref.load %arg1[%c122] : memref<144xf32, #tpu.memory_space<smem>>
    %593 = vector.broadcast %592 : f32 to vector<11x22xf32>
    %594 = arith.mulf %593, %43 : vector<11x22xf32>
    %595 = arith.addf %591, %594 : vector<11x22xf32>
    %c124 = arith.constant 124 : index
    %596 = memref.load %arg1[%c124] : memref<144xf32, #tpu.memory_space<smem>>
    %597 = vector.broadcast %596 : f32 to vector<11x22xf32>
    %598 = arith.mulf %597, %46 : vector<11x22xf32>
    %599 = arith.addf %595, %598 : vector<11x22xf32>
    %c126 = arith.constant 126 : index
    %600 = memref.load %arg1[%c126] : memref<144xf32, #tpu.memory_space<smem>>
    %601 = vector.broadcast %600 : f32 to vector<11x22xf32>
    %602 = arith.mulf %601, %47 : vector<11x22xf32>
    %603 = arith.addf %599, %602 : vector<11x22xf32>
    %cst_91 = arith.constant dense<0.000000e+00> : vector<11x11xf32>
    %604 = tpu.matmul %603, %24, %cst_91 {dimension_numbers = #tpu.dot_dimension_numbers<[1], [0], [0], [1], [0, 0, 1, 1], [], []>} : vector<11x22xf32>, vector<22x11xf32>, vector<11x11xf32> -> vector<11x11xf32>
    %c113 = arith.constant 113 : index
    %605 = memref.load %arg1[%c113] : memref<144xf32, #tpu.memory_space<smem>>
    %606 = vector.broadcast %605 : f32 to vector<11x22xf32>
    %607 = arith.mulf %606, %34 : vector<11x22xf32>
    %c115 = arith.constant 115 : index
    %608 = memref.load %arg1[%c115] : memref<144xf32, #tpu.memory_space<smem>>
    %609 = vector.broadcast %608 : f32 to vector<11x22xf32>
    %610 = arith.mulf %609, %35 : vector<11x22xf32>
    %611 = arith.addf %607, %610 : vector<11x22xf32>
    %c117 = arith.constant 117 : index
    %612 = memref.load %arg1[%c117] : memref<144xf32, #tpu.memory_space<smem>>
    %613 = vector.broadcast %612 : f32 to vector<11x22xf32>
    %614 = arith.mulf %613, %38 : vector<11x22xf32>
    %615 = arith.addf %611, %614 : vector<11x22xf32>
    %c119 = arith.constant 119 : index
    %616 = memref.load %arg1[%c119] : memref<144xf32, #tpu.memory_space<smem>>
    %617 = vector.broadcast %616 : f32 to vector<11x22xf32>
    %618 = arith.mulf %617, %39 : vector<11x22xf32>
    %619 = arith.addf %615, %618 : vector<11x22xf32>
    %c121 = arith.constant 121 : index
    %620 = memref.load %arg1[%c121] : memref<144xf32, #tpu.memory_space<smem>>
    %621 = vector.broadcast %620 : f32 to vector<11x22xf32>
    %622 = arith.mulf %621, %42 : vector<11x22xf32>
    %623 = arith.addf %619, %622 : vector<11x22xf32>
    %c123 = arith.constant 123 : index
    %624 = memref.load %arg1[%c123] : memref<144xf32, #tpu.memory_space<smem>>
    %625 = vector.broadcast %624 : f32 to vector<11x22xf32>
    %626 = arith.mulf %625, %43 : vector<11x22xf32>
    %627 = arith.addf %623, %626 : vector<11x22xf32>
    %c125 = arith.constant 125 : index
    %628 = memref.load %arg1[%c125] : memref<144xf32, #tpu.memory_space<smem>>
    %629 = vector.broadcast %628 : f32 to vector<11x22xf32>
    %630 = arith.mulf %629, %46 : vector<11x22xf32>
    %631 = arith.addf %627, %630 : vector<11x22xf32>
    %c127 = arith.constant 127 : index
    %632 = memref.load %arg1[%c127] : memref<144xf32, #tpu.memory_space<smem>>
    %633 = vector.broadcast %632 : f32 to vector<11x22xf32>
    %634 = arith.mulf %633, %47 : vector<11x22xf32>
    %635 = arith.addf %631, %634 : vector<11x22xf32>
    %cst_92 = arith.constant dense<0.000000e+00> : vector<11x11xf32>
    %636 = tpu.matmul %635, %31, %cst_92 {dimension_numbers = #tpu.dot_dimension_numbers<[1], [0], [0], [1], [0, 0, 1, 1], [], []>} : vector<11x22xf32>, vector<22x11xf32>, vector<11x11xf32> -> vector<11x11xf32>
    %637 = arith.addf %604, %636 : vector<11x11xf32>
    %c7_93 = arith.constant 7 : index
    %638 = memref.load %arg2[%c7_93] : memref<9xf32, #tpu.memory_space<smem>>
    %639 = vector.broadcast %638 : f32 to vector<11x11xf32>
    %640 = arith.addf %637, %639 : vector<11x11xf32>
    %cst_94 = arith.constant 1.000000e-01 : f32
    %641 = vector.broadcast %cst_94 : f32 to vector<11x11xf32>
    %642 = arith.maximumf %640, %641 : vector<11x11xf32>
    %cst_95 = arith.constant 4.000000e-01 : f32
    %643 = vector.broadcast %cst_95 : f32 to vector<11x11xf32>
    %644 = arith.minimumf %642, %643 : vector<11x11xf32>
    %c0_96 = arith.constant 0 : index
    %c7_97 = arith.constant 7 : index
    %c0_98 = arith.constant 0 : index
    %c0_99 = arith.constant 0 : index
    %645 = vector.load %arg4[%c0_96, %c7_97, %c0_98, %c0_99] : memref<1x9x11x11xf32, #tpu.memory_space<vmem>>, vector<1x1x11x11xf32>
    %646 = vector.shape_cast %645 : vector<1x1x11x11xf32> to vector<11x11xf32>
    %647 = vector.shape_cast %644 : vector<11x11xf32> to vector<1x1x11x11xf32>
    tpu.vector_store %arg4[%c0_96, %c7_97, %c0_98, %c0_99], %647 {strides = array<i32>} : memref<1x9x11x11xf32, #tpu.memory_space<vmem>>, vector<1x1x11x11xf32>,
    %c128 = arith.constant 128 : index
    %648 = memref.load %arg1[%c128] : memref<144xf32, #tpu.memory_space<smem>>
    %649 = vector.broadcast %648 : f32 to vector<11x22xf32>
    %650 = arith.mulf %649, %34 : vector<11x22xf32>
    %c130 = arith.constant 130 : index
    %651 = memref.load %arg1[%c130] : memref<144xf32, #tpu.memory_space<smem>>
    %652 = vector.broadcast %651 : f32 to vector<11x22xf32>
    %653 = arith.mulf %652, %35 : vector<11x22xf32>
    %654 = arith.addf %650, %653 : vector<11x22xf32>
    %c132 = arith.constant 132 : index
    %655 = memref.load %arg1[%c132] : memref<144xf32, #tpu.memory_space<smem>>
    %656 = vector.broadcast %655 : f32 to vector<11x22xf32>
    %657 = arith.mulf %656, %38 : vector<11x22xf32>
    %658 = arith.addf %654, %657 : vector<11x22xf32>
    %c134 = arith.constant 134 : index
    %659 = memref.load %arg1[%c134] : memref<144xf32, #tpu.memory_space<smem>>
    %660 = vector.broadcast %659 : f32 to vector<11x22xf32>
    %661 = arith.mulf %660, %39 : vector<11x22xf32>
    %662 = arith.addf %658, %661 : vector<11x22xf32>
    %c136 = arith.constant 136 : index
    %663 = memref.load %arg1[%c136] : memref<144xf32, #tpu.memory_space<smem>>
    %664 = vector.broadcast %663 : f32 to vector<11x22xf32>
    %665 = arith.mulf %664, %42 : vector<11x22xf32>
    %666 = arith.addf %662, %665 : vector<11x22xf32>
    %c138 = arith.constant 138 : index
    %667 = memref.load %arg1[%c138] : memref<144xf32, #tpu.memory_space<smem>>
    %668 = vector.broadcast %667 : f32 to vector<11x22xf32>
    %669 = arith.mulf %668, %43 : vector<11x22xf32>
    %670 = arith.addf %666, %669 : vector<11x22xf32>
    %c140 = arith.constant 140 : index
    %671 = memref.load %arg1[%c140] : memref<144xf32, #tpu.memory_space<smem>>
    %672 = vector.broadcast %671 : f32 to vector<11x22xf32>
    %673 = arith.mulf %672, %46 : vector<11x22xf32>
    %674 = arith.addf %670, %673 : vector<11x22xf32>
    %c142 = arith.constant 142 : index
    %675 = memref.load %arg1[%c142] : memref<144xf32, #tpu.memory_space<smem>>
    %676 = vector.broadcast %675 : f32 to vector<11x22xf32>
    %677 = arith.mulf %676, %47 : vector<11x22xf32>
    %678 = arith.addf %674, %677 : vector<11x22xf32>
    %cst_100 = arith.constant dense<0.000000e+00> : vector<11x11xf32>
    %679 = tpu.matmul %678, %24, %cst_100 {dimension_numbers = #tpu.dot_dimension_numbers<[1], [0], [0], [1], [0, 0, 1, 1], [], []>} : vector<11x22xf32>, vector<22x11xf32>, vector<11x11xf32> -> vector<11x11xf32>
    %c129 = arith.constant 129 : index
    %680 = memref.load %arg1[%c129] : memref<144xf32, #tpu.memory_space<smem>>
    %681 = vector.broadcast %680 : f32 to vector<11x22xf32>
    %682 = arith.mulf %681, %34 : vector<11x22xf32>
    %c131 = arith.constant 131 : index
    %683 = memref.load %arg1[%c131] : memref<144xf32, #tpu.memory_space<smem>>
    %684 = vector.broadcast %683 : f32 to vector<11x22xf32>
    %685 = arith.mulf %684, %35 : vector<11x22xf32>
    %686 = arith.addf %682, %685 : vector<11x22xf32>
    %c133 = arith.constant 133 : index
    %687 = memref.load %arg1[%c133] : memref<144xf32, #tpu.memory_space<smem>>
    %688 = vector.broadcast %687 : f32 to vector<11x22xf32>
    %689 = arith.mulf %688, %38 : vector<11x22xf32>
    %690 = arith.addf %686, %689 : vector<11x22xf32>
    %c135 = arith.constant 135 : index
    %691 = memref.load %arg1[%c135] : memref<144xf32, #tpu.memory_space<smem>>
    %692 = vector.broadcast %691 : f32 to vector<11x22xf32>
    %693 = arith.mulf %692, %39 : vector<11x22xf32>
    %694 = arith.addf %690, %693 : vector<11x22xf32>
    %c137 = arith.constant 137 : index
    %695 = memref.load %arg1[%c137] : memref<144xf32, #tpu.memory_space<smem>>
    %696 = vector.broadcast %695 : f32 to vector<11x22xf32>
    %697 = arith.mulf %696, %42 : vector<11x22xf32>
    %698 = arith.addf %694, %697 : vector<11x22xf32>
    %c139 = arith.constant 139 : index
    %699 = memref.load %arg1[%c139] : memref<144xf32, #tpu.memory_space<smem>>
    %700 = vector.broadcast %699 : f32 to vector<11x22xf32>
    %701 = arith.mulf %700, %43 : vector<11x22xf32>
    %702 = arith.addf %698, %701 : vector<11x22xf32>
    %c141 = arith.constant 141 : index
    %703 = memref.load %arg1[%c141] : memref<144xf32, #tpu.memory_space<smem>>
    %704 = vector.broadcast %703 : f32 to vector<11x22xf32>
    %705 = arith.mulf %704, %46 : vector<11x22xf32>
    %706 = arith.addf %702, %705 : vector<11x22xf32>
    %c143 = arith.constant 143 : index
    %707 = memref.load %arg1[%c143] : memref<144xf32, #tpu.memory_space<smem>>
    %708 = vector.broadcast %707 : f32 to vector<11x22xf32>
    %709 = arith.mulf %708, %47 : vector<11x22xf32>
    %710 = arith.addf %706, %709 : vector<11x22xf32>
    %cst_101 = arith.constant dense<0.000000e+00> : vector<11x11xf32>
    %711 = tpu.matmul %710, %31, %cst_101 {dimension_numbers = #tpu.dot_dimension_numbers<[1], [0], [0], [1], [0, 0, 1, 1], [], []>} : vector<11x22xf32>, vector<22x11xf32>, vector<11x11xf32> -> vector<11x11xf32>
    %712 = arith.addf %679, %711 : vector<11x11xf32>
    %c8_102 = arith.constant 8 : index
    %713 = memref.load %arg2[%c8_102] : memref<9xf32, #tpu.memory_space<smem>>
    %714 = vector.broadcast %713 : f32 to vector<11x11xf32>
    %715 = arith.addf %712, %714 : vector<11x11xf32>
    %cst_103 = arith.constant 1.000000e-01 : f32
    %716 = vector.broadcast %cst_103 : f32 to vector<11x11xf32>
    %717 = arith.maximumf %715, %716 : vector<11x11xf32>
    %cst_104 = arith.constant 4.000000e-01 : f32
    %718 = vector.broadcast %cst_104 : f32 to vector<11x11xf32>
    %719 = arith.minimumf %717, %718 : vector<11x11xf32>
    %c0_105 = arith.constant 0 : index
    %c8_106 = arith.constant 8 : index
    %c0_107 = arith.constant 0 : index
    %c0_108 = arith.constant 0 : index
    %720 = vector.load %arg4[%c0_105, %c8_106, %c0_107, %c0_108] : memref<1x9x11x11xf32, #tpu.memory_space<vmem>>, vector<1x1x11x11xf32>
    %721 = vector.shape_cast %720 : vector<1x1x11x11xf32> to vector<11x11xf32>
    %722 = vector.shape_cast %719 : vector<11x11xf32> to vector<1x1x11x11xf32>
    tpu.vector_store %arg4[%c0_105, %c8_106, %c0_107, %c0_108], %722 {strides = array<i32>} : memref<1x9x11x11xf32, #tpu.memory_space<vmem>>, vector<1x1x11x11xf32>,
    return
  }
  func.func @transform_0(%arg0: i32) -> i32 {
    %c0_i32 = arith.constant 0 : i32
    %c0_i32_0 = arith.constant 0 : i32
    return %c0_i32 : i32
  }
  func.func @transform_1(%arg0: i32) -> i32 {
    %c0_i32 = arith.constant 0 : i32
    %c0_i32_0 = arith.constant 0 : i32
    return %c0_i32 : i32
  }
  func.func @transform_2(%arg0: i32) -> (i32, i32, i32, i32) {
    %c0_i32 = arith.constant 0 : i32
    %c0_i32_0 = arith.constant 0 : i32
    %c0_i32_1 = arith.constant 0 : i32
    %c0_i32_2 = arith.constant 0 : i32
    return %arg0, %c0_i32, %c0_i32_0, %c0_i32_1 : i32, i32, i32, i32
  }
  func.func @transform_3(%arg0: i32) -> (i32, i32, i32, i32) {
    %c0_i32 = arith.constant 0 : i32
    %c0_i32_0 = arith.constant 0 : i32
    %c0_i32_1 = arith.constant 0 : i32
    %c0_i32_2 = arith.constant 0 : i32
    return %arg0, %c0_i32, %c0_i32_0, %c0_i32_1 : i32, i32, i32, i32
  }
}

</mosaic_0001>

<bundles_post_ra>
// kernel: conv2d_clamp.1
= control target key start
LH: loop header
LB: loop body
LE: loop exit
PB: predicated region body
PF: predicated region fallthrough
CT: control target
= control target key end

     0   :  { %s6016_s0 = inlined_call_operand.vmem [shape: f32[144], index: 0, kind: input, shape index: {}]   ;;  %s6017_s1 = inlined_call_operand.vmem [shape: f32[9], index: 1, kind: input, shape index: {}]   ;;  %s6018_s2 = inlined_call_operand.vmem [shape: f32[2,4,22,22], index: 2, kind: input, shape index: {}]   ;;  %s6019_s3 = inlined_call_operand.vmem [shape: f32[2,9,11,11], index: 3, kind: output, shape index: {}]  }
   0x1   :  { %6186 = sst [smem:[#allocation110_spill]] %s6016_s0 }
   0x2   :  { %6187 = sst [smem:[#allocation111_spill]] %s6017_s1 }
   0x3   :  { %6188 = sst [smem:[#allocation112_spill]] %s6018_s2 }
   0x4   :  { %6189 = sst [smem:[#allocation113_spill]] %s6019_s3 }
   0x5   :  { %8 = vsyncpa [#allocation3], 0 }
   0x6   :  { %9 = vsyncpa [#allocation5], 0  ;;  %s4252_s12 = smov 0  }
   0x7 LB: > { %6190 = sst [smem:[#allocation8_spill]] %s4226_s12  ;;  %s4258_s13 = sadd.s32 4294967295, %s4226_s12   ;;  %s4226_s12 = sphi %s4252_s12, %s15_s12  }
   0x8   : > { %p3352_p0 = scmp.ge.s32.totalorder %s4226_s12, 1  ;;  %p114_p1 = scmp.lt.s32.totalorder %s4226_s12, 3 }
   0x9   : > { %s6191_s0 = sld [smem:[#allocation110_spill]]  ;;  %p6020_p3 = scmp.eq.s32.totalorder %s4258_s13, 0 }
   0xa   : > { %p4265_p2 = pnand %p3352_p0, %p114_p1  ;;  %s6193_s1 = sld [smem:[#allocation111_spill]] }
   0xc   : > { %s6192_s17 = scalar_select %p4265_p2, 1, 0 }
   0xd   : > { %p4159_p4 = pneg %p4265_p2 }
   0xf   : > { %s127_s16 = sshll.u32 %s6191_s0, 4  ;;  %p4277_p5 = pnand %p6020_p3, %p4159_p4  ;;  %s128_s16 = int_to_ptr.vmem [resolvable:$true] %s127_s16 }
  0x10   : > { %s138_s20 = sshll.u32 %s6193_s1, 4  ;;  %s4182_s22 = scalar_lea.vmem %s128_s16, 32  ;;  %s139_s20 = int_to_ptr.vmem [resolvable:$true] %s138_s20 }
  0x11   : > { %p4183_p6 = scmp.ne.s32.totalorder %s128_s16, %s4182_s22  ;;  %p4184_p7 = pneg %p4277_p5 }
  0x12   : > { %p4190_p10 = scmp.lt.s32.totalorder %s128_s16, %s128_s16  ;;  %p4191_p11 = scmp.lt.s32.totalorder %s4182_s22, %s4182_s22 }
  0x13   : > { %p4185_p8 = pnand %p4184_p7, %p4183_p6 }
  0x14   : > { %p4192_p12 = por %p4191_p11, %p4190_p10 }
  0x15   : > { %p4186_p9 = pneg %p4185_p8 }
  0x17   : > { %p4193_p13 = pnand %p4192_p12, %p4186_p9 }
  0x19   : > { %4196 = shalt.err (!%p4193_p13)
}
  0x1a   : > { %s4228_s23 = smov [#allocation2]   ;;  %s4197_s24 = scalar_lea.vmem %s139_s20, 16 }
  0x1b   : > { %4162 = dma.vmem_to_smem (!%p4277_p5), %s128_s16, 32, %s4228_s23, [#allocation3]  }
  0x1c   : > { %p4198_p0 = scmp.ne.s32.totalorder %s139_s20, %s4197_s24  ;;  %p4205_p3 = scmp.lt.s32.totalorder %s139_s20, %s139_s20 }
  0x1d   : > { %p4206_p2 = scmp.lt.s32.totalorder %s4197_s24, %s4197_s24 }
  0x1e   : > { %p4200_p1 = pnand %p4198_p0, %p4184_p7 }
  0x1f   : > { %p4207_p6 = por %p4206_p2, %p4205_p3 }
  0x20   : > { %p4201_p4 = pneg %p4200_p1 }
  0x22   : > { %p4208_p8 = pnand %p4207_p6, %p4201_p4 }
  0x24   : > { %4211 = shalt.err (!%p4208_p8)
}
  0x25   : > { %s4229_s25 = smov [#allocation4]   ;;  %p6195_p9 = scmp.ne.s32.totalorder %s6192_s17, 0 }
  0x26   : > { %4165 = dma.vmem_to_smem (!%p4277_p5), %s139_s20, 16, %s4229_s25, [#allocation5]  }
  0x27   : > { %159 = sbr.rel (%p6195_p9) target bundleno = 699 (0x2bb), region = 32 }
  0x2e   : > { %p6196_p10 = scmp.eq.s32.totalorder %s4258_s13, 0 }
  0x30   : > { %4217 = dma.done.wait (%p6196_p10), [#allocation3], 32   ;;  %p6197_p11 = pmov %p6196_p10 }
  0x31   : > { %p6198_p7 = pmov %p6196_p10 }
  0x32   : > { %4219 = vsyncadd (%p6197_p11), [#allocation3], 4294967264 }
  0x33   : > { %4221 = dma.done.wait (%p6198_p7), [#allocation5], 16   ;;  %p6199_p2 = pmov %p6198_p7 }
  0x35   : > { %4223 = vsyncadd (%p6199_p2), [#allocation5], 4294967280 }
  0x36   : > { %169 = sfence }
  0x37   : > { %p188_p3 = scmp.lt.s32.totalorder %s4258_s13, 1  ;;  %v198_v0 = vlaneseq  ;;  %vm243_vm0 = vcmask 179200   ;;  %s6201_s2 = sld [smem:[#allocation112_spill]]  ;;  %v4230_v10 = vmov 0.0   ;;  %vm250_vm6 = vcmask 1045504  }
  0x38   : > { %v6160_v36 = vmov 1.0|1.0   ;;  %s4395_s30 = sld [smem:[#allocation2 + $0x1]]  ;;  %s4399_s5 = sld [smem:[#allocation2]]  ;;  %vm1151_vm14 = vcmask 83968   ;;  %vm1149_vm15 = vcmask 89088  }
  0x39   : > { %s6673_s13 = smov (!%p188_p3, %s4258_s13), 1  ;;  %v199_v1 = vand.u32 127, %v198_v0  ;;  %v201_v2 = vshrl.u32 %v198_v0, 7  ;;  %s4397_s4 = sld [smem:[#allocation2 + $0x11]] }
  0x3a   : > { %6200 = sst [smem:[#allocation9_spill]] %s6673_s13  ;;  %s4149_s26 = smul.u32 96, %s6673_s13 }
  0x3b   : > { %v203_v3 = vmul.u32 2, %v201_v2  ;;  %v219_v4 = vadd.s32 16, %v201_v2  ;;  %v220_v5 = vmul.u32 2, %v199_v1  ;;  %v202_v6 = vadd.s32 8, %v201_v2  ;;  %s4401_s6 = sld [smem:[#allocation2 + $0x3]]  ;;  %s4403_s7 = sld [smem:[#allocation2 + $0x10]] }
  0x3c   : > { %s4405_s8 = sld [smem:[#allocation2 + $0x13]]  ;;  %s4407_s9 = sld [smem:[#allocation2 + $0x2]] }
  0x3d   : > { %s4305_s29 = scalar_lea.vmem %s6201_s2, %s4149_s26  ;;  %vm205_vm1 = vcmp.eq.s32.totalorder %v199_v1, %v203_v3  ;;  %vm223_vm2 = vcmp.eq.s32.totalorder %v219_v4, %v220_v5  ;;  %v204_v7 = vmul.u32 2, %v202_v6  ;;  %vm221_vm3 = vcmp.eq.s32.totalorder %v201_v2, %v220_v5  ;;  %s4409_s10 = sld [smem:[#allocation2 + $0x5]] }
  0x3e   : > { %v240_v8 = vld [vmem:[%s4305_s29] sm:$0xff]  ;;  %v241_v9 = vld [vmem:[%s4305_s29 + $0x8] sm:$0xff]  ;;  %v4309_v11 = vsel %vm205_vm1, 1.0, %v4230_v10  ;;  %v4311_v12 = vsel %vm223_vm2, 1.0, %v4230_v10  ;;  %vm222_vm4 = vcmp.eq.s32.totalorder %v202_v6, %v220_v5  ;;  %v230_v14 = vadd.s32 1, %v220_v5  ;;  %v3377_v16 = vld [vmem:[%s4305_s29 + $0x18] sm:$0xff] }
  0x3f   : > { %v4027_v13 = vpack.c.bf16 %v241_v9, %v240_v8  ;;  %3799 = vmatprep.mubr.msk.f32.mxu1 %vm243_vm0, %v4309_v11  ;;  %vm4315_vm5 = vmpackc.low %vm222_vm4, %vm221_vm3  ;;  %v3378_v17 = vld [vmem:[%s4305_s29 + $0x20] sm:$0xff]  ;;  %3817 = vmatprep.mubr.msk.f32.mxu0 %vm243_vm0, %v4309_v11  ;;  %v242_v18 = vld [vmem:[%s4305_s29 + $0x10] sm:$0x3f]  ;;  %v211_v20 = vadd.s32 1, %v203_v3  ;;  %vm206_vm7 = vcmp.eq.s32.totalorder %v199_v1, %v204_v7  ;;  %v212_v24 = vadd.s32 1, %v204_v7  ;;  %6206 = sst [smem:[#allocation10_spill]] %s4395_s30 }
  0x40   : > { %v4035_v19 = vpack.c.bf16 %v3378_v17, %v3377_v16  ;;  %vm231_vm8 = vcmp.eq.s32.totalorder %v201_v2, %v230_v14  ;;  %vm232_vm9 = vcmp.eq.s32.totalorder %v202_v6, %v230_v14  ;;  %vm233_vm10 = vcmp.eq.s32.totalorder %v219_v4, %v230_v14  ;;  %v3379_v21 = vld [vmem:[%s4305_s29 + $0x28] sm:$0x3f]  ;;  %v3386_v25 = vld [vmem:[%s4305_s29 + $0x30] sm:$0xff]  ;;  %v3387_v26 = vld [vmem:[%s4305_s29 + $0x38] sm:$0xff]  ;;  %6207 = sst [smem:[#allocation11_spill]] %s4397_s4  ;;  %s4411_s11 = sld [smem:[#allocation2 + $0x15]] }
  0x41   : > { %4028 = vmatprep.subr.bf16.mxu1 %v4027_v13  ;;  %v4325_v22 = vsel %vm233_vm10, 1.0, %v4230_v10  ;;  %vm4327_vm11 = vmpackc.low %vm232_vm9, %vm231_vm8  ;;  %vm213_vm12 = vcmp.eq.s32.totalorder %v199_v1, %v211_v20  ;;  %v3362_v27 = vsel %vm206_vm7, 1.0, %v4230_v10  ;;  %v4043_v29 = vpack.c.bf16 %v3387_v26, %v3386_v25  ;;  %v3388_v30 = vld [vmem:[%s4305_s29 + $0x40] sm:$0x3f]  ;;  %v3395_v31 = vld [vmem:[%s4305_s29 + $0x48] sm:$0xff]  ;;  %6208 = sst [smem:[#allocation12_spill]] %s4399_s5 }
  0x42   : > { %4030 = vmatpush3.bf16.msra.mxu1 %v4027_v13  ;;  %4036 = vmatprep.subr.bf16.mxu0 %v4035_v19  ;;  %v3363_v28 = vsel %vm213_vm12, 1.0, %v4230_v10  ;;  %vm214_vm13 = vcmp.eq.s32.totalorder %v199_v1, %v212_v24  ;;  %v3396_v32 = vld [vmem:[%s4305_s29 + $0x50] sm:$0xff]  ;;  %v3397_v35 = vld [vmem:[%s4305_s29 + $0x58] sm:$0x3f]  ;;  %6209 = sst [smem:[#allocation13_spill]] %s4401_s6  ;;  %s4413_s14 = sld [smem:[#allocation2 + $0x4]]  ;;  %v928_v37 = vstv %s4395_s30  ;;  %v1200_v38 = vstv %s4397_s4 }
  0x43   : > { %3797 = vmatprep.subr.msk.mxu1 %vm250_vm6, %v242_v18  ;;  %4038 = vmatpush3.bf16.msra.mxu0 %v4035_v19  ;;  %v3364_v33 = vsel %vm214_vm13, 1.0, %v4230_v10  ;;  %v4051_v34 = vpack.c.bf16 %v3396_v32, %v3395_v31  ;;  %6210 = sst [smem:[#allocation14_spill]] %s4403_s7  ;;  %s4415_s15 = sld [smem:[#allocation2 + $0x12]]  ;;  %v882_v39 = vstv %s4399_s5  ;;  %v932_v40 = vstv %s4401_s6 }
  0x44   : > { %3815 = vmatprep.subr.msk.mxu0 %vm250_vm6, %v3379_v21  ;;  %6211 = sst [smem:[#allocation15_spill]] %s4405_s8  ;;  %s4421_s18 = sld [smem:[#allocation2 + $0x9]]  ;;  %v1204_v41 = vstv %s4405_s8  ;;  %v886_v42 = vstv %s4407_s9  ;;  %v1154_v43 = vstv %s4403_s7  ;;  %v938_v44 = vstv %s4409_s10 }
  0x45   : > { %6212 = sst [smem:[#allocation16_spill]] %s4407_s9  ;;  %s4417_s16 = sld [smem:[#allocation2 + $0x7]] }
  0x46   : > { %3798 = vmatpush3.msk.msra.mxu1 %vm250_vm6, %v242_v18  ;;  %6213 = sst [smem:[#allocation17_spill]] %s4409_s10  ;;  %s4419_s17 = sld [smem:[#allocation2 + $0x17]]  ;;  %v1210_v45 = vstv %s4411_s11 }
  0x47   : > { %3800 = vmatmul.mubr.msk.f32.vlgmr.msra.gmra.mrb[0].mxu1 %vm243_vm0, %v3362_v27  ;;  %4032 = vmatprep.subr.bf16.mxu1 %v4027_v13  ;;  %6214 = sst [smem:[#allocation18_spill]] %s4411_s11  ;;  %s4423_s19 = sld [smem:[#allocation2 + $0x14]] }
  0x48   : > { %4034 = vmatpush3.bf16.msra.mxu1 %v4027_v13  ;;  %3808 = vmatprep.mubr.msk.f32.mxu1 %vm243_vm0, %v3363_v28  ;;  %6215 = sst [smem:[#allocation19_spill]] %s4413_s14  ;;  %s4425_s20 = sld [smem:[#allocation2 + $0x19]]  ;;  %v892_v46 = vstv %s4413_s14 }
  0x49   : > { %3806 = vmatprep.subr.msk.mxu1 %vm250_vm6, %v242_v18  ;;  %3816 = vmatpush3.msk.msra.mxu0 %vm250_vm6, %v3379_v21  ;;  %6216 = sst [smem:[#allocation20_spill]] %s4415_s15  ;;  %s4427_s21 = sld [smem:[#allocation2 + $0x6]]  ;;  %v1158_v47 = vstv %s4415_s15 }
  0x4a   : > { %3818 = vmatmul.mubr.msk.f32.vlgmr.msra.gmra.mrb[0].mxu0 %vm243_vm0, %v3362_v27  ;;  %4044 = vmatprep.subr.bf16.mxu0 %v4043_v29  ;;  %6219 = sst [smem:[#allocation23_spill]] %s4421_s18  ;;  %s4429_s22 = sld [smem:[#allocation2 + $0xb]]  ;;  %v950_v49 = vstv %s4421_s18 }
  0x4b   : > { %4046 = vmatpush3.bf16.msra.mxu0 %v4043_v29  ;;  %3835 = vmatprep.mubr.msk.f32.mxu0 %vm243_vm0, %v4309_v11  ;;  %6217 = sst [smem:[#allocation21_spill]] %s4417_s16  ;;  %s4431_s23 = sld [smem:[#allocation2 + $0x8]]  ;;  %v944_v48 = vstv %s4417_s16 }
  0x4c   : > { %3807 = vmatpush3.msk.msra.mxu1 %vm250_vm6, %v242_v18  ;;  %3833 = vmatprep.subr.msk.mxu0 %vm250_vm6, %v3388_v30  ;;  %6218 = sst [smem:[#allocation22_spill]] %s4419_s17  ;;  %s4433_s24 = sld [smem:[#allocation2 + $0xd]]  ;;  %v1216_v50 = vstv %s4419_s17 }
  0x4d   : > { %3809 = vmatmul.mubr.msk.f32.vlgmr.msra.gmra.mrb[2].mxu1 %vm243_vm0, %v3364_v33  ;;  %4040 = vmatprep.subr.bf16.mxu1 %v4035_v19  ;;  %6220 = sst [smem:[#allocation24_spill]] %s4423_s19  ;;  %s4435_s25 = sld [smem:[#allocation2 + $0x1b]]  ;;  %v1164_v51 = vstv %s4423_s19 }
  0x4e   : > { %4042 = vmatpush3.bf16.msra.mxu1 %v4035_v19  ;;  %3826 = vmatprep.mubr.msk.f32.mxu1 %vm243_vm0, %v3363_v28  ;;  %6221 = sst [smem:[#allocation25_spill]] %s4425_s20  ;;  %s4437_s26 = sld [smem:[#allocation2 + $0x1d]]  ;;  %v1222_v53 = vstv %s4425_s20 }
  0x4f   : > { %3824 = vmatprep.subr.msk.mxu1 %vm250_vm6, %v3379_v21  ;;  %3834 = vmatpush3.msk.msra.mxu0 %vm250_vm6, %v3388_v30  ;;  %6222 = sst [smem:[#allocation26_spill]] %s4427_s21  ;;  %s4441_s28 = sld [smem:[#allocation2 + $0xc]]  ;;  %v898_v54 = vstv %s4427_s21 }
  0x50   : > { %3836 = vmatmul.mubr.msk.f32.vlgmr.msra.gmra.mrb[2].mxu0 %vm243_vm0, %v3362_v27  ;;  %4052 = vmatprep.subr.bf16.mxu0 %v4051_v34  ;;  %6223 = sst [smem:[#allocation27_spill]] %s4429_s22  ;;  %s4439_s27 = sld [smem:[#allocation2 + $0xa]]  ;;  %v956_v52 = vstv %s4429_s22 }
  0x51   : > { %4054 = vmatpush3.bf16.msra.mxu0 %v4051_v34  ;;  %3853 = vmatprep.mubr.msk.f32.mxu0 %vm243_vm0, %v4309_v11  ;;  %6224 = sst [smem:[#allocation28_spill]] %s4431_s23  ;;  %s4443_s29 = sld [smem:[#allocation2 + $0x16]]  ;;  %v904_v55 = vstv %s4431_s23 }
  0x52   : > { %3825 = vmatpush3.msk.msra.mxu1 %vm250_vm6, %v3379_v21  ;;  %3851 = vmatprep.subr.msk.mxu0 %vm250_vm6, %v3397_v35  ;;  %6225 = sst [smem:[#allocation29_spill]] %s4433_s24  ;;  %s4445_s0 = sld [smem:[#allocation2 + $0x18]]  ;;  %v962_v56 = vstv %s4433_s24 }
  0x53   : > { %3827 = vmatmul.mubr.msk.f32.vlgmr.msra.gmra.mrb[4].mxu1 %vm243_vm0, %v3364_v33  ;;  %4048 = vmatprep.subr.bf16.mxu1 %v4043_v29  ;;  %6226 = sst [smem:[#allocation30_spill]] %s4435_s25  ;;  %s4447_s1 = sld [smem:[#allocation2 + $0x21]] }
  0x54   : > { %4050 = vmatpush3.bf16.msra.mxu1 %v4043_v29  ;;  %3844 = vmatprep.mubr.msk.f32.mxu1 %vm243_vm0, %v3363_v28  ;;  %6227 = sst [smem:[#allocation31_spill]] %s4437_s26  ;;  %s4453_s3 = sld [smem:[#allocation2 + $0x23]] }
  0x55   : > { %3842 = vmatprep.subr.msk.mxu1 %vm250_vm6, %v3388_v30  ;;  %3852 = vmatpush3.msk.msra.mxu0 %vm250_vm6, %v3397_v35  ;;  %6229 = sst [smem:[#allocation33_spill]] %s4441_s28  ;;  %s4449_s2 = sld [smem:[#allocation2 + $0xf]] }
  0x56   : > { %3854 = vmatmul.mubr.msk.f32.vlgmr.msra.gmra.mrb[4].mxu0 %vm243_vm0, %v3362_v27  ;;  %4060 = vmatprep.subr.msk.bf16.mxu0 %vm4327_vm11, %v6160_v36  ;;  %6228 = sst [smem:[#allocation32_spill]] %s4439_s27  ;;  %s4451_s12 = sld [smem:[#allocation2 + $0x1f]] }
  0x57   : > { %4062 = vmatpush3.bf16.msk.msra.mxu0 %vm4327_vm11, %v6160_v36  ;;  %6230 = sst [smem:[#allocation34_spill]] %s4443_s29  ;;  %s4455_s13 = sld [smem:[#allocation2 + $0x31]] }
  0x58   : > { %3843 = vmatpush3.msk.msra.mxu1 %vm250_vm6, %v3388_v30  ;;  %3869 = vmatprep.subr.msk.mxu0 %vm250_vm6, %v4325_v22  ;;  %6231 = sst [smem:[#allocation35_spill]] %s4445_s0  ;;  %s4457_s25 = sld [smem:[#allocation2 + $0xe]] }
  0x59   : > { %3845 = vmatmul.mubr.msk.f32.vlgmr.msra.gmra.mrb[6].mxu1 %vm243_vm0, %v3364_v33  ;;  %4056 = vmatprep.subr.bf16.mxu1 %v4051_v34  ;;  %6232 = sst [smem:[#allocation36_spill]] %s4447_s1  ;;  %s4459_s26 = sld [smem:[#allocation2 + $0x1a]] }
  0x5a   : > { %4058 = vmatpush3.bf16.msra.mxu1 %v4051_v34  ;;  %3862 = vmatprep.mubr.msk.f32.mxu1 %vm243_vm0, %v3363_v28  ;;  %6235 = sst [smem:[#allocation39_spill]] %s4453_s3  ;;  %s4461_s27 = sld [smem:[#allocation2 + $0x1c]] }
  0x5b   : > { %3860 = vmatprep.subr.msk.mxu1 %vm250_vm6, %v3397_v35  ;;  %3870 = vmatpush3.msk.msra.mxu0 %vm250_vm6, %v4325_v22  ;;  %6233 = sst [smem:[#allocation37_spill]] %s4449_s2  ;;  %s4463_s28 = sld [smem:[#allocation2 + $0x33]] }
  0x5c   : > { %4064 = vmatprep.subr.msk.bf16.mxu0 %vm4315_vm5, %v6160_v36  ;;  %6234 = sst [smem:[#allocation38_spill]] %s4451_s12  ;;  %s4467_s0 = sld [smem:[#allocation2 + $0x25]] }
  0x5d   : > { %6236 = sst [smem:[#allocation40_spill]] %s4455_s13  ;;  %s4465_s29 = sld [smem:[#allocation2 + $0x1e]] }
  0x5e   : > { %3861 = vmatpush3.msk.msra.mxu1 %vm250_vm6, %v3397_v35  ;;  %6237 = sst [smem:[#allocation41_spill]] %s4457_s25  ;;  %s4469_s1 = sld [smem:[#allocation2 + $0x27]] }
  0x5f   : > { %3863 = vmatmul.mubr.msk.f32.vlgmr.msra.gmra.mrb[8].mxu1 %vm243_vm0, %v3364_v33  ;;  %4068 = vmatprep.subr.msk.bf16.mxu1 %vm4327_vm11, %v6160_v36  ;;  %6238 = sst [smem:[#allocation42_spill]] %s4459_s26  ;;  %s4471_s2 = sld [smem:[#allocation2 + $0x20]] }
  0x60   : > { %4070 = vmatpush3.bf16.msk.msra.mxu1 %vm4327_vm11, %v6160_v36  ;;  %6239 = sst [smem:[#allocation43_spill]] %s4461_s27  ;;  %s4473_s12 = sld [smem:[#allocation2 + $0x29]] }
  0x61   : > { %3887 = vmatprep.subr.msk.mxu1 %vm250_vm6, %v4325_v22  ;;  %6240 = sst [smem:[#allocation44_spill]] %s4463_s28  ;;  %s4475_s3 = sld [smem:[#allocation2 + $0x35]] }
  0x62   : > { %6242 = sst [smem:[#allocation46_spill]] %s4467_s0  ;;  %s4477_s13 = sld [smem:[#allocation2 + $0x2b]] }
  0x63   : > { %6241 = sst [smem:[#allocation45_spill]] %s4465_s29  ;;  %s4479_s25 = sld [smem:[#allocation2 + $0x37]] }
  0x64   : > { %3888 = vmatpush3.msk.msra.mxu1 %vm250_vm6, %v4325_v22  ;;  %6243 = sst [smem:[#allocation47_spill]] %s4469_s1  ;;  %s4481_s26 = sld [smem:[#allocation2 + $0x2d]] }
  0x65   : > { %4072 = vmatprep.subr.msk.bf16.mxu1 %vm4315_vm5, %v6160_v36  ;;  %6244 = sst [smem:[#allocation48_spill]] %s4471_s2  ;;  %s4485_s28 = sld [smem:[#allocation2 + $0x2f]] }
  0x66   : > { %6245 = sst [smem:[#allocation49_spill]] %s4473_s12  ;;  %s4483_s27 = sld [smem:[#allocation2 + $0x30]] }
  0x67   : > { %6246 = sst [smem:[#allocation50_spill]] %s4475_s3  ;;  %s4487_s29 = sld [smem:[#allocation2 + $0x39]] }
  0x68   : > { %6247 = sst [smem:[#allocation51_spill]] %s4477_s13  ;;  %s4491_s1 = sld [smem:[#allocation2 + $0x22]] }
  0x69   : > { %6248 = sst [smem:[#allocation52_spill]] %s4479_s25  ;;  %s4489_s0 = sld [smem:[#allocation2 + $0x3b]] }
  0x6a   : > { %6249 = sst [smem:[#allocation53_spill]] %s4481_s26  ;;  %s4495_s12 = sld [smem:[#allocation2 + $0x24]] }
  0x6b   : > { %6251 = sst [smem:[#allocation55_spill]] %s4485_s28  ;;  %s4493_s2 = sld [smem:[#allocation2 + $0x3d]] }
  0x6c   : > { %6250 = sst [smem:[#allocation54_spill]] %s4483_s27  ;;  %s4497_s3 = sld [smem:[#allocation2 + $0x3f]] }
  0x6d   : > { %6252 = sst [smem:[#allocation56_spill]] %s4487_s29  ;;  %s4499_s13 = sld [smem:[#allocation2 + $0x41]] }
  0x6e   : > { %6254 = sst [smem:[#allocation58_spill]] %s4491_s1  ;;  %s4501_s25 = sld [smem:[#allocation2 + $0x26]] }
  0x6f   : > { %6253 = sst [smem:[#allocation57_spill]] %s4489_s0  ;;  %s4503_s26 = sld [smem:[#allocation2 + $0x28]] }
  0x70   : > { %6256 = sst [smem:[#allocation60_spill]] %s4495_s12  ;;  %s4505_s27 = sld [smem:[#allocation2 + $0x32]] }
  0x71   : > { %6255 = sst [smem:[#allocation59_spill]] %s4493_s2  ;;  %s4507_s29 = sld [smem:[#allocation2 + $0x34]] }
  0x72   : > { %6257 = sst [smem:[#allocation61_spill]] %s4497_s3  ;;  %s4509_s0 = sld [smem:[#allocation2 + $0x2a]] }
  0x73   : > { %6258 = sst [smem:[#allocation62_spill]] %s4499_s13  ;;  %s4511_s1 = sld [smem:[#allocation2 + $0x51]] }
  0x74   : > { %6259 = sst [smem:[#allocation63_spill]] %s4501_s25  ;;  %s4513_s12 = sld [smem:[#allocation2 + $0x2c]] }
  0x75   : > { %6260 = sst [smem:[#allocation64_spill]] %s4503_s26  ;;  %s4515_s3 = sld [smem:[#allocation2 + $0x2e]] }
  0x76   : > { %6261 = sst [smem:[#allocation65_spill]] %s4505_s27  ;;  %s4517_s13 = sld [smem:[#allocation2 + $0x36]] }
  0x77   : > { %6262 = sst [smem:[#allocation66_spill]] %s4507_s29  ;;  %s4519_s26 = sld [smem:[#allocation2 + $0x43]] }
  0x78   : > { %6263 = sst [smem:[#allocation67_spill]] %s4509_s0  ;;  %s4521_s27 = sld [smem:[#allocation2 + $0x38]] }
  0x79   : > { %6264 = sst [smem:[#allocation68_spill]] %s4511_s1  ;;  %s4523_s29 = sld [smem:[#allocation2 + $0x45]] }
  0x7a   : > { %6265 = sst [smem:[#allocation69_spill]] %s4513_s12  ;;  %s4525_s0 = sld [smem:[#allocation2 + $0x3a]] }
  0x7b   : > { %6266 = sst [smem:[#allocation70_spill]] %s4515_s3  ;;  %s4527_s25 = sld [smem:[#allocation2 + $0x40]] }
  0x7c   : > { %6267 = sst [smem:[#allocation71_spill]] %s4517_s13  ;;  %s4529_s12 = sld [smem:[#allocation2 + $0x3c]] }
  0x7d   : > { %6268 = sst [smem:[#allocation72_spill]] %s4519_s26  ;;  %s4531_s3 = sld [smem:[#allocation2 + $0x47]] }
  0x7e   : > { %6269 = sst [smem:[#allocation73_spill]] %s4521_s27  ;;  %s4533_s13 = sld [smem:[#allocation2 + $0x3e]] }
  0x7f   : > { %6270 = sst [smem:[#allocation74_spill]] %s4523_s29  ;;  %s4535_s26 = sld [smem:[#allocation2 + $0x49]] }
  0x80   : > { %6271 = sst [smem:[#allocation75_spill]] %s4525_s0  ;;  %s4550_s30 = sld [smem:[#allocation2 + $0x50]] }
  0x81   : > { %6272 = sst [smem:[#allocation76_spill]] %s4527_s25  ;;  %s4540_s29 = sld [smem:[#allocation2 + $0x53]] }
  0x82   : > { %6273 = sst [smem:[#allocation77_spill]] %s4529_s12  ;;  %s6281_s5 = sld [smem:[#allocation30_spill]] }
  0x83   : > { %6274 = sst [smem:[#allocation78_spill]] %s4531_s3  ;;  %s4542_s25 = sld [smem:[#allocation2 + $0x55]] }
  0x84   : > { %6275 = sst [smem:[#allocation79_spill]] %s4533_s13  ;;  %s4548_s3 = sld [smem:[#allocation2 + $0x4b]] }
  0x85   : > { %6276 = sst [smem:[#allocation80_spill]] %s4535_s26  ;;  %s4556_s4 = sld [smem:[#allocation2 + $0x4d]] }
  0x86   : > { %6280 = sst [smem:[#allocation84_spill]] %s4550_s30  ;;  %s6283_s6 = sld [smem:[#allocation31_spill]] }
  0x87   : > { %6277 = sst [smem:[#allocation81_spill]] %s4540_s29  ;;  %s4558_s8 = sld [smem:[#allocation2 + $0x57]] }
  0x88   : > { %s6285_s9 = sld [smem:[#allocation32_spill]]  ;;  %s6286_s7 = sld [smem:[#allocation33_spill]]  ;;  %v1228_v57 = vstv %s6281_s5 }
  0x89   : > { %6278 = sst [smem:[#allocation82_spill]] %s4542_s25  ;;  %s4564_s30 = sld [smem:[#allocation2 + $0x4f]] }
  0x8a   : > { %6279 = sst [smem:[#allocation83_spill]] %s4548_s3  ;;  %s6287_s25 = sld [smem:[#allocation34_spill]] }
  0x8b   : > { %6282 = sst [smem:[#allocation85_spill]] %s4556_s4  ;;  %s6289_s10 = sld [smem:[#allocation35_spill]] }
  0x8c   : > { %s4566_s11 = sld [smem:[#allocation2 + $0x59]]  ;;  %s6291_s14 = sld [smem:[#allocation36_spill]]  ;;  %v1234_v58 = vstv %s6283_s6 }
  0x8d   : > { %6284 = sst [smem:[#allocation86_spill]] %s4558_s8  ;;  %s4572_s8 = sld [smem:[#allocation2 + $0x5b]] }
  0x8e   : > { %s4574_s18 = sld [smem:[#allocation2 + $0x42]]  ;;  %s6297_s17 = sld [smem:[#allocation40_spill]]  ;;  %v910_v59 = vstv %s6285_s9  ;;  %v916_v60 = vstv %s6286_s7 }
  0x8f   : > { %6288 = sst [smem:[#allocation87_spill]] %s4564_s30  ;;  %s4582_s20 = sld [smem:[#allocation2 + $0x61]] }
  0x90   : > { %v1170_v61 = vstv %s6287_s25  ;;  %s4590_s5 = sld [smem:[#allocation2 + $0x5f]]  ;;  %s6311_s7 = sld [smem:[#allocation50_spill]] }
  0x91   : > { %v1176_v62 = vstv %s6289_s10  ;;  %s4598_s25 = sld [smem:[#allocation2 + $0x48]]  ;;  %s4606_s4 = sld [smem:[#allocation2 + $0x54]] }
  0x92   : > { %6290 = sst [smem:[#allocation88_spill]] %s4566_s11  ;;  %s4580_s11 = sld [smem:[#allocation2 + $0x44]]  ;;  %v1465_v63 = vstv %s6291_s14 }
  0x93   : > { %6294 = sst [smem:[#allocation89_spill]] %s4572_s8  ;;  %s6305_s8 = sld [smem:[#allocation46_spill]] }
  0x94   : > { %6296 = sst [smem:[#allocation90_spill]] %s4574_s18  ;;  %s4588_s18 = sld [smem:[#allocation2 + $0x5d]]  ;;  %v1730_v3 = vstv %s6297_s17 }
  0x95   : > { %6302 = sst [smem:[#allocation92_spill]] %s4582_s20  ;;  %s4596_s20 = sld [smem:[#allocation2 + $0x46]] }
  0x96   : > { %6307 = sst [smem:[#allocation93_spill]] %s4590_s5  ;;  %s4604_s5 = sld [smem:[#allocation2 + $0x52]]  ;;  %v1740_v16 = vstv %s6311_s7 }
  0x97   : > { %6312 = sst [smem:[#allocation94_spill]] %s4598_s25  ;;  %s4612_s25 = sld [smem:[#allocation2 + $0x4a]] }
  0x98   : > { %6300 = sst [smem:[#allocation91_spill]] %s4580_s11  ;;  %s4614_s30 = sld [smem:[#allocation2 + $0x71]] }
  0x99   : > { %6317 = sst [smem:[#allocation96_spill]] %s4606_s4  ;;  %v1475_v9 = vstv %s6305_s8  ;;  %s4620_s4 = sld [smem:[#allocation2 + $0x4c]] }
  0x9a   : > { %s4622_s8 = sld [smem:[#allocation2 + $0x56]]  ;;  %s4630_s11 = sld [smem:[#allocation2 + $0x58]] }
  0x9b   : > { %s4638_s28 = sld [smem:[#allocation2 + $0x63]]  ;;  %s4644_s16 = sld [smem:[#allocation2 + $0x65]] }
  0x9c   : > { %6315 = sst [smem:[#allocation95_spill]] %s4604_s5  ;;  %s4646_s2 = sld [smem:[#allocation2 + $0x60]] }
  0x9d   : > { %6320 = sst [smem:[#allocation97_spill]] %s4612_s25  ;;  %s4652_s22 = sld [smem:[#allocation2 + $0x5c]] }
  0x9e   : > { %6322 = sst [smem:[#allocation98_spill]] %s4614_s30  ;;  %s4628_s30 = sld [smem:[#allocation2 + $0x4e]] }
  0x9f   : > { %s4654_s5 = sld [smem:[#allocation2 + $0x5e]]  ;;  %s4660_s24 = sld [smem:[#allocation2 + $0x67]] }
  0xa0   : > { %6327 = sst [smem:[#allocation99_spill]] %s4622_s8  ;;  %s4636_s8 = sld [smem:[#allocation2 + $0x5a]] }
  0xa1   : > { %s4662_s25 = sld [smem:[#allocation2 + $0x69]]  ;;  %s6346_s1 = sld [smem:[#allocation85_spill]] }
  0xa2   : > { %6338 = sst [smem:[#allocation101_spill]] %s4646_s2  ;;  %s4678_s0 = sld [smem:[#allocation2 + $0x70]] }
  0xa3   : > { %s4670_s7 = sld [smem:[#allocation2 + $0x75]]  ;;  %s4686_s13 = sld [smem:[#allocation2 + $0x77]] }
  0xa4   : > { %s6358_s19 = sld [smem:[#allocation93_spill]]  ;;  %s6362_s26 = sld [smem:[#allocation97_spill]] }
  0xa5   : > { %6341 = sst [smem:[#allocation102_spill]] %s4654_s5  ;;  %s4668_s5 = sld [smem:[#allocation2 + $0x73]] }
  0xa6   : > { %6334 = sst [smem:[#allocation100_spill]] %s4636_s8  ;;  %s4692_s3 = sld [smem:[#allocation2 + $0x6f]] }
  0xa7   : > { %6342 = sst [smem:[#allocation103_spill]] %s4660_s24  ;;  %s4694_s6 = sld [smem:[#allocation2 + $0x79]] }
  0xa8   : > { %6344 = sst [smem:[#allocation104_spill]] %s4662_s25  ;;  %s4676_s25 = sld [smem:[#allocation2 + $0x6b]] }
  0xa9   : > { %6350 = sst [smem:[#allocation105_spill]] %s4670_s7  ;;  %s4684_s7 = sld [smem:[#allocation2 + $0x6d]] }
  0xaa   : > { %6356 = sst [smem:[#allocation107_spill]] %s4678_s0  ;;  %s4702_s10 = sld [smem:[#allocation2 + $0x62]] }
  0xab   : > { %6348 = sst [smem:[#allocation85_spill]] %s4668_s5  ;;  %s6364_s5 = sld [smem:[#allocation96_spill]] }
  0xac   : > { %6360 = sst [smem:[#allocation108_spill]] %s4686_s13  ;;  %s6368_s9 = sld [smem:[#allocation99_spill]] }
  0xad   : > { %6366 = sst [smem:[#allocation97_spill]] %s4692_s3  ;;  %s4700_s23 = sld [smem:[#allocation2 + $0x7b]] }
  0xae   : > { %6354 = sst [smem:[#allocation106_spill]] %s4676_s25  ;;  %s6371_s14 = sld [smem:[#allocation102_spill]] }
  0xaf   : > { %6359 = sst [smem:[#allocation93_spill]] %s4684_s7  ;;  %s6409_s29 = sld [smem:[#allocation38_spill]] }
  0xb0   : > { %6367 = sst [smem:[#allocation96_spill]] %s4694_s6  ;;  %s6408_s24 = sld [smem:[#allocation37_spill]] }
  0xb1   : > { %6370 = sst [smem:[#allocation109_spill]] %s4702_s10  ;;  %s6407_s10 = sld [smem:[#allocation42_spill]] }
  0xb2   : > { %s4943_s21 = sld [smem:[#allocation2 + $0x64]]  ;;  %s4950_s12 = sld [smem:[#allocation2 + $0x81]] }
  0xb3   : > { %6369 = sst [smem:[#allocation99_spill]] %s4700_s23  ;;  %s6411_s13 = sld [smem:[#allocation41_spill]] }
  0xb4   : > { %s6413_s3 = sld [smem:[#allocation43_spill]]  ;;  %s4957_s27 = sld [smem:[#allocation2 + $0x7d]] }
  0xb5   : > { %s4970_s8 = sld [smem:[#allocation2 + $0x7f]]  ;;  %s6417_s7 = sld [smem:[#allocation45_spill]] }
  0xb6   : > { %s4984_s17 = sld [smem:[#allocation2 + $0x66]]  ;;  %s6420_s25 = sld [smem:[#allocation39_spill]] }
  0xb7   : > { %s5000_s6 = sld [smem:[#allocation2 + $0x68]]  ;;  %s6428_s23 = sld [smem:[#allocation49_spill]] }
  0xb8   : > { %6410 = sst [smem:[#allocation102_spill]] %s4950_s12  ;;  %s6431_s2 = sld [smem:[#allocation51_spill]] }
  0xb9   : > { %s5048_s0 = sld [smem:[#allocation2 + $0x72]]  ;;  %s5059_s15 = sld [smem:[#allocation2 + $0x74]] }
  0xbd   : > { %6423 = sst [smem:[#allocation10_spill]] %s5000_s6 }
  0xbf   : > { %6434 = sst [smem:[#allocation11_spill]] %s5048_s0 }
  0xc0   : > { %6438 = sst [smem:[#allocation12_spill]] %s5059_s15 }
 0x11a   : > { %v4724_v27 = vpop.f32.mrb[0].mxu1 }
 0x11b   : > { %v4730_v35 = vpop.f32.mrb[1].mxu1  ;;  %v930_v29 = vmul.f32 %v4724_v27, %v928_v37  ;;  %v1202_v30 = vmul.f32 %v4724_v27, %v1200_v38  ;;  %v884_v33 = vmul.f32 %v4724_v27, %v882_v39  ;;  %v1156_v34 = vmul.f32 %v4724_v27, %v1154_v43 }
 0x11c   : > { %v929_v31 = vmul.f32 %v928_v37, %v4730_v35  ;;  %v1201_v28 = vmul.f32 %v1200_v38, %v4730_v35  ;;  %v883_v25 = vmul.f32 %v882_v39, %v4730_v35  ;;  %v1155_v37 = vmul.f32 %v1154_v43, %v4730_v35 }
 0x11d   : > { %v4744_v32 = vpop.f32.mrb[0].mxu0  ;;  %v4769_v38 = vmul.f32 %v1465_v63, %v4730_v35  ;;  %v4774_v26 = vmul.f32 %v4724_v27, %v1465_v63  ;;  %v4785_v43 = vmul.f32 %v1730_v3, %v4730_v35  ;;  %v4790_v24 = vmul.f32 %v4724_v27, %v1730_v3 }
 0x11e   : > { %v4758_v21 = vpop.f32.mrb[1].mxu0  ;;  %v940_v11 = vmul.f32 %v4744_v32, %v938_v44  ;;  %v1212_v39 = vmul.f32 %v4744_v32, %v1210_v45  ;;  %v4803_v17 = vmul.f32 %v4744_v32, %v892_v46  ;;  %v4808_v18 = vmul.f32 %v4744_v32, %v1164_v51 }
 0x11f   : > { %v939_v63 = vmul.f32 %v938_v44, %v4758_v21  ;;  %v1211_v19 = vmul.f32 %v1210_v45, %v4758_v21  ;;  %v893_v2 = vmul.f32 %v892_v46, %v4758_v21  ;;  %v4850_v46 = vmul.f32 %v1475_v9, %v4758_v21 }
 0x120   : > { %v4792_v20 = vpop.f32.mrb[2].mxu1 }
 0x121   : > { %v4810_v7 = vpop.f32.mrb[3].mxu1  ;;  %v934_v3 = vmul.f32 %v4792_v20, %v932_v40  ;;  %v1206_v44 = vmul.f32 %v4792_v20, %v1204_v41  ;;  %v888_v45 = vmul.f32 %v4792_v20, %v886_v42  ;;  %v1160_v14 = vmul.f32 %v4792_v20, %v1158_v47 }
 0x122   : > { %v933_v13 = vmul.f32 %v932_v40, %v4810_v7  ;;  %v1205_v10 = vmul.f32 %v1204_v41, %v4810_v7  ;;  %v887_v36 = vmul.f32 %v886_v42, %v4810_v7  ;;  %v1165_v42 = vmul.f32 %v1164_v51, %v4758_v21 }
 0x123   : > { %v4836_v8 = vpop.f32.mrb[2].mxu0  ;;  %v936_v6 = vadd.f32 %v934_v3, %v930_v29  ;;  %v1208_v4 = vadd.f32 %v1206_v44, %v1202_v30  ;;  %v4838_v1 = vadd.f32 %v888_v45, %v884_v33  ;;  %v4840_v0 = vadd.f32 %v1160_v14, %v1156_v34 }
 0x124   : > { %v4842_v40 = vpop.f32.mrb[3].mxu0  ;;  %v935_v41 = vadd.f32 %v933_v13, %v929_v31  ;;  %v1207_v5 = vadd.f32 %v1205_v10, %v1201_v28  ;;  %v952_v14 = vmul.f32 %v4836_v8, %v950_v49  ;;  %v1159_v13 = vmul.f32 %v1158_v47, %v4810_v7 }
 0x125   : > { %v942_v29 = vadd.f32 %v940_v11, %v936_v6  ;;  %v1214_v30 = vadd.f32 %v1212_v39, %v1208_v4  ;;  %v1224_v51 = vmul.f32 %v4836_v8, %v1222_v53  ;;  %v889_v33 = vadd.f32 %v887_v36, %v883_v25 }
 0x126   : > { %v4858_v10 = vpop.f32.mrb[4].mxu1  ;;  %v941_v28 = vadd.f32 %v939_v63, %v935_v41  ;;  %v1213_v31 = vadd.f32 %v1211_v19, %v1207_v5  ;;  %v951_v4 = vmul.f32 %v950_v49, %v4842_v40  ;;  %v1223_v5 = vmul.f32 %v1222_v53, %v4842_v40 }
 0x127   : > { %v4863_v34 = vpop.f32.mrb[5].mxu1  ;;  %v946_v3 = vmul.f32 %v4858_v10, %v944_v48  ;;  %v1218_v47 = vmul.f32 %v4858_v10, %v1216_v50  ;;  %v895_v11 = vadd.f32 %v893_v2, %v889_v33  ;;  %v1161_v63 = vadd.f32 %v1159_v13, %v1155_v37 }
 0x128   : > { %v945_v36 = vmul.f32 %v944_v48, %v4863_v34  ;;  %v1217_v6 = vmul.f32 %v1216_v50, %v4863_v34  ;;  %v899_v19 = vmul.f32 %v898_v54, %v4863_v34  ;;  %v4891_v53 = vmul.f32 %v4744_v32, %v1475_v9 }
 0x129   : > { %v4886_v49 = vpop.f32.mrb[4].mxu0  ;;  %v948_v25 = vadd.f32 %v946_v3, %v942_v29  ;;  %v1220_v39 = vadd.f32 %v1218_v47, %v1214_v30  ;;  %v905_v2 = vmul.f32 %v904_v55, %v4842_v40  ;;  %v1171_v45 = vmul.f32 %v1170_v61, %v4863_v34 }
 0x12a   : > { %v4893_v44 = vpop.f32.mrb[5].mxu0  ;;  %v947_v48 = vadd.f32 %v945_v36, %v941_v28  ;;  %v1219_v50 = vadd.f32 %v1217_v6, %v1213_v31  ;;  %v964_v9 = vmul.f32 %v4886_v49, %v962_v56  ;;  %v1236_v37 = vmul.f32 %v4886_v49, %v1234_v58 }
 0x12b   : > { %v954_v41 = vadd.f32 %v952_v14, %v948_v25  ;;  %v1226_v29 = vadd.f32 %v1224_v51, %v1220_v39  ;;  %v963_v28 = vmul.f32 %v962_v56, %v4893_v44  ;;  %v901_v33 = vadd.f32 %v899_v19, %v895_v11 }
 0x12c   : > { %v4907_v30 = vpop.f32.mrb[6].mxu1  ;;  %v953_v13 = vadd.f32 %v951_v4, %v947_v48  ;;  %v1225_v31 = vadd.f32 %v1223_v5, %v1219_v50  ;;  %v1235_v14 = vmul.f32 %v1234_v58, %v4893_v44  ;;  %v917_v51 = vmul.f32 %v916_v60, %v4893_v44 }
 0x12d   : > { %v4912_v3 = vpop.f32.mrb[7].mxu1  ;;  %v958_v47 = vmul.f32 %v4907_v30, %v956_v52  ;;  %v1230_v36 = vmul.f32 %v4907_v30, %v1228_v57  ;;  %v907_v5 = vadd.f32 %v905_v2, %v901_v33  ;;  %v1167_v25 = vadd.f32 %v1165_v42, %v1161_v63 }
 0x12e   : > { %v957_v56 = vmul.f32 %v956_v52, %v4912_v3  ;;  %v1229_v4 = vmul.f32 %v1228_v57, %v4912_v3  ;;  %v911_v6 = vmul.f32 %v910_v59, %v4912_v3  ;;  %v4938_v58 = vmul.f32 %v1740_v16, %v4758_v21 }
 0x12f   : > { %v960_v11 = vadd.f32 %v958_v47, %v954_v41  ;;  %v1232_v19 = vadd.f32 %v1230_v36, %v1226_v29  ;;  %v1177_v57 = vmul.f32 %v1176_v62, %v4842_v40  ;;  %v1173_v42 = vadd.f32 %v1171_v45, %v1167_v25 }
 0x130   : > { %v959_v39 = vadd.f32 %v957_v56, %v953_v13  ;;  %v1231_v48 = vadd.f32 %v1229_v4, %v1225_v31  ;;  %v913_v52 = vadd.f32 %v911_v6, %v907_v5  ;;  %v4948_v63 = vmul.f32 %v4744_v32, %v1740_v16 }
 0x131   : > { %v966_v50 = vadd.f32 %v964_v9, %v960_v11  ;;  %v1238_v2 = vadd.f32 %v1236_v37, %v1232_v19  ;;  %v6412_v33 = vstv %s6407_s10  ;;  %v6414_v37 = vstv %s6408_s24  ;;  %s6424_s24 = sld [smem:[#allocation47_spill]] }
 0x132   : > { %v4952_v41 = vpop.f32.mrb[8].mxu1  ;;  %v965_v29 = vadd.f32 %v963_v28, %v959_v39  ;;  %v1237_v13 = vadd.f32 %v1235_v14, %v1231_v48  ;;  %v919_v31 = vadd.f32 %v917_v51, %v913_v52  ;;  %v1183_v9 = vmul.f32 %v6412_v33, %v4912_v3 }
 0x133   : > { %v4959_v45 = vpop.f32.mrb[9].mxu1  ;;  %v970_v16 = vmul.f32 %v4952_v41, %v6414_v37  ;;  %v6415_v47 = vstv %s6409_s29  ;;  %v900_v28 = vmul.f32 %v4858_v10, %v898_v54  ;;  %v1179_v14 = vadd.f32 %v1177_v57, %v1173_v42  ;;  %s5090_s29 = sld [smem:[#allocation2 + $0x6a]] }
 0x134   : > { %v1242_v36 = vmul.f32 %v4952_v41, %v6415_v47  ;;  %v6416_v51 = vmov %v6414_v37  ;;  %v6418_v4 = vmov %v6415_v47  ;;  %v906_v6 = vmul.f32 %v4836_v8, %v904_v55 }
 0x135   : > { %v969_v56 = vmul.f32 %v6416_v51, %v4959_v45  ;;  %v1241_v5 = vmul.f32 %v6418_v4, %v4959_v45  ;;  %v6419_v11 = vstv %s6411_s13  ;;  %v972_v54 = vadd.f32 %v970_v16, %v966_v50 }
 0x136   : > { %v923_v19 = vmul.f32 %v6419_v11, %v4959_v45  ;;  %v1244_v25 = vadd.f32 %v1242_v36, %v1238_v2  ;;  %v1185_v39 = vadd.f32 %v1183_v9, %v1179_v14  ;;  %v6421_v48 = vstv %s6413_s3  ;;  %s6433_s3 = sld [smem:[#allocation44_spill]] }
 0x137   : > { %v1189_v52 = vmul.f32 %v6421_v48, %v4893_v44  ;;  %v971_v57 = vadd.f32 %v969_v56, %v965_v29  ;;  %v1243_v42 = vadd.f32 %v1241_v5, %v1237_v13  ;;  %v1172_v55 = vmul.f32 %v4858_v10, %v1170_v61 }
 0x138   : > { %v925_v33 = vadd.f32 %v923_v19, %v919_v31  ;;  %v912_v37 = vmul.f32 %v4907_v30, %v910_v59  ;;  %v6422_v50 = vstv %s6417_s7  ;;  %v896_v9 = vadd.f32 %v4803_v17, %v4838_v1  ;;  %s6445_s7 = sld [smem:[#allocation55_spill]] }
 0x139   : > { %v1191_v47 = vadd.f32 %v1189_v52, %v1185_v39  ;;  %v1195_v2 = vmul.f32 %v6422_v50, %v4959_v45  ;;  %3871 = vmatprep.mubr.msk.f32.mxu0 %vm243_vm0, %v971_v57  ;;  %3889 = vmatprep.mubr.msk.f32.mxu1 %vm243_vm0, %v1243_v42  ;;  %v1178_v61 = vmul.f32 %v4836_v8, %v1176_v62  ;;  %v6425_v29 = vstv %s6420_s25  ;;  %s6447_s25 = sld [smem:[#allocation56_spill]]  ;;  %6449 = sst [smem:[#allocation14_spill]] %s5090_s29 }
 0x13a   : > { %v1168_v59 = vadd.f32 %v4808_v18, %v4840_v0  ;;  %v1470_v13 = vmul.f32 %v6425_v29, %v4810_v7  ;;  %v2489_v1 = vstv %s4943_s21  ;;  %3872 = vmatmul.mubr.msk.f32.vlgmr.msra.gmra.mrb[6].mxu0 %vm243_vm0, %v972_v54  ;;  %3890 = vmatmul.mubr.msk.f32.vlgmr.msra.gmra.mrb[10].mxu1 %vm243_vm0, %v1244_v25  ;;  %v6426_v17 = vstv %s6407_s10  ;;  %s6439_s10 = sld [smem:[#allocation53_spill]]  ;;  %s5760_s21 = sld [smem:[#allocation2 + $0x88]] }
 0x13b   : > { %v1184_v31 = vmul.f32 %v4907_v30, %v6426_v17  ;;  %v1197_v16 = vadd.f32 %v1195_v2, %v1191_v47  ;;  %v902_v36 = vadd.f32 %v900_v28, %v896_v9  ;;  %v3055_v62 = vstv %s4950_s12  ;;  %3880 = vmatprep.mubr.msk.f32.mxu0 %vm243_vm0, %v925_v33  ;;  %s6471_s12 = sld [smem:[#allocation64_spill]] }
 0x13c   : > { %v6427_v14 = vmov 1.0|1.0   ;;  %v1174_v0 = vadd.f32 %v1172_v55, %v1168_v59  ;;  %v1472_v18 = vadd.f32 %v1470_v13, %v4769_v38  ;;  %v6429_v51 = vstv %s6424_s24  ;;  %s6451_s24 = sld [smem:[#allocation57_spill]] }
 0x13d   : > { %4066 = vmatpush3.bf16.msk.msra.mxu0 %vm4315_vm5, %v6427_v14  ;;  %v1482_v56 = vmul.f32 %v6429_v51, %v4863_v34  ;;  %v2824_v4 = vstv %s4957_s27  ;;  %v918_v28 = vmul.f32 %v4886_v49, %v916_v60  ;;  %v6430_v5 = vmov %v6421_v48  ;;  %3898 = vmatprep.mubr.msk.f32.mxu1 %vm243_vm0, %v1197_v16 }
 0x13e   : > { %v1190_v11 = vmul.f32 %v4886_v49, %v6430_v5  ;;  %4074 = vmatpush3.bf16.msk.msra.mxu1 %vm4315_vm5, %v6427_v14  ;;  %v908_v38 = vadd.f32 %v906_v6, %v902_v36  ;;  %v2830_v19 = vstv %s4970_s8  ;;  %3878 = vmatprep.subr.msk.mxu0 %vm250_vm6, %v4311_v12  ;;  %v1180_v60 = vadd.f32 %v1178_v61, %v1174_v0 }
 0x13f   : > { %3896 = vmatprep.subr.msk.mxu1 %vm250_vm6, %v4311_v12  ;;  %v1478_v54 = vadd.f32 %v4850_v46, %v1472_v18  ;;  %v6432_v25 = vstv %s6428_s23  ;;  %v2495_v48 = vstv %s4984_s17  ;;  %v6435_v6 = vstv %s6411_s13  ;;  %s6442_s13 = sld [smem:[#allocation52_spill]]  ;;  %s5099_s23 = sld [smem:[#allocation2 + $0x80]] }
 0x140   : > { %v1488_v39 = vmul.f32 %v6432_v25, %v4842_v40  ;;  %v924_v52 = vmul.f32 %v4952_v41, %v6435_v6  ;;  %v6436_v57 = vmov %v6422_v50  ;;  %v914_v33 = vadd.f32 %v912_v37, %v908_v38  ;;  %s5782_s17 = sld [smem:[#allocation2 + $0x8a]] }
 0x141   : > { %v1196_v42 = vmul.f32 %v4952_v41, %v6436_v57  ;;  %v6437_v55 = vmov %v6425_v29  ;;  %3879 = vmatpush3.msk.msra.mxu0 %vm250_vm6, %v4311_v12  ;;  %v1186_v46 = vadd.f32 %v1184_v31, %v1180_v60  ;;  %v6440_v50 = vmov %v6429_v51 }
 0x142   : > { %v1471_v47 = vmul.f32 %v4792_v20, %v6437_v55  ;;  %v1483_v2 = vmul.f32 %v4858_v10, %v6440_v50  ;;  %v1484_v9 = vadd.f32 %v1482_v56, %v1478_v54  ;;  %v6441_v61 = vstv %s6431_s2  ;;  %3897 = vmatpush3.msk.msra.mxu1 %vm250_vm6, %v4311_v12  ;;  %4076 = vmatprep.subr.msk.bf16.mxu0 %vm4327_vm11, %v6427_v14  ;;  %s6459_s2 = sld [smem:[#allocation48_spill]] }
 0x143   : > { %v1494_v59 = vmul.f32 %v6441_v61, %v4912_v3  ;;  %v920_v37 = vadd.f32 %v918_v28, %v914_v33  ;;  %v6443_v29 = vmov %v6432_v25  ;;  %v6444_v17 = vstv %s6433_s3  ;;  %4084 = vmatprep.subr.msk.bf16.mxu1 %vm4327_vm11, %v6427_v14  ;;  %s6460_s3 = sld [smem:[#allocation58_spill]] }
 0x144   : > { %v1489_v13 = vmul.f32 %v4836_v8, %v6443_v29  ;;  %v1735_v31 = vmul.f32 %v6444_v17, %v4810_v7  ;;  %v2501_v16 = vstv %s5000_s6  ;;  %v1192_v36 = vadd.f32 %v1190_v11, %v1186_v46  ;;  %s5198_s6 = sld [smem:[#allocation2 + $0x76]] }
 0x145   : > { %v1490_v0 = vadd.f32 %v1488_v39, %v1484_v9  ;;  %v6446_v18 = vmov %v6441_v61  ;;  %v6448_v56 = vstv %s6439_s10  ;;  %v926_v5 = vadd.f32 %v924_v52, %v920_v37  ;;  %6453 = sst [smem:[#allocation36_spill]] %s5099_s23  ;;  %s6462_s10 = sld [smem:[#allocation59_spill]] }
 0x146   : > { %v1495_v51 = vmul.f32 %v4907_v30, %v6446_v18  ;;  %v1500_v28 = vmul.f32 %v6448_v56, %v4893_v44  ;;  %v6450_v38 = vmov %v6444_v17  ;;  %v1737_v54 = vadd.f32 %v1735_v31, %v4785_v43  ;;  %s5184_s23 = sld [smem:[#allocation2 + $0x6c]] }
 0x147   : > { %v1736_v60 = vmul.f32 %v4792_v20, %v6450_v38  ;;  %v6452_v11 = vstv %s6442_s13  ;;  %v1198_v39 = vadd.f32 %v1196_v42, %v1192_v36  ;;  %v1496_v6 = vadd.f32 %v1494_v59, %v1490_v0  ;;  %3881 = vmatmul.mubr.msk.f32.vlgmr.msra.gmra.mrb[6].mxu0 %vm243_vm0, %v926_v5  ;;  %s6463_s13 = sld [smem:[#allocation60_spill]] }
 0x148   : > { %v1747_v25 = vmul.f32 %v6452_v11, %v4863_v34  ;;  %v6454_v57 = vmov %v6448_v56  ;;  %v6455_v52 = vstv %s6445_s7  ;;  %v1743_v43 = vadd.f32 %v4938_v58, %v1737_v54  ;;  %4078 = vmatpush3.bf16.msk.msra.mxu0 %vm4327_vm11, %v6427_v14 }
 0x149   : > { %v1501_v33 = vmul.f32 %v4886_v49, %v6454_v57  ;;  %v1506_v55 = vmul.f32 %v6455_v52, %v4959_v45  ;;  %v6456_v46 = vmov %v6452_v11  ;;  %v6457_v9 = vstv %s6447_s25  ;;  %3899 = vmatmul.mubr.msk.f32.vlgmr.msra.gmra.mrb[10].mxu1 %vm243_vm0, %v1198_v39  ;;  %s6464_s25 = sld [smem:[#allocation61_spill]]  ;;  %3905 = vmatprep.subr.msk.mxu0 %vm250_vm6, %v4325_v22 }
 0x14a   : > { %v1748_v50 = vmul.f32 %v4858_v10, %v6456_v46  ;;  %v1753_v61 = vmul.f32 %v6457_v9, %v4842_v40  ;;  %v6458_v42 = vmov %v6457_v9  ;;  %v1502_v37 = vadd.f32 %v1500_v28, %v1496_v6  ;;  %4086 = vmatpush3.bf16.msk.msra.mxu1 %vm4327_vm11, %v6427_v14  ;;  %6488 = sst [smem:[#allocation17_spill]] %s5198_s6 }
 0x14b   : > { %v1754_v59 = vmul.f32 %v4836_v8, %v6458_v42  ;;  %v6461_v58 = vstv %s6451_s24  ;;  %v1473_v17 = vadd.f32 %v1471_v47, %v4774_v26  ;;  %v2748_v31 = vstv %s5048_s0  ;;  %3923 = vmatprep.subr.msk.mxu1 %vm250_vm6, %v4325_v22  ;;  %s6468_s24 = sld [smem:[#allocation63_spill]]  ;;  %s6481_s0 = sld [smem:[#allocation54_spill]] }
 0x14c   : > { %v1759_v29 = vmul.f32 %v6461_v58, %v4912_v3  ;;  %v1749_v36 = vadd.f32 %v1747_v25, %v1743_v43  ;;  %v6465_v0 = vmov %v6461_v58  ;;  %v1738_v56 = vadd.f32 %v1736_v60, %v4790_v24  ;;  %3906 = vmatpush3.msk.msra.mxu0 %vm250_vm6, %v4325_v22 }
 0x14d   : > { %v1760_v18 = vmul.f32 %v4907_v30, %v6465_v0  ;;  %v2754_v28 = vstv %s5059_s15  ;;  %v1508_v5 = vadd.f32 %v1506_v55, %v1502_v37  ;;  %v1479_v26 = vadd.f32 %v4891_v53, %v1473_v17  ;;  %4080 = vmatprep.subr.msk.bf16.mxu0 %vm4315_vm5, %v6427_v14  ;;  %s6474_s15 = sld [smem:[#allocation67_spill]] }
 0x14e   : > { %v6466_v47 = vstv %s6459_s2  ;;  %v6467_v54 = vstv %s6460_s3  ;;  %v1755_v25 = vadd.f32 %v1753_v61, %v1749_v36  ;;  %v6469_v39 = vstv %s6462_s10  ;;  %3924 = vmatpush3.msk.msra.mxu1 %vm250_vm6, %v4325_v22  ;;  %s6484_s10 = sld [smem:[#allocation70_spill]] }
 0x14f   : > { %v1420_v38 = vmul.f32 %v6466_v47, %v4730_v35  ;;  %v1424_v11 = vmul.f32 %v6467_v54, %v4810_v7  ;;  %v1765_v24 = vmul.f32 %v6469_v39, %v4893_v44  ;;  %v1744_v60 = vadd.f32 %v4948_v63, %v1738_v56  ;;  %3907 = vmatprep.mubr.msk.f32.mxu0 %vm243_vm0, %v1508_v5 }
 0x150   : > { %v6470_v6 = vstv %s6463_s13  ;;  %v6472_v53 = vstv %s6464_s25  ;;  %v1485_v55 = vadd.f32 %v1483_v2, %v1479_v26  ;;  %v2507_v46 = vstv %s5090_s29  ;;  %4088 = vmatprep.subr.msk.bf16.mxu1 %vm4315_vm5, %v6427_v14  ;;  %s6482_s29 = sld [smem:[#allocation65_spill]]  ;;  %s6486_s25 = sld [smem:[#allocation66_spill]] }
 0x151   : > { %v1430_v57 = vmul.f32 %v6470_v6, %v4758_v21  ;;  %v1771_v52 = vmul.f32 %v6472_v53, %v4959_v45  ;;  %v1426_v43 = vadd.f32 %v1424_v11, %v1420_v38  ;;  %v1761_v9 = vadd.f32 %v1759_v29, %v1755_v25 }
 0x152   : > { %v1750_v63 = vadd.f32 %v1748_v50, %v1744_v60  ;;  %v6473_v61 = vstv %s6468_s24  ;;  %v6475_v58 = vstv %s6445_s7  ;;  %v1491_v17 = vadd.f32 %v1489_v13, %v1485_v55  ;;  %s6479_s7 = sld [smem:[#allocation69_spill]]  ;;  %s6513_s24 = sld [smem:[#allocation74_spill]] }
 0x153   : > { %v1436_v42 = vmul.f32 %v6473_v61, %v4863_v34  ;;  %v1507_v2 = vmul.f32 %v4952_v41, %v6475_v58  ;;  %v1432_v29 = vadd.f32 %v1430_v57, %v1426_v43  ;;  %v6476_v36 = vstv %s6471_s12  ;;  %s5222_s12 = sld [smem:[#allocation2 + $0x6e]] }
 0x154   : > { %v1442_v0 = vmul.f32 %v6476_v36, %v4842_v40  ;;  %v6477_v50 = vmov %v6469_v39  ;;  %v1767_v5 = vadd.f32 %v1765_v24, %v1761_v9  ;;  %v6478_v26 = vmov %v6472_v53 }
 0x155   : > { %v1766_v56 = vmul.f32 %v4886_v49, %v6477_v50  ;;  %v1772_v47 = vmul.f32 %v4952_v41, %v6478_v26  ;;  %v1756_v38 = vadd.f32 %v1754_v59, %v1750_v63  ;;  %v1497_v13 = vadd.f32 %v1495_v51, %v1491_v17 }
 0x156   : > { %v6480_v54 = vstv %s6459_s2  ;;  %v1438_v25 = vadd.f32 %v1436_v42, %v1432_v29  ;;  %v6483_v39 = vstv %s6474_s15  ;;  %v1773_v6 = vadd.f32 %v1771_v52, %v1767_v5  ;;  %s6490_s2 = sld [smem:[#allocation71_spill]] }
 0x157   : > { %v1421_v11 = vmul.f32 %v4724_v27, %v6480_v54  ;;  %v1448_v60 = vmul.f32 %v6483_v39, %v4912_v3  ;;  %v1762_v24 = vadd.f32 %v1760_v18, %v1756_v38  ;;  %v6485_v57 = vstv %s6460_s3  ;;  %s6497_s3 = sld [smem:[#allocation73_spill]] }
 0x158   : > { %v1425_v59 = vmul.f32 %v4792_v20, %v6485_v57  ;;  %v6487_v53 = vstv %s6463_s13  ;;  %v1503_v51 = vadd.f32 %v1501_v33, %v1497_v13  ;;  %v6489_v43 = vmov %v6473_v61  ;;  %3925 = vmatprep.mubr.msk.f32.mxu1 %vm243_vm0, %v1773_v6  ;;  %s6501_s13 = sld [smem:[#allocation75_spill]] }
 0x159   : > { %v1431_v55 = vmul.f32 %v4744_v32, %v6487_v53  ;;  %v1437_v9 = vmul.f32 %v4858_v10, %v6489_v43  ;;  %v1444_v63 = vadd.f32 %v1442_v0, %v1438_v25  ;;  %v6491_v52 = vstv %s6479_s7  ;;  %6498 = sst [smem:[#allocation18_spill]] %s5222_s12  ;;  %s6514_s7 = sld [smem:[#allocation78_spill]] }
 0x15a   : > { %v1454_v61 = vmul.f32 %v6491_v52, %v4893_v44  ;;  %v1768_v18 = vadd.f32 %v1766_v56, %v1762_v24  ;;  %v6492_v42 = vmov %v6476_v36  ;;  %v6493_v17 = vstv %s6481_s0  ;;  %s6510_s0 = sld [smem:[#allocation72_spill]] }
 0x15b   : > { %v1443_v58 = vmul.f32 %v4836_v8, %v6492_v42  ;;  %v1685_v33 = vmul.f32 %v6493_v17, %v4730_v35  ;;  %v6494_v29 = vstv %s6482_s29  ;;  %v1509_v50 = vadd.f32 %v1507_v2, %v1503_v51  ;;  %s6508_s29 = sld [smem:[#allocation62_spill]] }
 0x15c   : > { %v1689_v36 = vmul.f32 %v6494_v29, %v4810_v7  ;;  %v1450_v0 = vadd.f32 %v1448_v60, %v1444_v63  ;;  %v6495_v5 = vstv %s6484_s10  ;;  %v6496_v38 = vstv %s6486_s25  ;;  %s6517_s10 = sld [smem:[#allocation79_spill]]  ;;  %s6521_s25 = sld [smem:[#allocation80_spill]] }
 0x15d   : > { %v1460_v26 = vmul.f32 %v6495_v5, %v4959_v45  ;;  %v1695_v56 = vmul.f32 %v6496_v38, %v4758_v21  ;;  %v1774_v13 = vadd.f32 %v1772_v47, %v1768_v18  ;;  %v6499_v54 = vmov %v6494_v29  ;;  %3908 = vmatmul.mubr.msk.f32.vlgmr.msra.gmra.mrb[8].mxu0 %vm243_vm0, %v1509_v50 }
 0x15e   : > { %v1690_v25 = vmul.f32 %v4792_v20, %v6499_v54  ;;  %v1691_v39 = vadd.f32 %v1689_v36, %v1685_v33  ;;  %v6500_v2 = vstv %s6490_s2  ;;  %v6502_v6 = vstv %s6474_s15  ;;  %4082 = vmatpush3.bf16.msk.msra.mxu0 %vm4315_vm5, %v6427_v14  ;;  %s6507_s15 = sld [smem:[#allocation77_spill]]  ;;  %s6525_s2 = sld [smem:[#allocation83_spill]] }
 0x15f   : > { %v1701_v60 = vmul.f32 %v6500_v2, %v4863_v34  ;;  %v1449_v24 = vmul.f32 %v4907_v30, %v6502_v6  ;;  %v6503_v57 = vmov %v6491_v52  ;;  %v1456_v51 = vadd.f32 %v1454_v61, %v1450_v0  ;;  %3926 = vmatmul.mubr.msk.f32.vlgmr.msra.gmra.mrb[12].mxu1 %vm243_vm0, %v1774_v13  ;;  %3914 = vmatprep.subr.msk.mxu0 %vm250_vm6, %v4311_v12 }
 0x160   : > { %v5237_v53 = vmul.f32 %v4886_v49, %v6503_v57  ;;  %v6504_v47 = vmov %v6493_v17  ;;  %v6505_v63 = vmov %v6496_v38  ;;  %v1697_v18 = vadd.f32 %v1695_v56, %v1691_v39  ;;  %4090 = vmatpush3.bf16.msk.msra.mxu1 %vm4315_vm5, %v6427_v14 }
 0x161   : > { %v1686_v43 = vmul.f32 %v4724_v27, %v6504_v47  ;;  %v1696_v52 = vmul.f32 %v4744_v32, %v6505_v63  ;;  %v6506_v42 = vstv %s6497_s3  ;;  %v2513_v61 = vstv %s5184_s23  ;;  %3932 = vmatprep.subr.msk.mxu1 %vm250_vm6, %v4311_v12  ;;  %s6529_s3 = sld [smem:[#allocation68_spill]] }
 0x162   : > { %v1707_v17 = vmul.f32 %v6506_v42, %v4842_v40  ;;  %v6509_v33 = vmov %v6495_v5  ;;  %v1462_v36 = vadd.f32 %v1460_v26, %v1456_v51  ;;  %v6511_v50 = vmov %v6500_v2  ;;  %3915 = vmatpush3.msk.msra.mxu0 %vm250_vm6, %v4311_v12 }
 0x163   : > { %v5256_v29 = vmul.f32 %v4952_v41, %v6509_v33  ;;  %v1702_v0 = vmul.f32 %v4858_v10, %v6511_v50  ;;  %v6512_v5 = vstv %s6501_s13  ;;  %v1703_v56 = vadd.f32 %v1701_v60, %v1697_v18  ;;  %4092 = vmatprep.subr.msk.bf16.mxu0 %vm4327_vm11, %v6427_v14  ;;  %s6531_s13 = sld [smem:[#allocation81_spill]] }
 0x164   : > { %v1713_v38 = vmul.f32 %v6512_v5, %v4912_v3  ;;  %v1427_v26 = vadd.f32 %v1425_v59, %v1421_v11  ;;  %v1692_v13 = vadd.f32 %v1690_v25, %v1686_v43  ;;  %v2760_v54 = vstv %s5198_s6  ;;  %3916 = vmatprep.mubr.msk.f32.mxu0 %vm243_vm0, %v1462_v36  ;;  %3933 = vmatpush3.msk.msra.mxu1 %vm250_vm6, %v4311_v12  ;;  %s5331_s6 = sld [smem:[#allocation2 + $0x7a]] }
 0x165   : > { %v6515_v39 = vmov %v6506_v42  ;;  %v6516_v6 = vstv %s6507_s15  ;;  %v6518_v57 = vstv %s6508_s29  ;;  %v6519_v47 = vstv %s6510_s0  ;;  %4100 = vmatprep.subr.msk.bf16.mxu1 %vm4327_vm11, %v6427_v14  ;;  %s5320_s15 = sld [smem:[#allocation2 + $0x78]] }
 0x166   : > { %v1708_v2 = vmul.f32 %v4836_v8, %v6515_v39  ;;  %v1719_v60 = vmul.f32 %v6516_v6, %v4893_v44  ;;  %v1996_v51 = vmul.f32 %v6518_v57, %v4730_v35  ;;  %v2000_v63 = vmul.f32 %v6519_v47, %v4810_v7 }
 0x167   : > { %v1709_v11 = vadd.f32 %v1707_v17, %v1703_v56  ;;  %v1433_v59 = vadd.f32 %v1431_v55, %v1427_v26  ;;  %v1698_v25 = vadd.f32 %v1696_v52, %v1692_v13  ;;  %v6520_v43 = vstv %s6513_s24 }
 0x168   : > { %v2006_v18 = vmul.f32 %v6520_v43, %v4758_v21  ;;  %v6522_v42 = vmov %v6512_v5  ;;  %v2002_v17 = vadd.f32 %v2000_v63, %v1996_v51  ;;  %v6523_v36 = vstv %s6514_s7 }
 0x169   : > { %v1714_v33 = vmul.f32 %v4907_v30, %v6522_v42  ;;  %v2012_v55 = vmul.f32 %v6523_v36, %v4863_v34  ;;  %v2519_v52 = vstv %s5222_s12  ;;  %v1715_v50 = vadd.f32 %v1713_v38, %v1709_v11  ;;  %s6537_s12 = sld [smem:[#allocation86_spill]] }
 0x16a   : > { %v6524_v5 = vstv %s6517_s10  ;;  %v1439_v26 = vadd.f32 %v1437_v9, %v1433_v59  ;;  %v1704_v13 = vadd.f32 %v1702_v0, %v1698_v25  ;;  %v6526_v39 = vmov %v6516_v6  ;;  %s6535_s10 = sld [smem:[#allocation82_spill]] }
 0x16b   : > { %v1725_v56 = vmul.f32 %v6524_v5, %v4959_v45  ;;  %v1720_v6 = vmul.f32 %v4886_v49, %v6526_v39  ;;  %v6527_v57 = vmov %v6524_v5  ;;  %v2008_v47 = vadd.f32 %v2006_v18, %v2002_v17 }
 0x16c   : > { %v1726_v51 = vmul.f32 %v4952_v41, %v6527_v57  ;;  %v6528_v38 = vstv %s6521_s25  ;;  %v1721_v11 = vadd.f32 %v1719_v60, %v1715_v50  ;;  %v1445_v43 = vadd.f32 %v1443_v58, %v1439_v26 }
 0x16d   : > { %v2018_v63 = vmul.f32 %v6528_v38, %v4842_v40  ;;  %v1710_v42 = vadd.f32 %v1708_v2, %v1704_v13  ;;  %v6530_v36 = vstv %s6508_s29  ;;  %v6532_v0 = vstv %s6510_s0  ;;  %s6536_s29 = sld [smem:[#allocation87_spill]]  ;;  %s5336_s0 = sld [smem:[#allocation2 + $0x7c]] }
 0x16e   : > { %v1997_v9 = vmul.f32 %v4724_v27, %v6530_v36  ;;  %v2001_v59 = vmul.f32 %v4792_v20, %v6532_v0  ;;  %v6533_v25 = vstv %s6513_s24  ;;  %v2014_v17 = vadd.f32 %v2012_v55, %v2008_v47  ;;  %s6542_s24 = sld [smem:[#allocation88_spill]] }
 0x16f   : > { %v2007_v18 = vmul.f32 %v4744_v32, %v6533_v25  ;;  %v6534_v60 = vstv %s6525_s2  ;;  %v1727_v2 = vadd.f32 %v1725_v56, %v1721_v11  ;;  %v1451_v50 = vadd.f32 %v1449_v24, %v1445_v43 }
 0x170   : > { %v2024_v58 = vmul.f32 %v6534_v60, %v4912_v3  ;;  %v1716_v5 = vadd.f32 %v1714_v33, %v1710_v42  ;;  %v6538_v26 = vstv %s6514_s7  ;;  %v2020_v39 = vadd.f32 %v2018_v63, %v2014_v17  ;;  %s5361_s7 = sld [smem:[#allocation2 + $0x7e]] }
 0x171   : > { %v2013_v13 = vmul.f32 %v4858_v10, %v6538_v26  ;;  %v6539_v57 = vstv %s6346_s1  ;;  %v6540_v47 = vstv %s6529_s3  ;;  %v6541_v36 = vstv %s6531_s13  ;;  %3934 = vmatprep.mubr.msk.f32.mxu1 %vm243_vm0, %v1727_v2  ;;  %s6571_s13 = sld [smem:[#allocation84_spill]] }
 0x172   : > { %v2030_v55 = vmul.f32 %v6539_v57, %v4893_v44  ;;  %v2261_v38 = vmul.f32 %v6540_v47, %v4730_v35  ;;  %v2265_v24 = vmul.f32 %v6541_v36, %v4810_v7  ;;  %v1457_v33 = vadd.f32 %v5237_v53, %v1451_v50 }
 0x173   : > { %v1722_v56 = vadd.f32 %v1720_v6, %v1716_v5  ;;  %v6543_v11 = vstv %s6521_s25  ;;  %v6544_v43 = vstv %s6535_s10  ;;  %v2026_v0 = vadd.f32 %v2024_v58, %v2020_v39  ;;  %s6549_s25 = sld [smem:[#allocation89_spill]]  ;;  %s5458_s10 = sld [smem:[#allocation2 + $0x83]] }
 0x174   : > { %v2019_v63 = vmul.f32 %v4836_v8, %v6543_v11  ;;  %v2271_v42 = vmul.f32 %v6544_v43, %v4758_v21  ;;  %v6545_v25 = vstv %s6536_s29  ;;  %v2267_v60 = vadd.f32 %v2265_v24, %v2261_v38  ;;  %s6587_s29 = sld [smem:[#allocation100_spill]] }
 0x175   : > { %v2036_v17 = vmul.f32 %v6545_v25, %v4959_v45  ;;  %v6546_v2 = vstv %s6537_s12  ;;  %v1463_v6 = vadd.f32 %v5256_v29, %v1457_v33  ;;  %v1728_v50 = vadd.f32 %v1726_v51, %v1722_v56 }
 0x176   : > { %v2277_v53 = vmul.f32 %v6546_v2, %v4863_v34  ;;  %v6547_v5 = vstv %s6525_s2  ;;  %v6548_v57 = vmov %v6541_v36  ;;  %v6550_v39 = vstv %s6346_s1  ;;  %s6554_s1 = sld [smem:[#allocation76_spill]]  ;;  %s6555_s2 = sld [smem:[#allocation90_spill]] }
 0x177   : > { %v2025_v26 = vmul.f32 %v4907_v30, %v6547_v5  ;;  %v2266_v58 = vmul.f32 %v4792_v20, %v6548_v57  ;;  %v5373_v47 = vmul.f32 %v4886_v49, %v6550_v39  ;;  %v2032_v38 = vadd.f32 %v2030_v55, %v2026_v0  ;;  %3917 = vmatmul.mubr.msk.f32.vlgmr.msra.gmra.mrb[8].mxu0 %vm243_vm0, %v1463_v6 }
 0x178   : > { %v2273_v36 = vadd.f32 %v2271_v42, %v2267_v60  ;;  %v6551_v24 = vstv %s6542_s24  ;;  %3935 = vmatmul.mubr.msk.f32.vlgmr.msra.gmra.mrb[12].mxu1 %vm243_vm0, %v1728_v50  ;;  %v6552_v29 = vmov %v6545_v25  ;;  %v6553_v33 = vstv %s6529_s3  ;;  %4094 = vmatpush3.bf16.msk.msra.mxu0 %vm4327_vm11, %v6427_v14  ;;  %s6557_s3 = sld [smem:[#allocation91_spill]] }
 0x179   : > { %v2283_v11 = vmul.f32 %v6551_v24, %v4842_v40  ;;  %v5383_v51 = vmul.f32 %v4952_v41, %v6552_v29  ;;  %v2262_v56 = vmul.f32 %v4724_v27, %v6553_v33  ;;  %v2272_v25 = vmul.f32 %v4744_v32, %v6544_v43  ;;  %4102 = vmatpush3.bf16.msk.msra.mxu1 %vm4327_vm11, %v6427_v14 }
 0x17a   : > { %v2766_v55 = vstv %s5320_s15  ;;  %v2038_v42 = vadd.f32 %v2036_v17, %v2032_v38  ;;  %v2279_v0 = vadd.f32 %v2277_v53, %v2273_v36  ;;  %v6556_v60 = vstv %s6549_s25  ;;  %3941 = vmatprep.subr.msk.mxu0 %vm250_vm6, %v4325_v22  ;;  %3959 = vmatprep.subr.msk.mxu1 %vm250_vm6, %v4325_v22  ;;  %s6661_s15 = sld [smem:[#allocation36_spill]] }
 0x17b   : > { %v2289_v2 = vmul.f32 %v6556_v60, %v4912_v3  ;;  %v2772_v6 = vstv %s5331_s6  ;;  %v6558_v50 = vstv %s6537_s12  ;;  %v2003_v57 = vadd.f32 %v2001_v59, %v1997_v9  ;;  %s6564_s12 = sld [smem:[#allocation94_spill]]  ;;  %s5869_s6 = sld [smem:[#allocation2 + $0x8c]] }
 0x17c   : > { %v2278_v5 = vmul.f32 %v4858_v10, %v6558_v50  ;;  %v2268_v39 = vadd.f32 %v2266_v58, %v2262_v56  ;;  %v2778_v17 = vstv %s5336_s0  ;;  %3943 = vmatprep.mubr.msk.f32.mxu0 %vm243_vm0, %v2038_v42  ;;  %v2285_v53 = vadd.f32 %v2283_v11, %v2279_v0  ;;  %3942 = vmatpush3.msk.msra.mxu0 %vm250_vm6, %v4325_v22  ;;  %s5883_s0 = sld [smem:[#allocation2 + $0x8e]] }
 0x17d   : > { %v6559_v38 = vstv %s4588_s18  ;;  %v6560_v24 = vstv %s6554_s1  ;;  %v6561_v33 = vstv %s6555_s2  ;;  %v6562_v60 = vstv %s6542_s24  ;;  %3960 = vmatpush3.msk.msra.mxu1 %vm250_vm6, %v4325_v22  ;;  %4096 = vmatprep.subr.msk.bf16.mxu0 %vm4315_vm5, %v6427_v14  ;;  %s5506_s24 = sld [smem:[#allocation2 + $0x89]]  ;;  %s5604_s1 = sld [smem:[#allocation2 + $0x8d]] }
 0x17e   : > { %v2295_v36 = vmul.f32 %v6559_v38, %v4893_v44  ;;  %v1950_v29 = vmul.f32 %v6560_v24, %v4730_v35  ;;  %v1954_v43 = vmul.f32 %v6561_v33, %v4810_v7  ;;  %v2284_v9 = vmul.f32 %v4836_v8, %v6562_v60  ;;  %4104 = vmatprep.subr.msk.bf16.mxu1 %vm4315_vm5, %v6427_v14 }
 0x17f   : > { %v2009_v59 = vadd.f32 %v2007_v18, %v2003_v57  ;;  %v2274_v58 = vadd.f32 %v2272_v25, %v2268_v39  ;;  %v6563_v56 = vstv %s6557_s3  ;;  %v2291_v42 = vadd.f32 %v2289_v2, %v2285_v53 }
 0x180   : > { %v1960_v11 = vmul.f32 %v6563_v56, %v4758_v21  ;;  %v6565_v0 = vstv %s6358_s19  ;;  %v1956_v38 = vadd.f32 %v1954_v43, %v1950_v29  ;;  %v6566_v18 = vstv %s6549_s25  ;;  %s5596_s25 = sld [smem:[#allocation2 + $0x8b]] }
 0x181   : > { %v2301_v50 = vmul.f32 %v6565_v0, %v4959_v45  ;;  %v2290_v25 = vmul.f32 %v4907_v30, %v6566_v18  ;;  %v2015_v57 = vadd.f32 %v2013_v13, %v2009_v59  ;;  %v2280_v2 = vadd.f32 %v2278_v5, %v2274_v58 }
 0x182   : > { %v6567_v39 = vstv %s4596_s20  ;;  %v6568_v33 = vstv %s4588_s18  ;;  %v2297_v29 = vadd.f32 %v2295_v36, %v2291_v42  ;;  %v1962_v43 = vadd.f32 %v1960_v11, %v1956_v38  ;;  %s6573_s18 = sld [smem:[#allocation95_spill]] }
 0x183   : > { %v1966_v53 = vmul.f32 %v6567_v39, %v4863_v34  ;;  %v2296_v60 = vmul.f32 %v4886_v49, %v6568_v33  ;;  %v6569_v56 = vstv %s6564_s12  ;;  %v6570_v13 = vstv %s6358_s19  ;;  %s5472_s19 = sld [smem:[#allocation2 + $0x85]] }
 0x184   : > { %v1972_v0 = vmul.f32 %v6569_v56, %v4842_v40  ;;  %v2302_v5 = vmul.f32 %v4952_v41, %v6570_v13  ;;  %v2021_v59 = vadd.f32 %v2019_v63, %v2015_v57  ;;  %v2286_v58 = vadd.f32 %v2284_v9, %v2280_v2 }
 0x185   : > { %v6572_v18 = vmov %v6560_v24  ;;  %v2303_v11 = vadd.f32 %v2301_v50, %v2297_v29  ;;  %v6574_v42 = vstv %s6555_s2  ;;  %v1968_v39 = vadd.f32 %v1966_v53, %v1962_v43  ;;  %s6616_s2 = sld [smem:[#allocation97_spill]] }
 0x186   : > { %v1951_v36 = vmul.f32 %v4724_v27, %v6572_v18  ;;  %v1955_v38 = vmul.f32 %v4792_v20, %v6574_v42  ;;  %v6575_v33 = vstv %s6362_s26  ;;  %v2027_v13 = vadd.f32 %v2025_v26, %v2021_v59 }
 0x187   : > { %v1978_v56 = vmul.f32 %v6575_v33, %v4912_v3  ;;  %v2292_v63 = vadd.f32 %v2290_v25, %v2286_v58  ;;  %v6576_v9 = vstv %s6557_s3  ;;  %v6577_v2 = vstv %s4596_s20  ;;  %3961 = vmatprep.mubr.msk.f32.mxu1 %vm243_vm0, %v2303_v11  ;;  %s5484_s20 = sld [smem:[#allocation2 + $0x87]]  ;;  %s6618_s3 = sld [smem:[#allocation108_spill]] }
 0x188   : > { %v1961_v57 = vmul.f32 %v4744_v32, %v6576_v9  ;;  %v1967_v18 = vmul.f32 %v4858_v10, %v6577_v2  ;;  %v1974_v50 = vadd.f32 %v1972_v0, %v1968_v39  ;;  %v6578_v53 = vstv %s4620_s4 }
 0x189   : > { %v1984_v29 = vmul.f32 %v6578_v53, %v4893_v44  ;;  %v6579_v26 = vstv %s6571_s13  ;;  %v6580_v43 = vstv %s6573_s18  ;;  %v2033_v58 = vadd.f32 %v5373_v47, %v2027_v13 }
 0x18a   : > { %v2215_v25 = vmul.f32 %v6579_v26, %v4730_v35  ;;  %v2219_v59 = vmul.f32 %v6580_v43, %v4810_v7  ;;  %v2298_v42 = vadd.f32 %v2296_v60, %v2292_v63  ;;  %v6581_v11 = vstv %s6564_s12  ;;  %s5637_s12 = sld [smem:[#allocation2 + $0x82]] }
 0x18b   : > { %v1973_v0 = vmul.f32 %v4836_v8, %v6581_v11  ;;  %v6582_v39 = vstv %s6364_s5  ;;  %v1980_v9 = vadd.f32 %v1978_v56, %v1974_v50  ;;  %v6583_v2 = vstv %s4628_s30 }
 0x18c   : > { %v2225_v33 = vmul.f32 %v6582_v39, %v4758_v21  ;;  %v1990_v53 = vmul.f32 %v6583_v2, %v4959_v45  ;;  %v2221_v26 = vadd.f32 %v2219_v59, %v2215_v25  ;;  %v6584_v43 = vstv %s6368_s9 }
 0x18d   : > { %v2231_v47 = vmul.f32 %v6584_v43, %v4863_v34  ;;  %v2039_v60 = vadd.f32 %v5383_v51, %v2033_v58  ;;  %v2304_v13 = vadd.f32 %v2302_v5, %v2298_v42  ;;  %v6585_v63 = vstv %s6362_s26  ;;  %s6612_s26 = sld [smem:[#allocation85_spill]] }
 0x18e   : > { %v1979_v11 = vmul.f32 %v4907_v30, %v6585_v63  ;;  %v6586_v39 = vstv %s6573_s18  ;;  %v6588_v50 = vstv %s4620_s4  ;;  %v1986_v59 = vadd.f32 %v1984_v29, %v1980_v9  ;;  %s6593_s4 = sld [smem:[#allocation92_spill]]  ;;  %s6636_s18 = sld [smem:[#allocation101_spill]] }
 0x18f   : > { %v2220_v56 = vmul.f32 %v4792_v20, %v6586_v39  ;;  %v5511_v25 = vmul.f32 %v4886_v49, %v6588_v50  ;;  %v2227_v2 = vadd.f32 %v2225_v33, %v2221_v26  ;;  %v6589_v51 = vstv %s4630_s11  ;;  %3944 = vmatmul.mubr.msk.f32.vlgmr.msra.gmra.mrb[10].mxu0 %vm243_vm0, %v2039_v60  ;;  %3962 = vmatmul.mubr.msk.f32.vlgmr.msra.gmra.mrb[14].mxu1 %vm243_vm0, %v2304_v13 }
 0x190   : > { %v2237_v5 = vmul.f32 %v6589_v51, %v4842_v40  ;;  %v6590_v58 = vstv %s4628_s30  ;;  %v6591_v43 = vstv %s6571_s13  ;;  %v6592_v39 = vstv %s6364_s5  ;;  %4098 = vmatpush3.bf16.msk.msra.mxu0 %vm4315_vm5, %v6427_v14  ;;  %4106 = vmatpush3.bf16.msk.msra.mxu1 %vm4315_vm5, %v6427_v14  ;;  %s6597_s30 = sld [smem:[#allocation103_spill]]  ;;  %s6602_s5 = sld [smem:[#allocation104_spill]] }
 0x191   : > { %v5521_v42 = vmul.f32 %v4952_v41, %v6590_v58  ;;  %v2216_v63 = vmul.f32 %v4724_v27, %v6591_v43  ;;  %v2226_v50 = vmul.f32 %v4744_v32, %v6592_v39  ;;  %v3059_v29 = vstv %s5458_s10  ;;  %3950 = vmatprep.subr.msk.mxu0 %vm250_vm6, %v4311_v12  ;;  %3968 = vmatprep.subr.msk.mxu1 %vm250_vm6, %v4311_v12  ;;  %s6630_s13 = sld [smem:[#allocation99_spill]]  ;;  %s1141_s10 = sld [smem:[#allocation4]] }
 0x192   : > { %v1992_v33 = vadd.f32 %v1990_v53, %v1986_v59  ;;  %v6594_v9 = vstv %s6368_s9  ;;  %v2233_v60 = vadd.f32 %v2231_v47, %v2227_v2  ;;  %v6595_v13 = vstv %s6587_s29  ;;  %s6606_s9 = sld [smem:[#allocation106_spill]] }
 0x193   : > { %v2232_v26 = vmul.f32 %v4858_v10, %v6594_v9  ;;  %v2243_v51 = vmul.f32 %v6595_v13, %v4912_v3  ;;  %v6596_v58 = vstv %s4652_s22  ;;  %v1957_v53 = vadd.f32 %v1955_v38, %v1951_v36 }
 0x194   : > { %v2249_v43 = vmul.f32 %v6596_v58, %v4893_v44  ;;  %v2222_v59 = vadd.f32 %v2220_v56, %v2216_v63  ;;  %3952 = vmatprep.mubr.msk.f32.mxu0 %vm243_vm0, %v1992_v33  ;;  %v2239_v47 = vadd.f32 %v2237_v5, %v2233_v60  ;;  %v6598_v2 = vstv %s6593_s4  ;;  %3951 = vmatpush3.msk.msra.mxu0 %vm250_vm6, %v4311_v12 }
 0x195   : > { %v2526_v9 = vmul.f32 %v6598_v2, %v4730_v35  ;;  %v6599_v13 = vstv %s4638_s28  ;;  %v6600_v24 = vstv %s4630_s11  ;;  %v1963_v38 = vadd.f32 %v1961_v57, %v1957_v53  ;;  %3969 = vmatpush3.msk.msra.mxu1 %vm250_vm6, %v4311_v12  ;;  %4108 = vmatprep.subr.msk.bf16.mxu0 %vm4327_vm11, %v6427_v14  ;;  %s6609_s11 = sld [smem:[#allocation93_spill]] }
 0x196   : > { %v2530_v58 = vmul.f32 %v6599_v13, %v4810_v7  ;;  %v2238_v36 = vmul.f32 %v4836_v8, %v6600_v24  ;;  %v2228_v56 = vadd.f32 %v2226_v50, %v2222_v59  ;;  %v6601_v63 = vstv %s4644_s16  ;;  %4116 = vmatprep.subr.msk.bf16.mxu1 %vm4327_vm11, %v6427_v14 }
 0x197   : > { %v2536_v5 = vmul.f32 %v6601_v63, %v4758_v21  ;;  %v2245_v33 = vadd.f32 %v2243_v51, %v2239_v47  ;;  %v6603_v60 = vstv %s6371_s14  ;;  %v6604_v37 = vstv %s6597_s30  ;;  %s6615_s14 = sld [smem:[#allocation105_spill]] }
 0x198   : > { %v2255_v2 = vmul.f32 %v6603_v60, %v4959_v45  ;;  %v2532_v13 = vadd.f32 %v2530_v58, %v2526_v9  ;;  %v2542_v39 = vmul.f32 %v6604_v37, %v4863_v34  ;;  %v6605_v24 = vstv %s6587_s29  ;;  %s6637_s29 = sld [smem:[#allocation109_spill]] }
 0x199   : > { %v2244_v57 = vmul.f32 %v4907_v30, %v6605_v24  ;;  %v1969_v50 = vadd.f32 %v1967_v18, %v1963_v38  ;;  %v2234_v51 = vadd.f32 %v2232_v26, %v2228_v56  ;;  %v6607_v59 = vstv %s4652_s22  ;;  %s6611_s22 = sld [smem:[#allocation98_spill]] }
 0x19a   : > { %v2250_v47 = vmul.f32 %v4886_v49, %v6607_v59  ;;  %v2251_v9 = vadd.f32 %v2249_v43, %v2245_v33  ;;  %v2538_v37 = vadd.f32 %v2536_v5, %v2532_v13  ;;  %v6608_v58 = vstv %s6602_s5 }
 0x19b   : > { %v2548_v63 = vmul.f32 %v6608_v58, %v4842_v40  ;;  %v2256_v18 = vmul.f32 %v4952_v41, %v6603_v60  ;;  %v1975_v38 = vadd.f32 %v1973_v0, %v1969_v50  ;;  %v2240_v26 = vadd.f32 %v2238_v36, %v2234_v51 }
 0x19c   : > { %v6610_v56 = vstv %s6593_s4  ;;  %v2257_v33 = vadd.f32 %v2255_v2, %v2251_v9  ;;  %v6613_v24 = vstv %s4638_s28  ;;  %v2544_v13 = vadd.f32 %v2542_v39, %v2538_v37  ;;  %s5612_s28 = sld [smem:[#allocation2 + $0x8f]] }
 0x19d   : > { %v2527_v43 = vmul.f32 %v4724_v27, %v6610_v56  ;;  %v2531_v5 = vmul.f32 %v4792_v20, %v6613_v24  ;;  %v6614_v59 = vstv %s6606_s9  ;;  %v1981_v0 = vadd.f32 %v1979_v11, %v1975_v38 }
 0x19e   : > { %v2554_v58 = vmul.f32 %v6614_v59, %v4912_v3  ;;  %v2246_v36 = vadd.f32 %v2244_v57, %v2240_v26  ;;  %v6617_v50 = vstv %s4644_s16  ;;  %v6619_v60 = vstv %s6597_s30  ;;  %3970 = vmatprep.mubr.msk.f32.mxu1 %vm243_vm0, %v2257_v33  ;;  %s6623_s16 = sld [smem:[#allocation96_spill]] }
 0x19f   : > { %v2537_v51 = vmul.f32 %v4744_v32, %v6617_v50  ;;  %v2543_v2 = vmul.f32 %v4858_v10, %v6619_v60  ;;  %v2550_v39 = vadd.f32 %v2548_v63, %v2544_v13  ;;  %v6620_v9 = vstv %s6609_s11 }
 0x1a0   : > { %v2560_v37 = vmul.f32 %v6620_v9, %v4893_v44  ;;  %v6621_v11 = vstv %s6611_s22  ;;  %v6622_v38 = vstv %s6612_s26  ;;  %v1987_v56 = vadd.f32 %v5511_v25, %v1981_v0 }
 0x1a1   : > { %v2791_v57 = vmul.f32 %v6621_v11, %v4730_v35  ;;  %v2795_v26 = vmul.f32 %v6622_v38, %v4810_v7  ;;  %v2252_v24 = vadd.f32 %v2250_v47, %v2246_v36  ;;  %v6624_v59 = vstv %s6602_s5  ;;  %s6646_s5 = sld [smem:[#allocation107_spill]] }
 0x1a2   : > { %v2549_v33 = vmul.f32 %v4836_v8, %v6624_v59  ;;  %v6625_v63 = vstv %s6615_s14  ;;  %v2556_v50 = vadd.f32 %v2554_v58, %v2550_v39  ;;  %v6626_v60 = vstv %s6616_s2 }
 0x1a3   : > { %v2801_v13 = vmul.f32 %v6625_v63, %v4758_v21  ;;  %v2566_v9 = vmul.f32 %v6626_v60, %v4959_v45  ;;  %v2797_v11 = vadd.f32 %v2795_v26, %v2791_v57  ;;  %v6627_v38 = vstv %s6618_s3 }
 0x1a4   : > { %v2807_v25 = vmul.f32 %v6627_v38, %v4863_v34  ;;  %v1993_v47 = vadd.f32 %v5521_v42, %v1987_v56  ;;  %v2258_v0 = vadd.f32 %v2256_v18, %v2252_v24  ;;  %v6628_v36 = vstv %s6606_s9  ;;  %s5734_s9 = sld [smem:[#allocation2 + $0x84]] }
 0x1a5   : > { %v2555_v59 = vmul.f32 %v4907_v30, %v6628_v36  ;;  %v6629_v63 = vstv %s6612_s26  ;;  %v6631_v39 = vstv %s6609_s11  ;;  %v2562_v26 = vadd.f32 %v2560_v37, %v2556_v50  ;;  %s5748_s26 = sld [smem:[#allocation2 + $0x86]] }
 0x1a6   : > { %v2796_v58 = vmul.f32 %v4792_v20, %v6629_v63  ;;  %v5649_v57 = vmul.f32 %v4886_v49, %v6631_v39  ;;  %v2803_v60 = vadd.f32 %v2801_v13, %v2797_v11  ;;  %v6632_v38 = vstv %s6623_s16  ;;  %3953 = vmatmul.mubr.msk.f32.vlgmr.msra.gmra.mrb[10].mxu0 %vm243_vm0, %v1993_v47  ;;  %3971 = vmatmul.mubr.msk.f32.vlgmr.msra.gmra.mrb[14].mxu1 %vm243_vm0, %v2258_v0 }
 0x1a7   : > { %v2813_v53 = vmul.f32 %v6632_v38, %v4842_v40  ;;  %v6633_v42 = vstv %s6616_s2  ;;  %v6634_v56 = vstv %s6611_s22  ;;  %v6635_v36 = vstv %s6615_s14  ;;  %4110 = vmatpush3.bf16.msk.msra.mxu0 %vm4327_vm11, %v6427_v14  ;;  %4118 = vmatpush3.bf16.msk.msra.mxu1 %vm4327_vm11, %v6427_v14  ;;  %s6670_s14 = sld [smem:[#allocation113_spill]]  ;;  %s3484_s2 = sld [smem:[#allocation4 + $0x2]] }
 0x1a8   : > { %v5659_v18 = vmul.f32 %v4952_v41, %v6633_v42  ;;  %v2792_v24 = vmul.f32 %v4724_v27, %v6634_v56  ;;  %v2802_v63 = vmul.f32 %v4744_v32, %v6635_v36  ;;  %v3083_v37 = vstv %s5596_s25  ;;  %3977 = vmatprep.subr.msk.mxu0 %vm250_vm6, %v4325_v22  ;;  %3995 = vmatprep.subr.msk.mxu1 %vm250_vm6, %v4325_v22 }
 0x1a9   : > { %v2568_v13 = vadd.f32 %v2566_v9, %v2562_v26  ;;  %v2809_v50 = vadd.f32 %v2807_v25, %v2803_v60  ;;  %v6638_v11 = vstv %s6630_s13  ;;  %v6639_v39 = vstv %s6618_s3  ;;  %s3513_s3 = sld [smem:[#allocation4 + $0x3]] }
 0x1aa   : > { %v2819_v47 = vmul.f32 %v6638_v11, %v4912_v3  ;;  %v2808_v38 = vmul.f32 %v4858_v10, %v6639_v39  ;;  %v2533_v42 = vadd.f32 %v2531_v5, %v2527_v43  ;;  %v2798_v56 = vadd.f32 %v2796_v58, %v2792_v24 }
 0x1ab   : > { %v3095_v9 = vstv %s5612_s28  ;;  %3979 = vmatprep.mubr.msk.f32.mxu0 %vm243_vm0, %v2568_v13  ;;  %v2815_v25 = vadd.f32 %v2813_v53, %v2809_v50  ;;  %v2825_v26 = vmul.f32 %v2824_v4, %v4893_v44  ;;  %v6640_v60 = vstv %s6636_s18  ;;  %3978 = vmatpush3.msk.msra.mxu0 %vm250_vm6, %v4325_v22  ;;  %s3542_s28 = sld [smem:[#allocation4 + $0x4]] }
 0x1ac   : > { %v2480_v36 = vmul.f32 %v6640_v60, %v4730_v35  ;;  %v6641_v11 = vstv %s6637_s29  ;;  %v6642_v0 = vstv %s6623_s16  ;;  %v2539_v5 = vadd.f32 %v2537_v51, %v2533_v42  ;;  %3996 = vmatpush3.msk.msra.mxu1 %vm250_vm6, %v4325_v22  ;;  %4112 = vmatprep.subr.msk.bf16.mxu0 %vm4315_vm5, %v6427_v14  ;;  %s3571_s16 = sld [smem:[#allocation4 + $0x5]] }
 0x1ad   : > { %v2484_v39 = vmul.f32 %v6641_v11, %v4810_v7  ;;  %v2814_v43 = vmul.f32 %v4836_v8, %v6642_v0  ;;  %v2804_v58 = vadd.f32 %v2802_v63, %v2798_v56  ;;  %v2490_v53 = vmul.f32 %v2489_v1, %v4758_v21  ;;  %4120 = vmatprep.subr.msk.bf16.mxu1 %vm4315_vm5, %v6427_v14 }
 0x1ae   : > { %v2821_v24 = vadd.f32 %v2819_v47, %v2815_v25  ;;  %v2831_v13 = vmul.f32 %v2830_v19, %v4959_v45  ;;  %v3013_v0 = vstv %s5637_s12  ;;  %v6644_v51 = vstv %s6630_s13  ;;  %s3600_s12 = sld [smem:[#allocation4 + $0x6]]  ;;  %s3629_s13 = sld [smem:[#allocation4 + $0x7]] }
 0x1af   : > { %v2486_v50 = vadd.f32 %v2484_v39, %v2480_v36  ;;  %v2820_v63 = vmul.f32 %v4907_v30, %v6644_v51  ;;  %v2545_v42 = vadd.f32 %v2543_v2, %v2539_v5  ;;  %v2810_v47 = vadd.f32 %v2808_v38, %v2804_v58 }
 0x1b0   : > { %v2496_v56 = vmul.f32 %v2495_v48, %v4863_v34  ;;  %v2826_v25 = vmul.f32 %v4886_v49, %v2824_v4  ;;  %v2827_v60 = vadd.f32 %v2825_v26, %v2821_v24  ;;  %v2502_v11 = vmul.f32 %v2501_v16, %v4842_v40 }
 0x1b1   : > { %v2492_v36 = vadd.f32 %v2490_v53, %v2486_v50  ;;  %v2832_v2 = vmul.f32 %v4952_v41, %v2830_v19  ;;  %v2551_v38 = vadd.f32 %v2549_v33, %v2545_v42  ;;  %v2816_v39 = vadd.f32 %v2814_v43, %v2810_v47 }
 0x1b2   : > { %v6647_v5 = vstv %s6636_s18  ;;  %v2833_v26 = vadd.f32 %v2831_v13, %v2827_v60  ;;  %v6649_v58 = vstv %s6637_s29  ;;  %v2508_v19 = vmul.f32 %v2507_v46, %v4912_v3  ;;  %s3658_s18 = sld [smem:[#allocation4 + $0x8]] }
 0x1b3   : > { %v2481_v4 = vmul.f32 %v4724_v27, %v6647_v5  ;;  %v2485_v53 = vmul.f32 %v4792_v20, %v6649_v58  ;;  %v2498_v24 = vadd.f32 %v2496_v56, %v2492_v36  ;;  %v2557_v50 = vadd.f32 %v2555_v59, %v2551_v38 }
 0x1b4   : > { %v2822_v33 = vadd.f32 %v2820_v63, %v2816_v39  ;;  %v2491_v43 = vmul.f32 %v4744_v32, %v2489_v1  ;;  %v2497_v51 = vmul.f32 %v4858_v10, %v2495_v48  ;;  %3997 = vmatprep.mubr.msk.f32.mxu1 %vm243_vm0, %v2833_v26  ;;  %v2514_v42 = vmul.f32 %v2513_v61, %v4893_v44 }
 0x1b5   : > { %v2504_v13 = vadd.f32 %v2502_v11, %v2498_v24  ;;  %v6653_v59 = vstv %s6646_s5  ;;  %v2749_v1 = vmul.f32 %v2748_v31, %v4810_v7  ;;  %v2563_v48 = vadd.f32 %v5649_v57, %v2557_v50 }
 0x1b6   : > { %v2745_v63 = vmul.f32 %v6653_v59, %v4730_v35  ;;  %v2828_v47 = vadd.f32 %v2826_v25, %v2822_v33  ;;  %v2503_v56 = vmul.f32 %v4836_v8, %v2501_v16  ;;  %v2755_v60 = vmul.f32 %v2754_v28, %v4758_v21 }
 0x1b7   : > { %v2510_v36 = vadd.f32 %v2508_v19, %v2504_v13  ;;  %v2520_v11 = vmul.f32 %v2519_v52, %v4959_v45  ;;  %v2761_v57 = vmul.f32 %v2760_v54, %v4863_v34  ;;  %v2569_v25 = vadd.f32 %v5659_v18, %v2563_v48 }
 0x1b8   : > { %v2751_v38 = vadd.f32 %v2749_v1, %v2745_v63  ;;  %v2834_v39 = vadd.f32 %v2832_v2, %v2828_v47  ;;  %v2509_v16 = vmul.f32 %v4907_v30, %v2507_v46  ;;  %v2750_v5 = vmul.f32 %v4792_v20, %v2748_v31 }
 0x1b9   : > { %v5787_v26 = vmul.f32 %v4886_v49, %v2513_v61  ;;  %v2516_v58 = vadd.f32 %v2514_v42, %v2510_v36  ;;  %v2767_v18 = vmul.f32 %v2766_v55, %v4842_v40  ;;  %3980 = vmatmul.mubr.msk.f32.vlgmr.msra.gmra.mrb[12].mxu0 %vm243_vm0, %v2569_v25  ;;  %v5797_v31 = vmul.f32 %v4952_v41, %v2519_v52 }
 0x1ba   : > { %v2757_v24 = vadd.f32 %v2755_v60, %v2751_v38  ;;  %3998 = vmatmul.mubr.msk.f32.vlgmr.msra.gmra.mrb[16].mxu1 %vm243_vm0, %v2834_v39  ;;  %v6654_v46 = vmov %v6653_v59  ;;  %v2756_v61 = vmul.f32 %v4744_v32, %v2754_v28  ;;  %v3019_v19 = vstv %s5734_s9  ;;  %4114 = vmatpush3.bf16.msk.msra.mxu0 %vm4315_vm5, %v6427_v14 }
 0x1bb   : > { %v2746_v2 = vmul.f32 %v4724_v27, %v6654_v46  ;;  %v2522_v50 = vadd.f32 %v2520_v11, %v2516_v58  ;;  %v2762_v52 = vmul.f32 %v4858_v10, %v2760_v54  ;;  %v2773_v13 = vmul.f32 %v2772_v6, %v4912_v3  ;;  %4122 = vmatpush3.bf16.msk.msra.mxu1 %vm4315_vm5, %v6427_v14 }
 0x1bc   : > { %v2763_v33 = vadd.f32 %v2761_v57, %v2757_v24  ;;  %v2779_v28 = vmul.f32 %v2778_v17, %v4893_v44  ;;  %3986 = vmatprep.subr.msk.mxu0 %vm250_vm6, %v4311_v12  ;;  %v2487_v42 = vadd.f32 %v2485_v53, %v2481_v4  ;;  %v3025_v54 = vstv %s5748_s26  ;;  %4004 = vmatprep.subr.msk.mxu1 %vm250_vm6, %v4311_v12 }
 0x1bd   : > { %v2752_v59 = vadd.f32 %v2750_v5, %v2746_v2  ;;  %3988 = vmatprep.mubr.msk.f32.mxu0 %vm243_vm0, %v2522_v50  ;;  %v3056_v1 = vmul.f32 %v3055_v62, %v4730_v35  ;;  %v3060_v48 = vmul.f32 %v3059_v29, %v4810_v7  ;;  %v3031_v47 = vstv %s5760_s21 }
 0x1be   : > { %v2769_v63 = vadd.f32 %v2767_v18, %v2763_v33  ;;  %v2768_v4 = vmul.f32 %v4836_v8, %v2766_v55  ;;  %v2493_v53 = vadd.f32 %v2491_v43, %v2487_v42  ;;  %v6656_v36 = vstv %s5472_s19  ;;  %3987 = vmatpush3.msk.msra.mxu0 %vm250_vm6, %v4311_v12  ;;  %s3455_s19 = sld [smem:[#allocation4 + $0x1]] }
 0x1bf   : > { %v2758_v60 = vadd.f32 %v2756_v61, %v2752_v59  ;;  %v3066_v11 = vmul.f32 %v6656_v36, %v4758_v21  ;;  %v6657_v57 = vstv %s5361_s7  ;;  %v3062_v39 = vadd.f32 %v3060_v48, %v3056_v1  ;;  %4005 = vmatpush3.msk.msra.mxu1 %vm250_vm6, %v4311_v12  ;;  %4124 = vmatprep.subr.msk.bf16.mxu0 %vm4327_vm11, %v6427_v14  ;;  %s6669_s7 = sld [smem:[#allocation9_spill]] }
 0x1c0   : > { %v2775_v38 = vadd.f32 %v2773_v13, %v2769_v63  ;;  %v2785_v25 = vmul.f32 %v6657_v57, %v4959_v45  ;;  %v6658_v5 = vstv %s5484_s20  ;;  %v2774_v43 = vmul.f32 %v4907_v30, %v2772_v6 }
 0x1c1   : > { %v3072_v55 = vmul.f32 %v6658_v5, %v4863_v34  ;;  %v2499_v58 = vadd.f32 %v2497_v51, %v2493_v53  ;;  %v2764_v24 = vadd.f32 %v2762_v52, %v2758_v60  ;;  %v3037_v18 = vstv %s5782_s17 }
 0x1c2   : > { %v2781_v46 = vadd.f32 %v2779_v28, %v2775_v38  ;;  %v3061_v2 = vmul.f32 %v4792_v20, %v3059_v29  ;;  %v3068_v61 = vadd.f32 %v3066_v11, %v3062_v39  ;;  %v6659_v6 = vstv %s5506_s24 }
 0x1c3   : > { %v3078_v50 = vmul.f32 %v6659_v6, %v4842_v40  ;;  %v2780_v33 = vmul.f32 %v4886_v49, %v2778_v17  ;;  %v2505_v13 = vadd.f32 %v2503_v56, %v2499_v58  ;;  %v2770_v42 = vadd.f32 %v2768_v4, %v2764_v24 }
 0x1c4   : > { %v3057_v51 = vmul.f32 %v4724_v27, %v3055_v62  ;;  %v2787_v52 = vadd.f32 %v2785_v25, %v2781_v46  ;;  %v6660_v28 = vmov %v6656_v36  ;;  %v3074_v59 = vadd.f32 %v3072_v55, %v3068_v61 }
 0x1c5   : > { %v3067_v29 = vmul.f32 %v4744_v32, %v6660_v28  ;;  %v3084_v63 = vmul.f32 %v3083_v37, %v4912_v3  ;;  %v6662_v1 = vmov %v6657_v57  ;;  %v2511_v56 = vadd.f32 %v2509_v16, %v2505_v13  ;;  %s4150_s20 = smul.u32 144, %s6669_s7 }
 0x1c6   : > { %v2786_v17 = vmul.f32 %v4952_v41, %v6662_v1  ;;  %v2776_v48 = vadd.f32 %v2774_v43, %v2770_v42  ;;  %v6663_v62 = vmov %v6658_v5  ;;  %4006 = vmatprep.mubr.msk.f32.mxu1 %vm243_vm0, %v2787_v52  ;;  %v6664_v53 = vmov %v6659_v6 }
 0x1c7   : > { %v3073_v4 = vmul.f32 %v4858_v10, %v6663_v62  ;;  %v3079_v60 = vmul.f32 %v4836_v8, %v6664_v53  ;;  %v3080_v36 = vadd.f32 %v3078_v50, %v3074_v59  ;;  %v6665_v11 = vstv %s5604_s1  ;;  %s5975_s1 = scalar_lea.vmem %s6670_s14, %s4150_s20 }
 0x1c8   : > { %v3090_v38 = vmul.f32 %v6665_v11, %v4893_v44  ;;  %v3063_v57 = vadd.f32 %v3061_v2, %v3057_v51  ;;  %v2517_v16 = vadd.f32 %v5787_v26, %v2511_v56  ;;  %v2782_v25 = vadd.f32 %v2780_v33, %v2776_v48 }
 0x1c9   : > { %v6666_v39 = vstv %s6661_s15  ;;  %v3014_v55 = vmul.f32 %v3013_v0, %v4810_v7  ;;  %v3086_v43 = vadd.f32 %v3084_v63, %v3080_v36  ;;  %v3096_v58 = vmul.f32 %v3095_v9, %v4959_v45 }
 0x1ca   : > { %v3010_v5 = vmul.f32 %v6666_v39, %v4730_v35  ;;  %v3069_v24 = vadd.f32 %v3067_v29, %v3063_v57  ;;  %v3020_v46 = vmul.f32 %v3019_v19, %v4758_v21  ;;  %v2523_v26 = vadd.f32 %v5797_v31, %v2517_v16 }
 0x1cb   : > { %v2788_v2 = vadd.f32 %v2786_v17, %v2782_v25  ;;  %v3026_v35 = vmul.f32 %v3025_v54, %v4863_v34  ;;  %v3085_v7 = vmul.f32 %v4907_v30, %v3083_v37  ;;  %v3092_v6 = vadd.f32 %v3090_v38, %v3086_v43 }
 0x1cc   : > { %v3016_v61 = vadd.f32 %v3014_v55, %v3010_v5  ;;  %v3075_v50 = vadd.f32 %v3073_v4, %v3069_v24  ;;  %v3015_v33 = vmul.f32 %v4792_v20, %v3013_v0  ;;  %3989 = vmatmul.mubr.msk.f32.vlgmr.msra.gmra.mrb[12].mxu0 %vm243_vm0, %v2523_v26  ;;  %v6667_v21 = vmov %v6665_v11 }
 0x1cd   : > { %4007 = vmatmul.mubr.msk.f32.vlgmr.msra.gmra.mrb[16].mxu1 %vm243_vm0, %v2788_v2  ;;  %v3091_v31 = vmul.f32 %v4886_v49, %v6667_v21  ;;  %v3032_v37 = vmul.f32 %v3031_v47, %v4842_v40  ;;  %v3043_v13 = vstv %s5869_s6  ;;  %4126 = vmatpush3.bf16.msk.msra.mxu0 %vm4327_vm11, %v6427_v14  ;;  %v3098_v42 = vadd.f32 %v3096_v58, %v3092_v6 }
 0x1ce   : > { %v3022_v34 = vadd.f32 %v3020_v46, %v3016_v61  ;;  %v3081_v20 = vadd.f32 %v3079_v60, %v3075_v50  ;;  %v6668_v0 = vmov %v6666_v39  ;;  %v3021_v52 = vmul.f32 %v4744_v32, %v3019_v19  ;;  %4013 = vmatprep.subr.msk.mxu0 %vm250_vm6, %v4325_v22 }
 0x1cf   : > { %v3011_v51 = vmul.f32 %v4724_v27, %v6668_v0  ;;  %v3038_v40 = vmul.f32 %v3037_v18, %v4912_v3  ;;  %v3049_v29 = vstv %s5883_s0  ;;  %v3097_v23 = vmul.f32 %v4952_v41, %v3095_v9  ;;  %4015 = vmatprep.mubr.msk.f32.mxu0 %vm243_vm0, %v3098_v42 }
 0x1d0   : > { %v3028_v28 = vadd.f32 %v3026_v35, %v3022_v34  ;;  %v3087_v59 = vadd.f32 %v3085_v7, %v3081_v20  ;;  %v3027_v27 = vmul.f32 %v4858_v10, %v3025_v54  ;;  %v3044_v19 = vmul.f32 %v3043_v13, %v4893_v44 }
 0x1d1   : > { %v3017_v63 = vadd.f32 %v3015_v33, %v3011_v51  ;;  %4014 = vmatpush3.msk.msra.mxu0 %vm250_vm6, %v4325_v22  ;;  %v3033_v3 = vmul.f32 %v4836_v8, %v3031_v47  ;;  %v3050_v56 = vmul.f32 %v3049_v29, %v4959_v45  ;;  %v3039_v54 = vmul.f32 %v4907_v30, %v3037_v18 }
 0x1d2   : > { %v3034_v32 = vadd.f32 %v3032_v37, %v3028_v28  ;;  %v3093_v1 = vadd.f32 %v3091_v31, %v3087_v59  ;;  %4128 = vmatprep.subr.msk.bf16.mxu0 %vm4315_vm5, %v6427_v14  ;;  %v3045_v22 = vmul.f32 %v4886_v49, %v3043_v13  ;;  %v3051_v62 = vmul.f32 %v4952_v41, %v3049_v29 }
 0x1d3   : > { %v3023_v17 = vadd.f32 %v3021_v52, %v3017_v63  ;;  %v1142_v15 = vstv %s1141_s10  ;;  %v1673_v58 = vstv %s3484_s2  ;;  %v1938_v24 = vstv %s3513_s3 }
 0x1d4   : > { %v3040_v9 = vadd.f32 %v3038_v40, %v3034_v32  ;;  %v3099_v10 = vadd.f32 %v3097_v23, %v3093_v1  ;;  %v2203_v0 = vstv %s3542_s28  ;;  %v2468_v51 = vstv %s3571_s16 }
 0x1d5   : > { %v3029_v44 = vadd.f32 %v3027_v27, %v3023_v17 }
 0x1d6   : > { %v3046_v48 = vadd.f32 %v3044_v19, %v3040_v9  ;;  %4016 = vmatmul.mubr.msk.f32.vlgmr.msra.gmra.mrb[14].mxu0 %vm243_vm0, %v3099_v10 }
 0x1d7   : > { %v3035_v8 = vadd.f32 %v3033_v3, %v3029_v44  ;;  %4130 = vmatpush3.bf16.msk.msra.mxu0 %vm4315_vm5, %v6427_v14  ;;  %v1408_v14 = vstv %s3455_s19  ;;  %v2998_v44 = vstv %s3629_s13 }
 0x1d8   : > { %v3052_v47 = vadd.f32 %v3050_v56, %v3046_v48  ;;  %4022 = vmatprep.subr.msk.mxu0 %vm250_vm6, %v4311_v12 }
 0x1d9   : > { %v3041_v45 = vadd.f32 %v3039_v54, %v3035_v8  ;;  %v2733_v54 = vstv %s3600_s12 }
 0x1da   : > { %4024 = vmatprep.mubr.msk.f32.mxu0 %vm243_vm0, %v3052_v47 }
 0x1db   : > { %v3047_v30 = vadd.f32 %v3045_v22, %v3041_v45  ;;  %4023 = vmatpush3.msk.msra.mxu0 %vm250_vm6, %v4311_v12 }
 0x1dd   : > { %v3053_v49 = vadd.f32 %v3051_v62, %v3047_v30 }
 0x1df   : > { %4025 = vmatmul.mubr.msk.f32.vlgmr.msra.gmra.mrb[14].mxu0 %vm243_vm0, %v3053_v49 }
 0x21a   : > { %v3882_v18 = vpop.f32.mrb[6].mxu0 }
 0x21b   : > { %v1144_v41 = vadd.f32 %v3882_v18, %v1142_v15  ;;  %v1132_v53 = vpop.f32.mrb[7].mxu0 }
 0x21c   : > { %v3900_v4 = vpop.f32.mrb[10].mxu1  ;;  %v1143_v36 = vadd.f32 %v1142_v15, %v1132_v53 }
 0x21d   : > { %v1410_v60 = vadd.f32 %v3900_v4, %v1408_v14  ;;  %v1398_v11 = vpop.f32.mrb[11].mxu1  ;;  %v1146_v38 = vmax.f32 %v1144_v41, 0.1 }
 0x21e   : > { %v1409_v57 = vadd.f32 %v1408_v14, %v1398_v11  ;;  %v1145_v16 = vmax.f32 %v1143_v36, 0.1  ;;  %v3263_v11 = vstv %s3658_s18 }
 0x21f   : > { %v1412_v12 = vmax.f32 %v1410_v60, 0.1  ;;  %v1148_v25 = vmin.f32 %v1146_v38, 0.4 }
 0x220   : > { %v1411_v39 = vmax.f32 %v1409_v57, 0.1  ;;  %v1147_v55 = vmin.f32 %v1145_v16, 0.4 }
 0x221   : > { %v1414_v5 = vmin.f32 %v1412_v12, 0.4  ;;  %1152 = vst.msk [vmem:[%s5975_s1 + $0x8] sm:$0x7] %vm1151_vm14, %v1148_v25 }
 0x222   : > { %v1413_v43 = vmin.f32 %v1411_v39, 0.4  ;;  %1150 = vst.msk [vmem:[%s5975_s1] sm:$0xff] %vm1149_vm15, %v1147_v55 }
 0x223   : > { %3457 = vst.msk [vmem:[%s5975_s1 + $0x18] sm:$0x7] %vm1151_vm14, %v1414_v5 }
 0x224   : > { %3456 = vst.msk [vmem:[%s5975_s1 + $0x10] sm:$0xff] %vm1149_vm15, %v1413_v43 }
 0x24a   : > { %v3918_v46 = vpop.f32.mrb[8].mxu0 }
 0x24b   : > { %v3936_v26 = vpop.f32.mrb[12].mxu1  ;;  %v1675_v2 = vadd.f32 %v3918_v46, %v1673_v58  ;;  %v1663_v35 = vpop.f32.mrb[9].mxu0 }
 0x24c   : > { %v1940_v61 = vadd.f32 %v3936_v26, %v1938_v24  ;;  %v1928_v7 = vpop.f32.mrb[13].mxu1  ;;  %v1674_v6 = vadd.f32 %v1673_v58, %v1663_v35 }
 0x24d   : > { %v1939_v50 = vadd.f32 %v1938_v24, %v1928_v7  ;;  %v1677_v33 = vmax.f32 %v1675_v2, 0.1 }
 0x24e   : > { %v1942_v21 = vmax.f32 %v1940_v61, 0.1  ;;  %v1676_v31 = vmax.f32 %v1674_v6, 0.1 }
 0x24f   : > { %v1941_v34 = vmax.f32 %v1939_v50, 0.1  ;;  %v1679_v37 = vmin.f32 %v1677_v33, 0.4 }
 0x250   : > { %v1944_v13 = vmin.f32 %v1942_v21, 0.4  ;;  %v1678_v42 = vmin.f32 %v1676_v31, 0.4 }
 0x251   : > { %v1943_v20 = vmin.f32 %v1941_v34, 0.4  ;;  %3486 = vst.msk [vmem:[%s5975_s1 + $0x28] sm:$0x7] %vm1151_vm14, %v1679_v37 }
 0x252   : > { %3515 = vst.msk [vmem:[%s5975_s1 + $0x38] sm:$0x7] %vm1151_vm14, %v1944_v13 }
 0x253   : > { %3485 = vst.msk [vmem:[%s5975_s1 + $0x20] sm:$0xff] %vm1149_vm15, %v1678_v42  ;;  %3514 = vst.msk [vmem:[%s5975_s1 + $0x30] sm:$0xff] %vm1149_vm15, %v1943_v20 }
 0x279   : > { %v3954_v52 = vpop.f32.mrb[10].mxu0  ;;  %v3972_v28 = vpop.f32.mrb[14].mxu1 }
 0x27a   : > { %v2205_v40 = vadd.f32 %v3954_v52, %v2203_v0  ;;  %v2470_v29 = vadd.f32 %v3972_v28, %v2468_v51  ;;  %v2193_v23 = vpop.f32.mrb[11].mxu0  ;;  %v2458_v59 = vpop.f32.mrb[15].mxu1 }
 0x27b   : > { %v2204_v27 = vadd.f32 %v2203_v0, %v2193_v23  ;;  %v2469_v63 = vadd.f32 %v2468_v51, %v2458_v59 }
 0x27c   : > { %v2207_v32 = vmax.f32 %v2205_v40, 0.1  ;;  %v2472_v19 = vmax.f32 %v2470_v29, 0.1 }
 0x27d   : > { %v2206_v1 = vmax.f32 %v2204_v27, 0.1  ;;  %v2471_v3 = vmax.f32 %v2469_v63, 0.1 }
 0x27e   : > { %v2209_v17 = vmin.f32 %v2207_v32, 0.4  ;;  %v2474_v9 = vmin.f32 %v2472_v19, 0.4 }
 0x27f   : > { %v2208_v56 = vmin.f32 %v2206_v1, 0.4  ;;  %v2473_v10 = vmin.f32 %v2471_v3, 0.4 }
 0x280   : > { %3544 = vst.msk [vmem:[%s5975_s1 + $0x48] sm:$0x7] %vm1151_vm14, %v2209_v17  ;;  %3573 = vst.msk [vmem:[%s5975_s1 + $0x58] sm:$0x7] %vm1151_vm14, %v2474_v9 }
 0x281   : > { %3543 = vst.msk [vmem:[%s5975_s1 + $0x40] sm:$0xff] %vm1149_vm15, %v2208_v56  ;;  %3572 = vst.msk [vmem:[%s5975_s1 + $0x50] sm:$0xff] %vm1149_vm15, %v2473_v10 }
 0x29f   : > { %v3990_v48 = vpop.f32.mrb[12].mxu0 }
 0x2a0   : > { %v4008_v22 = vpop.f32.mrb[16].mxu1  ;;  %v2735_v8 = vadd.f32 %v3990_v48, %v2733_v54  ;;  %v2723_v62 = vpop.f32.mrb[13].mxu0 }
 0x2a1   : > { %v3000_v47 = vadd.f32 %v4008_v22, %v2998_v44  ;;  %v2988_v45 = vpop.f32.mrb[17].mxu1  ;;  %v2734_v30 = vadd.f32 %v2733_v54, %v2723_v62 }
 0x2a2   : > { %v2999_v49 = vadd.f32 %v2998_v44, %v2988_v45  ;;  %v2737_v15 = vmax.f32 %v2735_v8, 0.1 }
 0x2a3   : > { %v3002_v14 = vmax.f32 %v3000_v47, 0.1  ;;  %v2736_v18 = vmax.f32 %v2734_v30, 0.1 }
 0x2a4   : > { %v3001_v41 = vmax.f32 %v2999_v49, 0.1  ;;  %v2739_v4 = vmin.f32 %v2737_v15, 0.4 }
 0x2a5   : > { %v3004_v53 = vmin.f32 %v3002_v14, 0.4  ;;  %v2738_v60 = vmin.f32 %v2736_v18, 0.4 }
 0x2a6   : > { %v3003_v36 = vmin.f32 %v3001_v41, 0.4  ;;  %3602 = vst.msk [vmem:[%s5975_s1 + $0x68] sm:$0x7] %vm1151_vm14, %v2739_v4 }
 0x2a7   : > { %3631 = vst.msk [vmem:[%s5975_s1 + $0x78] sm:$0x7] %vm1151_vm14, %v3004_v53 }
 0x2a8   : > { %3601 = vst.msk [vmem:[%s5975_s1 + $0x60] sm:$0xff] %vm1149_vm15, %v2738_v60  ;;  %3630 = vst.msk [vmem:[%s5975_s1 + $0x70] sm:$0xff] %vm1149_vm15, %v3003_v36 }
 0x2b2   : > { %v4026_v38 = vpop.f32.mrb[14].mxu0 }
 0x2b3   : > { %v3265_v57 = vadd.f32 %v4026_v38, %v3263_v11  ;;  %v3253_v12 = vpop.f32.mrb[15].mxu0 }
 0x2b4   : > { %v3264_v16 = vadd.f32 %v3263_v11, %v3253_v12 }
 0x2b5   : > { %v3267_v25 = vmax.f32 %v3265_v57, 0.1 }
 0x2b6   : > { %v3266_v39 = vmax.f32 %v3264_v16, 0.1 }
 0x2b7   : > { %v3269_v5 = vmin.f32 %v3267_v25, 0.4 }
 0x2b8   : > { %v3268_v55 = vmin.f32 %v3266_v39, 0.4 }
 0x2b9   : > { %3660 = vst.msk [vmem:[%s5975_s1 + $0x88] sm:$0x7] %vm1151_vm14, %v3269_v5 }
 0x2ba   : > { %3659 = vst.msk [vmem:[%s5975_s1 + $0x80] sm:$0xff] %vm1149_vm15, %v3268_v55 }
 0x2bb PF: > { %s6671_s29 = sld [smem:[#allocation8_spill]] }
 0x2c1   : > { %s15_s12 = sadd.s32 1, %s6671_s29  }
 0x2c2   : > { %p12_p5 = scmp.ge.s32.totalorder %s15_s12, 4  }
 0x2c4   :  { %14 = sbr.rel (!%p12_p5) target bundleno = 7 (0x7), region = 82 }
 0x2cb   :  { %3294 = vsyncpa [#allocation3], 1 }
 0x2cc   :  { %3296 = vsyncpa [#allocation3 + $0x1], 1 }
 0x2cd   :  { %3297 = vsyncpa [#allocation5], 1 }

</bundles_post_ra>
